<compile_context>
chip_gen: v6e
topology: v6e:2x2x1
jax: 0.10.0
libtpu: 0.0.40
codegen_flags: <defaults>
</compile_context>

<pallas_src>
import functools

import jax
import jax.numpy as jnp
from jax.experimental import pallas as pl
from jax.experimental.pallas import tpu as pltpu

# ---- MANO constants -------------------------------------------------------
V = 778          # mesh vertices
NJ = 16          # joints (root + 15)
NPOSE = 135      # 15 * 9 pose-blend features
NCOMPS = 6       # PCA components
ROT = 3          # axis-angle root rotation
NBETAS = 10
VP = 896         # V padded to a multiple of 128 (lane dim)
BT = 16          # batch tile per grid step -> stacked MXU M = 16*BT = 256
                 # (fills a v6e/v7x 256-wide MXU; two passes on v5e's 128-wide)

LEV1 = [1, 4, 7, 10, 13]
LEV2 = [2, 5, 8, 11, 14]
LEV3 = [3, 6, 9, 12, 15]
REORDER16 = [0, 1, 6, 11, 2, 7, 12, 3, 8, 13, 4, 9, 14, 5, 10, 15]
JTR_ORDER = [0, 13, 14, 15, 16, 1, 2, 3, 17, 4, 5, 6, 18, 10, 11, 12, 19, 7, 8, 9, 20]
TIPS_RIGHT = [745, 317, 444, 556, 673]


# ---- Pallas hot path: pose blend shapes + LBS skinning ---------------------
def _mano_lbs_kernel(pm_ref, res2_ref, pd_ref, wT_ref, verts_ref):
    # pm_ref    : (BT, NPOSE+1)    pose-blend coeffs + trailing homogeneous 1
    # res2_ref  : (1, 16*BT, NJ)   skinning transforms, rows ordered
    #                              (flat 4x4 index i*4+k, batch-in-tile)
    # pd_ref    : (NPOSE+1, 3*VP)  fused posedirs (+ v_shaped last row),
    #                              coordinate-major lane chunks x|y|z
    # wT_ref    : (NJ, VP)         skinning weights, vertices along lanes
    # verts_ref : (3, BT, VP)      output, coordinate-major leading axis
    bt = pm_ref.shape[0]

    # one stacked MXU matmul for all BT per-vertex transform fields (M=16*BT)
    T = jnp.dot(res2_ref[0], wT_ref[...],
                preferred_element_type=jnp.float32)            # (16*BT, VP)

    # pose-blended rest shape for all 3 coords + BT batches in one matmul;
    # the homogeneous "1" column of pm picks up the v_shaped row of pd.
    rest = jnp.dot(pm_ref[...], pd_ref[...],
                   preferred_element_type=jnp.float32)         # (BT, 3*VP)
    rx = rest[:, 0 * VP:1 * VP]                                # (BT, VP)
    ry = rest[:, 1 * VP:2 * VP]
    rz = rest[:, 2 * VP:3 * VP]

    def trow(f):                                               # contiguous slab
        return T[f * bt:(f + 1) * bt, :]                       # (BT, VP)

    # verts[i] = T[4i]*x + T[4i+1]*y + T[4i+2]*z + T[4i+3]  (translation: add)
    for i in range(3):
        verts_ref[i] = (trow(4 * i + 0) * rx + trow(4 * i + 1) * ry
                        + trow(4 * i + 2) * rz + trow(4 * i + 3))


def mano_lbs_pallas(pose_map_aug, res2_16, pd_fused, weights_t):
    # pose_map_aug : (B, NPOSE+1) f32
    # res2_16      : (B, NJ, 16)  f32  (th_results2 reshaped, [b, joint, i*4+k])
    # pd_fused     : (NPOSE+1, 3*VP) f32 (batch-invariant, precomputed)
    # weights_t    : (NJ, VP) f32        (batch-invariant, precomputed)
    B = pose_map_aug.shape[0]
    G = (B + BT - 1) // BT
    Bp = G * BT

    pm_p = jnp.pad(pose_map_aug, ((0, Bp - B), (0, 0)))
    res2_p = jnp.pad(res2_16, ((0, Bp - B), (0, 0), (0, 0)))
    # pre-block so each grid step sees rows ordered (flat4x4 index, batch):
    # res2_blk[g, f*BT + b, j] = res2_p[g*BT + b, j, f]
    res2_blk = jnp.transpose(res2_p.reshape(G, BT, NJ, 16),
                             (0, 3, 1, 2)).reshape(G, 16 * BT, NJ)

    verts = pl.pallas_call(
        _mano_lbs_kernel,
        out_shape=jax.ShapeDtypeStruct((3, Bp, VP), jnp.float32),
        grid_spec=pltpu.PrefetchScalarGridSpec(
            num_scalar_prefetch=0,
            grid=(G,),
            in_specs=[
                pl.BlockSpec((BT, NPOSE + 1), lambda g: (g, 0)),
                pl.BlockSpec((1, 16 * BT, NJ), lambda g: (g, 0, 0)),
                # batch-invariant operands: constant index map -> stay resident
                pl.BlockSpec((NPOSE + 1, 3 * VP), lambda g: (0, 0)),
                pl.BlockSpec((NJ, VP), lambda g: (0, 0)),
            ],
            out_specs=pl.BlockSpec((3, BT, VP), lambda g: (0, g, 0)),
        ),
        compiler_params=pltpu.CompilerParams(
            dimension_semantics=("parallel",)),
    )(pm_p, res2_blk, pd_fused, weights_t)
    return verts[:, :B, :V]                                    # (3, B, V)


# ---- small JAX glue (tiny per-batch math) ----------------------------------
def quat2mat(quat):
    q = quat / jnp.linalg.norm(quat, axis=1, keepdims=True)
    w, x, y, z = q[:, 0], q[:, 1], q[:, 2], q[:, 3]
    w2, x2, y2, z2 = w * w, x * x, y * y, z * z
    wx, wy, wz = w * x, w * y, w * z
    xy, xz, yz = x * y, x * z, y * z
    rot = jnp.stack([
        w2 + x2 - y2 - z2, 2 * xy - 2 * wz, 2 * wy + 2 * xz,
        2 * wz + 2 * xy, w2 - x2 + y2 - z2, 2 * yz - 2 * wx,
        2 * xz - 2 * wy, 2 * wx + 2 * yz, w2 - x2 - y2 + z2], axis=1)
    return rot.reshape(-1, 3, 3)


def batch_rodrigues(axisang):
    norm = jnp.linalg.norm(axisang + 1e-8, axis=1)
    angle = norm[:, None]
    normalized = axisang / angle
    half = angle * 0.5
    quat = jnp.concatenate([jnp.cos(half), jnp.sin(half) * normalized], axis=1)
    return quat2mat(quat)


def th_with_zeros(t):  # (N,3,4) -> (N,4,4) homogeneous
    n = t.shape[0]
    pad = jnp.broadcast_to(
        jnp.array([0.0, 0.0, 0.0, 1.0], t.dtype).reshape(1, 1, 4), (n, 1, 4))
    return jnp.concatenate([t, pad], axis=1)


def init_mano_params(key):
    ks = jax.random.split(key, 7)
    p = {}
    p['betas'] = 0.1 * jax.random.normal(ks[0], (1, NBETAS), jnp.float32)
    p['shapedirs'] = 0.01 * jax.random.normal(ks[1], (V, 3, NBETAS), jnp.float32)
    p['posedirs'] = 0.01 * jax.random.normal(ks[2], (V, 3, NPOSE), jnp.float32)
    p['v_template'] = 0.1 * jax.random.normal(ks[3], (1, V, 3), jnp.float32)
    jr = jax.random.uniform(ks[4], (NJ, V), jnp.float32)
    p['J_regressor'] = jr / jnp.sum(jr, axis=1, keepdims=True)
    w = jax.random.uniform(ks[5], (V, NJ), jnp.float32)
    p['weights'] = w / jnp.sum(w, axis=1, keepdims=True)
    comps = 0.1 * jax.random.normal(ks[6], (45, 45), jnp.float32)
    p['selected_comps'] = comps[:NCOMPS]
    p['hands_mean'] = jnp.zeros((1, 45), jnp.float32)   # flat_hand_mean=True
    return p


def precompute_mano_constants(params):
    """One-time layout work for batch-invariant MANO tensors.

    Hoisted out of the per-call forward path (per perf review): the padded /
    transposed / fused copies of posedirs, v_shaped and weights are computed
    exactly once and reused by every forward call.
    """
    v_shaped = (jnp.einsum('vcs,s->vc', params['shapedirs'], params['betas'][0])
                + params['v_template'][0])                           # (V,3)
    th_j1 = params['J_regressor'] @ v_shaped                         # (NJ,3)

    # fused posedirs, coordinate-major along lanes (x|y|z chunks of VP lanes,
    # VP = 7*128 so lane slices are aligned). Last row = rest shape, driven by
    # the homogeneous "1" column of the pose map inside the kernel.
    pd = jnp.transpose(params['posedirs'], (2, 1, 0))                # (135,3,V)
    pd = jnp.pad(pd, ((0, 0), (0, 0), (0, VP - V))).reshape(NPOSE, 3 * VP)
    vs = jnp.pad(v_shaped.T, ((0, 0), (0, VP - V))).reshape(1, 3 * VP)
    pd_fused = jnp.concatenate([pd, vs], axis=0)                     # (136,3*VP)

    weights_t = jnp.pad(params['weights'].T, ((0, 0), (0, VP - V)))  # (NJ,VP)
    return {'v_shaped': v_shaped, 'th_j1': th_j1,
            'pd_fused': pd_fused, 'weights_t': weights_t}


@functools.partial(jax.jit, static_argnames=("use_pallas",))
def mano_forward(params, consts, th_pose_coeffs, use_pallas=True):
    B = th_pose_coeffs.shape[0]

    # PCA pose decode
    hand_pose = th_pose_coeffs[:, ROT:ROT + NCOMPS]
    full_hand_pose = hand_pose @ params['selected_comps']           # (B,45)
    full_pose = jnp.concatenate(
        [th_pose_coeffs[:, :ROT], params['hands_mean'] + full_hand_pose], axis=1)

    # axis-angle -> rotation matrices for all 16 segments
    rot_mats = batch_rodrigues(full_pose.reshape(-1, 3)).reshape(B, NJ, 3, 3)
    pose_map_full = rot_mats.reshape(B, NJ, 9) - jnp.eye(3, dtype=jnp.float32).reshape(1, 1, 9)
    root_rot = rot_mats[:, 0]
    all_rots = rot_mats[:, 1:]
    pose_map = pose_map_full[:, 1:].reshape(B, NPOSE)

    # default-betas shape path (th_betas buffer, numel==1 branch in torch):
    # rest-pose joints are batch-invariant and precomputed.
    th_j = jnp.broadcast_to(consts['th_j1'][None], (B, NJ, 3))

    # kinematic chain (16 tiny 4x4 composes per batch -> plain JAX glue)
    root_j = th_j[:, 0].reshape(B, 3, 1)
    root_trans = th_with_zeros(jnp.concatenate([root_rot, root_j], axis=2))
    lev1_rots = all_rots[:, [i - 1 for i in LEV1]]
    lev2_rots = all_rots[:, [i - 1 for i in LEV2]]
    lev3_rots = all_rots[:, [i - 1 for i in LEV3]]
    lev1_j, lev2_j, lev3_j = th_j[:, LEV1], th_j[:, LEV2], th_j[:, LEV3]

    lev1_j_rel = lev1_j - jnp.transpose(root_j, (0, 2, 1))
    lev1_rel = th_with_zeros(
        jnp.concatenate([lev1_rots, lev1_j_rel[..., None]], axis=3).reshape(-1, 3, 4))
    root_trans_flt = jnp.repeat(root_trans[:, None], 5, axis=1).reshape(B * 5, 4, 4)
    lev1_flt = root_trans_flt @ lev1_rel

    lev2_j_rel = lev2_j - lev1_j
    lev2_rel = th_with_zeros(
        jnp.concatenate([lev2_rots, lev2_j_rel[..., None]], axis=3).reshape(-1, 3, 4))
    lev2_flt = lev1_flt @ lev2_rel

    lev3_j_rel = lev3_j - lev2_j
    lev3_rel = th_with_zeros(
        jnp.concatenate([lev3_rots, lev3_j_rel[..., None]], axis=3).reshape(-1, 3, 4))
    lev3_flt = lev2_flt @ lev3_rel

    th_results = jnp.concatenate([
        root_trans[:, None],
        lev1_flt.reshape(B, 5, 4, 4),
        lev2_flt.reshape(B, 5, 4, 4),
        lev3_flt.reshape(B, 5, 4, 4)], axis=1)[:, REORDER16]        # (B,16,4,4)

    # remove rest-pose joint positions from transforms
    joint_js = jnp.concatenate([th_j, jnp.zeros((B, NJ, 1), jnp.float32)], axis=2)
    tmp2 = jnp.einsum('bjik,bjk->bji', th_results, joint_js)        # (B,16,4)
    th_results2 = th_results - jnp.concatenate(
        [jnp.zeros((B, NJ, 4, 3), jnp.float32), tmp2[..., None]], axis=3)
    res2_16 = th_results2.reshape(B, NJ, 16)                        # [b, joint, i*4+k]

    if use_pallas:
        pose_map_aug = jnp.concatenate(
            [pose_map, jnp.ones((B, 1), jnp.float32)], axis=1)      # (B,136)
        verts_r = mano_lbs_pallas(pose_map_aug, res2_16,
                                  consts['pd_fused'], consts['weights_t'])
        th_verts = jnp.transpose(verts_r, (1, 2, 0))                # (B,V,3)
    else:
        # pure-JAX reference of the kernel path (for verification)
        res2_flat = jnp.transpose(res2_16, (0, 2, 1))               # (B,16flat,16joints)
        off = jnp.einsum('bp,vcp->bvc', pose_map, params['posedirs'],
                         precision='highest')
        v_posed = consts['v_shaped'][None] + off                    # (B,V,3)
        T = jnp.einsum('bfj,vj->bfv', res2_flat, params['weights'],
                       precision='highest')
        rest = jnp.concatenate([jnp.transpose(v_posed, (0, 2, 1)),
                                jnp.ones((B, 1, V), jnp.float32)], axis=1)
        T4 = T.reshape(B, 4, 4, V)
        th_verts = jnp.transpose(
            jnp.einsum('bikv,bkv->biv', T4, rest,
                       precision='highest')[:, :3], (0, 2, 1))

    th_jtr = th_results[:, :, :3, 3]                                 # (B,16,3)
    tips = th_verts[:, TIPS_RIGHT]
    th_jtr = jnp.concatenate([th_jtr, tips], axis=1)[:, JTR_ORDER]   # (B,21,3)

    # defaults: th_trans == 0 and center_idx is None -> no recentering/translation
    # TODO(synk): root_palm / th_trans / center_idx non-default branches not exercised.
    th_verts = th_verts * 1000.0
    th_jtr = th_jtr * 1000.0
    return th_verts, th_jtr


if __name__ == "__main__":
    key = jax.random.PRNGKey(0)
    pk, ik = jax.random.split(key)
    params = init_mano_params(pk)
    consts = precompute_mano_constants(params)   # one-time, batch-invariant

    B = 2
    th_pose_coeffs = 0.5 * jax.random.normal(ik, (B, ROT + NCOMPS), jnp.float32)

    verts, jtr = mano_forward(params, consts, th_pose_coeffs, use_pallas=True)
    verts = jax.block_until_ready(verts)
    jtr = jax.block_until_ready(jtr)

    verts_ref, jtr_ref = mano_forward(params, consts, th_pose_coeffs, use_pallas=False)
    verts_ref = jax.block_until_ready(verts_ref)
    jtr_ref = jax.block_until_ready(jtr_ref)

    assert verts.shape == (B, V, 3) and jtr.shape == (B, 21, 3)
    assert bool(jnp.allclose(verts, verts_ref, rtol=5e-3, atol=0.5))
    assert bool(jnp.allclose(jtr, jtr_ref, rtol=5e-3, atol=0.5))
    print("KERNEL_OK")
</pallas_src>

<mosaic_0001>
module attributes {stable_mosaic.version = 11 : i64} {
  func.func @_mano_lbs_kernel(%arg0: i32, %arg1: memref<16x136xf32, #tpu.memory_space<vmem>>, %arg2: memref<1x256x16xf32, #tpu.memory_space<vmem>>, %arg3: memref<136x2688xf32, #tpu.memory_space<vmem>>, %arg4: memref<16x896xf32, #tpu.memory_space<vmem>>, %arg5: memref<3x16x896xf32, #tpu.memory_space<vmem>>) attributes {dimension_semantics = [#tpu.dimension_semantics<parallel>], iteration_bounds = array<i64: 1>, scalar_prefetch = 0 : i64, scratch_operands = 0 : i64, tpu.core_type = #tpu.core_type<tc>, window_params = [{transform_indices = @transform_0, window_bounds = array<i64: 16, 136>}, {transform_indices = @transform_1, window_bounds = array<i64: 1, 256, 16>}, {pipeline_mode = #tpu.pipeline_mode<synchronous>, transform_indices = @transform_2, window_bounds = array<i64: 136, 2688>}, {pipeline_mode = #tpu.pipeline_mode<synchronous>, transform_indices = @transform_3, window_bounds = array<i64: 16, 896>}, {transform_indices = @transform_4, window_bounds = array<i64: 3, 16, 896>}]} {
    %c0 = arith.constant 0 : index
    %c0_0 = arith.constant 0 : index
    %c0_1 = arith.constant 0 : index
    %0 = vector.load %arg2[%c0, %c0_0, %c0_1] : memref<1x256x16xf32, #tpu.memory_space<vmem>>, vector<1x256x16xf32>
    %1 = vector.shape_cast %0 : vector<1x256x16xf32> to vector<256x16xf32>
    %c0_2 = arith.constant 0 : index
    %c0_3 = arith.constant 0 : index
    %2 = vector.load %arg4[%c0_2, %c0_3] : memref<16x896xf32, #tpu.memory_space<vmem>>, vector<16x896xf32>
    %cst = arith.constant dense<0.000000e+00> : vector<256x896xf32>
    %3 = tpu.matmul %1, %2, %cst {dimension_numbers = #tpu.dot_dimension_numbers<[1], [0], [0], [1], [0, 0, 1, 1], [], []>} : vector<256x16xf32>, vector<16x896xf32>, vector<256x896xf32> -> vector<256x896xf32>
    %c0_4 = arith.constant 0 : index
    %c0_5 = arith.constant 0 : index
    %4 = vector.load %arg1[%c0_4, %c0_5] : memref<16x136xf32, #tpu.memory_space<vmem>>, vector<16x136xf32>
    %c0_6 = arith.constant 0 : index
    %c0_7 = arith.constant 0 : index
    %5 = vector.load %arg3[%c0_6, %c0_7] : memref<136x2688xf32, #tpu.memory_space<vmem>>, vector<136x2688xf32>
    %cst_8 = arith.constant dense<0.000000e+00> : vector<16x2688xf32>
    %6 = tpu.matmul %4, %5, %cst_8 {dimension_numbers = #tpu.dot_dimension_numbers<[1], [0], [0], [1], [0, 0, 1, 1], [], []>} : vector<16x136xf32>, vector<136x2688xf32>, vector<16x2688xf32> -> vector<16x2688xf32>
    %7 = vector.extract_strided_slice %6 {offsets = [0, 0], sizes = [16, 896], strides = [1, 1]} : vector<16x2688xf32> to vector<16x896xf32>
    %8 = vector.extract_strided_slice %6 {offsets = [0, 896], sizes = [16, 896], strides = [1, 1]} : vector<16x2688xf32> to vector<16x896xf32>
    %9 = vector.extract_strided_slice %6 {offsets = [0, 1792], sizes = [16, 896], strides = [1, 1]} : vector<16x2688xf32> to vector<16x896xf32>
    %10 = vector.extract_strided_slice %3 {offsets = [0, 0], sizes = [16, 896], strides = [1, 1]} : vector<256x896xf32> to vector<16x896xf32>
    %11 = arith.mulf %10, %7 : vector<16x896xf32>
    %12 = vector.extract_strided_slice %3 {offsets = [16, 0], sizes = [16, 896], strides = [1, 1]} : vector<256x896xf32> to vector<16x896xf32>
    %13 = arith.mulf %12, %8 : vector<16x896xf32>
    %14 = arith.addf %11, %13 : vector<16x896xf32>
    %15 = vector.extract_strided_slice %3 {offsets = [32, 0], sizes = [16, 896], strides = [1, 1]} : vector<256x896xf32> to vector<16x896xf32>
    %16 = arith.mulf %15, %9 : vector<16x896xf32>
    %17 = arith.addf %14, %16 : vector<16x896xf32>
    %18 = vector.extract_strided_slice %3 {offsets = [48, 0], sizes = [16, 896], strides = [1, 1]} : vector<256x896xf32> to vector<16x896xf32>
    %19 = arith.addf %17, %18 : vector<16x896xf32>
    %c0_9 = arith.constant 0 : index
    %c0_10 = arith.constant 0 : index
    %c0_11 = arith.constant 0 : index
    %20 = vector.load %arg5[%c0_9, %c0_10, %c0_11] : memref<3x16x896xf32, #tpu.memory_space<vmem>>, vector<1x16x896xf32>
    %21 = vector.shape_cast %20 : vector<1x16x896xf32> to vector<16x896xf32>
    %22 = vector.shape_cast %19 : vector<16x896xf32> to vector<1x16x896xf32>
    tpu.vector_store %arg5[%c0_9, %c0_10, %c0_11], %22 {strides = array<i32>} : memref<3x16x896xf32, #tpu.memory_space<vmem>>, vector<1x16x896xf32>,
    %23 = vector.extract_strided_slice %3 {offsets = [64, 0], sizes = [16, 896], strides = [1, 1]} : vector<256x896xf32> to vector<16x896xf32>
    %24 = arith.mulf %23, %7 : vector<16x896xf32>
    %25 = vector.extract_strided_slice %3 {offsets = [80, 0], sizes = [16, 896], strides = [1, 1]} : vector<256x896xf32> to vector<16x896xf32>
    %26 = arith.mulf %25, %8 : vector<16x896xf32>
    %27 = arith.addf %24, %26 : vector<16x896xf32>
    %28 = vector.extract_strided_slice %3 {offsets = [96, 0], sizes = [16, 896], strides = [1, 1]} : vector<256x896xf32> to vector<16x896xf32>
    %29 = arith.mulf %28, %9 : vector<16x896xf32>
    %30 = arith.addf %27, %29 : vector<16x896xf32>
    %31 = vector.extract_strided_slice %3 {offsets = [112, 0], sizes = [16, 896], strides = [1, 1]} : vector<256x896xf32> to vector<16x896xf32>
    %32 = arith.addf %30, %31 : vector<16x896xf32>
    %c1 = arith.constant 1 : index
    %c0_12 = arith.constant 0 : index
    %c0_13 = arith.constant 0 : index
    %33 = vector.load %arg5[%c1, %c0_12, %c0_13] : memref<3x16x896xf32, #tpu.memory_space<vmem>>, vector<1x16x896xf32>
    %34 = vector.shape_cast %33 : vector<1x16x896xf32> to vector<16x896xf32>
    %35 = vector.shape_cast %32 : vector<16x896xf32> to vector<1x16x896xf32>
    tpu.vector_store %arg5[%c1, %c0_12, %c0_13], %35 {strides = array<i32>} : memref<3x16x896xf32, #tpu.memory_space<vmem>>, vector<1x16x896xf32>,
    %36 = vector.extract_strided_slice %3 {offsets = [128, 0], sizes = [16, 896], strides = [1, 1]} : vector<256x896xf32> to vector<16x896xf32>
    %37 = arith.mulf %36, %7 : vector<16x896xf32>
    %38 = vector.extract_strided_slice %3 {offsets = [144, 0], sizes = [16, 896], strides = [1, 1]} : vector<256x896xf32> to vector<16x896xf32>
    %39 = arith.mulf %38, %8 : vector<16x896xf32>
    %40 = arith.addf %37, %39 : vector<16x896xf32>
    %41 = vector.extract_strided_slice %3 {offsets = [160, 0], sizes = [16, 896], strides = [1, 1]} : vector<256x896xf32> to vector<16x896xf32>
    %42 = arith.mulf %41, %9 : vector<16x896xf32>
    %43 = arith.addf %40, %42 : vector<16x896xf32>
    %44 = vector.extract_strided_slice %3 {offsets = [176, 0], sizes = [16, 896], strides = [1, 1]} : vector<256x896xf32> to vector<16x896xf32>
    %45 = arith.addf %43, %44 : vector<16x896xf32>
    %c2 = arith.constant 2 : index
    %c0_14 = arith.constant 0 : index
    %c0_15 = arith.constant 0 : index
    %46 = vector.load %arg5[%c2, %c0_14, %c0_15] : memref<3x16x896xf32, #tpu.memory_space<vmem>>, vector<1x16x896xf32>
    %47 = vector.shape_cast %46 : vector<1x16x896xf32> to vector<16x896xf32>
    %48 = vector.shape_cast %45 : vector<16x896xf32> to vector<1x16x896xf32>
    tpu.vector_store %arg5[%c2, %c0_14, %c0_15], %48 {strides = array<i32>} : memref<3x16x896xf32, #tpu.memory_space<vmem>>, vector<1x16x896xf32>,
    return
  }
  func.func @transform_0(%arg0: i32) -> (i32, i32) {
    %c0_i32 = arith.constant 0 : i32
    %c0_i32_0 = arith.constant 0 : i32
    return %arg0, %c0_i32 : i32, i32
  }
  func.func @transform_1(%arg0: i32) -> (i32, i32, i32) {
    %c0_i32 = arith.constant 0 : i32
    %c0_i32_0 = arith.constant 0 : i32
    %c0_i32_1 = arith.constant 0 : i32
    return %arg0, %c0_i32, %c0_i32_0 : i32, i32, i32
  }
  func.func @transform_2(%arg0: i32) -> (i32, i32) {
    %c0_i32 = arith.constant 0 : i32
    %c0_i32_0 = arith.constant 0 : i32
    %c0_i32_1 = arith.constant 0 : i32
    return %c0_i32, %c0_i32_0 : i32, i32
  }
  func.func @transform_3(%arg0: i32) -> (i32, i32) {
    %c0_i32 = arith.constant 0 : i32
    %c0_i32_0 = arith.constant 0 : i32
    %c0_i32_1 = arith.constant 0 : i32
    return %c0_i32, %c0_i32_0 : i32, i32
  }
  func.func @transform_4(%arg0: i32) -> (i32, i32, i32) {
    %c0_i32 = arith.constant 0 : i32
    %c0_i32_0 = arith.constant 0 : i32
    %c0_i32_1 = arith.constant 0 : i32
    return %c0_i32, %arg0, %c0_i32_0 : i32, i32, i32
  }
}

</mosaic_0001>

<bundles_post_ra>
// kernel: mano_forward.1
= control target key start
LH: loop header
LB: loop body
LE: loop exit
PB: predicated region body
PF: predicated region fallthrough
CT: control target
= control target key end

     0   :  { %v5439_v3 = vmov 0.0   ;;  %vm63_vm0 = vcmask 130048   ;;  %vm1461_vm1 = vcmask 64512   ;;  %s5434_s3 = inlined_call_operand.vmem [shape: f32[16,896], index: 3, kind: input, shape index: {}]   ;;  %s5435_s1 = inlined_call_operand.vmem [shape: f32[1,256,16], index: 1, kind: input, shape index: {}]   ;;  %s5436_s2 = inlined_call_operand.vmem [shape: f32[136,2688], index: 2, kind: input, shape index: {}]   ;;  %s5437_s0 = inlined_call_operand.vmem [shape: f32[16,136], index: 0, kind: input, shape index: {}]   ;;  %s5438_s4 = inlined_call_operand.vmem [shape: f32[3,16,896], index: 4, kind: output, shape index: {}]  }
   0x1   :  { %v57_v0 = vld [vmem:[%s5434_s3 + $0x40] sm:$0xff]  ;;  %v56_v1 = vld [vmem:[%s5434_s3 + $0x38] sm:$0xff]  ;;  %v50_v2 = vld [vmem:[%s5434_s3 + $0x8] sm:$0xff]  ;;  %224 = vmatprep.mubr.f32.mxu0 %v5439_v3  ;;  %388 = vmatprep.mubr.f32.mxu1 %v5439_v3 }
   0x2   :  { %188 = vmatprep.subr.mxu0 %v57_v0  ;;  %2877 = vmatprep.subr.mxu1 %v57_v0  ;;  %v49_v4 = vld [vmem:[%s5434_s3] sm:$0xff]  ;;  %v2937_v6 = vld [vmem:[%s5435_s1 + $0xe8] sm:$0xff]  ;;  %v60_v8 = vld [vmem:[%s5434_s3 + $0x58] sm:$0xff] }
   0x3   :  { %189 = vmatpush1.msra.mxu0 %v56_v1  ;;  %2879 = vmatpush1.msra.mxu1 %v56_v1  ;;  %v2932_v5 = vld [vmem:[%s5435_s1] sm:$0xff]  ;;  %v59_v9 = vld [vmem:[%s5434_s3 + $0x50] sm:$0xff]  ;;  %v2956_v10 = vld [vmem:[%s5435_s1 + $0x8] sm:$0xff] }
   0x4   :  { %190 = vmatprep.subr.mxu0 %v50_v2  ;;  %2878 = vmatprep.subr.mxu1 %v50_v2  ;;  %v61_v7 = vld [vmem:[%s5434_s3 + $0x60] sm:$0xff]  ;;  %v2961_v11 = vld [vmem:[%s5435_s1 + $0xf0] sm:$0xff]  ;;  %v58_v12 = vld [vmem:[%s5434_s3 + $0x48] sm:$0xff] }
   0x5   :  { %191 = vmatpush1.msra.mxu0 %v49_v4  ;;  %2880 = vmatpush1.msra.mxu1 %v49_v4  ;;  %v52_v13 = vld [vmem:[%s5434_s3 + $0x18] sm:$0xff]  ;;  %v51_v14 = vld [vmem:[%s5434_s3 + $0x10] sm:$0xff]  ;;  %v54_v15 = vld [vmem:[%s5434_s3 + $0x28] sm:$0xff] }
   0x6   :  { %2613 = vmatmul.mubr.msk.f32.vlgmr.msra.gmra.mxu0 %vm63_vm0, %v2932_v5  ;;  %2642 = vmatmul.mubr.msk.f32.vlgmr.msra.gmra.mxu1 %vm63_vm0, %v2937_v6  ;;  %v2984_v16 = vld [vmem:[%s5435_s1 + $0x10] sm:$0xff]  ;;  %v2989_v17 = vld [vmem:[%s5435_s1 + $0xf8] sm:$0xff]  ;;  %v62_v18 = vld [vmem:[%s5434_s3 + $0x68] sm:$0xff] }
   0x7   :  { %670 = vmatprep.subr.mxu0 %v61_v7  ;;  %230 = vmatprep.mubr.f32.mxu0 %v5439_v3  ;;  %v53_v19 = vld [vmem:[%s5434_s3 + $0x20] sm:$0xff]  ;;  %v3007_v20 = vld [vmem:[%s5435_s1 + $0x18] sm:$0xff]  ;;  %v55_v22 = vld [vmem:[%s5434_s3 + $0x30] sm:$0xff] }
   0x8   :  { %671 = vmatpush1.msra.mxu0 %v60_v8  ;;  %392 = vmatprep.mubr.f32.mxu1 %v5439_v3  ;;  %v1424_v21 = vld [vmem:[%s5436_s2 + $0xa00] sm:$0xff]  ;;  %v3038_v25 = vld [vmem:[%s5435_s1 + $0x28] sm:$0xff]  ;;  %v3049_v26 = vld [vmem:[%s5435_s1 + $0x30] sm:$0xff] }
   0x9   :  { %429 = vmatprep.subr.mxu1 %v59_v9  ;;  %672 = vmatprep.subr.mxu0 %v54_v15  ;;  %v3024_v23 = vld [vmem:[%s5435_s1 + $0x20] sm:$0xff]  ;;  %v3060_v27 = vld [vmem:[%s5435_s1 + $0x38] sm:$0xff]  ;;  %v3082_v29 = vld [vmem:[%s5435_s1 + $0x48] sm:$0xff] }
   0xa   :  { %2614 = vmatmul.mubr.msk.f32.gmra.mxu0 %vm63_vm0, %v2956_v10  ;;  %2643 = vmatmul.mubr.msk.f32.gmra.mxu1 %vm63_vm0, %v2961_v11  ;;  %v1420_v24 = vld [vmem:[%s5436_s2 + $0x9e0] sm:$0xff]  ;;  %v3093_v30 = vld [vmem:[%s5435_s1 + $0x50] sm:$0xff]  ;;  %v3104_v31 = vld [vmem:[%s5435_s1 + $0x58] sm:$0xff] }
   0xb   :  { %430 = vmatpush1.msra.mxu1 %v58_v12  ;;  %236 = vmatprep.mubr.f32.mxu0 %v5439_v3  ;;  %v3071_v28 = vld [vmem:[%s5435_s1 + $0x40] sm:$0xff]  ;;  %v3126_v33 = vld [vmem:[%s5435_s1 + $0x68] sm:$0xff]  ;;  %v3137_v34 = vld [vmem:[%s5435_s1 + $0x70] sm:$0xff] }
   0xc   :  { %396 = vmatprep.mubr.f32.mxu1 %v5439_v3  ;;  %431 = vmatprep.subr.mxu1 %v52_v13  ;;  %v3115_v32 = vld [vmem:[%s5435_s1 + $0x60] sm:$0xff]  ;;  %v3148_v35 = vld [vmem:[%s5435_s1 + $0x78] sm:$0xff]  ;;  %v3170_v37 = vld [vmem:[%s5435_s1 + $0x88] sm:$0xff] }
   0xd   :  { %432 = vmatpush1.msra.mxu1 %v51_v14  ;;  %673 = vmatpush1.msra.mxu0 %v53_v19  ;;  %v3159_v36 = vld [vmem:[%s5435_s1 + $0x80] sm:$0xff]  ;;  %v3181_v38 = vld [vmem:[%s5435_s1 + $0x90] sm:$0xff]  ;;  %v3192_v39 = vld [vmem:[%s5435_s1 + $0x98] sm:$0xff] }
   0xe   :  { %2615 = vmatmul.mubr.msk.f32.gmra.mxu0 %vm63_vm0, %v2984_v16  ;;  %2644 = vmatmul.mubr.msk.f32.gmra.mxu1 %vm63_vm0, %v2989_v17  ;;  %v3203_v40 = vld [vmem:[%s5435_s1 + $0xa0] sm:$0xff]  ;;  %v3214_v41 = vld [vmem:[%s5435_s1 + $0xa8] sm:$0xff]  ;;  %v3225_v42 = vld [vmem:[%s5435_s1 + $0xb0] sm:$0xff] }
   0xf   :  { %242 = vmatprep.mubr.f32.mxu0 %v5439_v3  ;;  %465 = vmatprep.mubr.f32.mxu1 %v5439_v3  ;;  %v3236_v43 = vld [vmem:[%s5435_s1 + $0xb8] sm:$0xff]  ;;  %v3247_v44 = vld [vmem:[%s5435_s1 + $0xc0] sm:$0xff]  ;;  %v3258_v45 = vld [vmem:[%s5435_s1 + $0xc8] sm:$0xff] }
  0x10   :  { %2825 = vmatprep.subr.mxu1 %v62_v18  ;;  %1622 = vmatprep.subr.mxu0 %v1424_v21  ;;  %v3269_v46 = vld [vmem:[%s5435_s1 + $0xd0] sm:$0xff]  ;;  %v3280_v47 = vld [vmem:[%s5435_s1 + $0xd8] sm:$0xff]  ;;  %v3291_v48 = vld [vmem:[%s5435_s1 + $0xe0] sm:$0xff] }
  0x11   :  { %v1423_v49 = vld [vmem:[%s5436_s2 + $0x9f8] sm:$0xff]  ;;  %v1402_v51 = vld [vmem:[%s5436_s2 + $0x950] sm:$0xff]  ;;  %v1381_v53 = vld [vmem:[%s5436_s2 + $0x8a8] sm:$0xff] }
  0x12   :  { %2616 = vmatmul.mubr.msk.f32.gmra.mxu0 %vm63_vm0, %v3007_v20  ;;  %2645 = vmatmul.mubr.msk.f32.vlgmr.msra.gmra.mxu1 %vm63_vm0, %v2932_v5  ;;  %v1403_v50 = vld [vmem:[%s5436_s2 + $0x958] sm:$0xff]  ;;  %v1382_v52 = vld [vmem:[%s5436_s2 + $0x8b0] sm:$0xff]  ;;  %v1361_v54 = vld [vmem:[%s5436_s2 + $0x808] sm:$0xff] }
  0x13   :  { %248 = vmatprep.mubr.f32.mxu0 %v5439_v3  ;;  %471 = vmatprep.mubr.f32.mxu1 %v5439_v3  ;;  %v1360_v55 = vld [vmem:[%s5436_s2 + $0x800] sm:$0xff]  ;;  %v1339_v57 = vld [vmem:[%s5436_s2 + $0x758] sm:$0xff]  ;;  %v1318_v59 = vld [vmem:[%s5436_s2 + $0x6b0] sm:$0xff] }
  0x14   :  { %2826 = vmatpush3.msra.mxu1 %v62_v18  ;;  %v1340_v56 = vld [vmem:[%s5436_s2 + $0x760] sm:$0xff]  ;;  %v1319_v58 = vld [vmem:[%s5436_s2 + $0x6b8] sm:$0xff]  ;;  %v1298_v60 = vld [vmem:[%s5436_s2 + $0x610] sm:$0xff] }
  0x15   :  { %2827 = vmatprep.subr.mxu1 %v55_v22  ;;  %v1297_v61 = vld [vmem:[%s5436_s2 + $0x608] sm:$0xff]  ;;  %v1419_v62 = vld [vmem:[%s5436_s2 + $0x9d8] sm:$0xff]  ;;  %v1276_v1 = vld [vmem:[%s5436_s2 + $0x560] sm:$0xff] }
  0x16   :  { %2617 = vmatmul.mubr.msk.f32.gmra.mxu0 %vm63_vm0, %v3024_v23  ;;  %2646 = vmatmul.mubr.msk.f32.gmra.mxu1 %vm63_vm0, %v2956_v10  ;;  %v1277_v63 = vld [vmem:[%s5436_s2 + $0x568] sm:$0xff]  ;;  %v1399_v0 = vld [vmem:[%s5436_s2 + $0x938] sm:$0xff]  ;;  %v1398_v2 = vld [vmem:[%s5436_s2 + $0x930] sm:$0xff] }
  0x17   :  { %254 = vmatprep.mubr.f32.mxu0 %v5439_v3  ;;  %477 = vmatprep.mubr.f32.mxu1 %v5439_v3  ;;  %v1256_v4 = vld [vmem:[%s5436_s2 + $0x4c0] sm:$0xff]  ;;  %v1255_v7 = vld [vmem:[%s5436_s2 + $0x4b8] sm:$0xff]  ;;  %v1377_v8 = vld [vmem:[%s5436_s2 + $0x888] sm:$0xff] }
  0x18   :  { %2828 = vmatpush3.msra.mxu1 %v55_v22  ;;  %v1235_v9 = vld [vmem:[%s5436_s2 + $0x418] sm:$0xff]  ;;  %v1234_v12 = vld [vmem:[%s5436_s2 + $0x410] sm:$0xff]  ;;  %v1356_v13 = vld [vmem:[%s5436_s2 + $0x7e0] sm:$0xff] }
  0x19   :  { %1468 = vmatprep.subr.mxu1 %v1420_v24  ;;  %v1214_v14 = vld [vmem:[%s5436_s2 + $0x370] sm:$0xff]  ;;  %v1336_v15 = vld [vmem:[%s5436_s2 + $0x740] sm:$0xff]  ;;  %v1335_v18 = vld [vmem:[%s5436_s2 + $0x738] sm:$0xff] }
  0x1a   :  { %2618 = vmatmul.mubr.msk.f32.gmra.mxu0 %vm63_vm0, %v3038_v25  ;;  %2647 = vmatmul.mubr.msk.f32.gmra.mxu1 %vm63_vm0, %v2984_v16  ;;  %v1193_v19 = vld [vmem:[%s5436_s2 + $0x2c8] sm:$0xff]  ;;  %v1192_v21 = vld [vmem:[%s5436_s2 + $0x2c0] sm:$0xff]  ;;  %v1314_v22 = vld [vmem:[%s5436_s2 + $0x690] sm:$0xff] }
  0x1b   :  { %260 = vmatprep.mubr.f32.mxu0 %v5439_v3  ;;  %483 = vmatprep.mubr.f32.mxu1 %v5439_v3  ;;  %v1294_v24 = vld [vmem:[%s5436_s2 + $0x5f0] sm:$0xff] }
  0x1e   :  { %2619 = vmatmul.mubr.msk.f32.gmra.mxu0 %vm63_vm0, %v3049_v26  ;;  %2648 = vmatmul.mubr.msk.f32.gmra.mxu1 %vm63_vm0, %v3007_v20 }
  0x1f   :  { %266 = vmatprep.mubr.f32.mxu0 %v5439_v3  ;;  %489 = vmatprep.mubr.f32.mxu1 %v5439_v3 }
  0x22   :  { %2620 = vmatmul.mubr.msk.f32.gmra.mxu0 %vm63_vm0, %v3060_v27  ;;  %2649 = vmatmul.mubr.msk.f32.gmra.mxu1 %vm63_vm0, %v3024_v23 }
  0x23   :  { %272 = vmatprep.mubr.f32.mxu0 %v5439_v3  ;;  %495 = vmatprep.mubr.f32.mxu1 %v5439_v3 }
  0x26   :  { %2621 = vmatmul.mubr.msk.f32.gmra.mxu0 %vm63_vm0, %v3071_v28  ;;  %2650 = vmatmul.mubr.msk.f32.gmra.mxu1 %vm63_vm0, %v3038_v25 }
  0x27   :  { %278 = vmatprep.mubr.f32.mxu0 %v5439_v3  ;;  %501 = vmatprep.mubr.f32.mxu1 %v5439_v3 }
  0x2a   :  { %2622 = vmatmul.mubr.msk.f32.gmra.mxu0 %vm63_vm0, %v3082_v29  ;;  %2651 = vmatmul.mubr.msk.f32.gmra.mxu1 %vm63_vm0, %v3049_v26 }
  0x2b   :  { %284 = vmatprep.mubr.f32.mxu0 %v5439_v3  ;;  %507 = vmatprep.mubr.f32.mxu1 %v5439_v3 }
  0x2e   :  { %2623 = vmatmul.mubr.msk.f32.gmra.mxu0 %vm63_vm0, %v3093_v30  ;;  %2652 = vmatmul.mubr.msk.f32.gmra.mxu1 %vm63_vm0, %v3060_v27 }
  0x2f   :  { %290 = vmatprep.mubr.f32.mxu0 %v5439_v3  ;;  %513 = vmatprep.mubr.f32.mxu1 %v5439_v3 }
  0x32   :  { %2624 = vmatmul.mubr.msk.f32.gmra.mxu0 %vm63_vm0, %v3104_v31  ;;  %2653 = vmatmul.mubr.msk.f32.gmra.mxu1 %vm63_vm0, %v3071_v28 }
  0x33   :  { %296 = vmatprep.mubr.f32.mxu0 %v5439_v3  ;;  %519 = vmatprep.mubr.f32.mxu1 %v5439_v3 }
  0x36   :  { %2625 = vmatmul.mubr.msk.f32.gmra.mxu0 %vm63_vm0, %v3115_v32  ;;  %2654 = vmatmul.mubr.msk.f32.gmra.mxu1 %vm63_vm0, %v3082_v29 }
  0x37   :  { %302 = vmatprep.mubr.f32.mxu0 %v5439_v3  ;;  %525 = vmatprep.mubr.f32.mxu1 %v5439_v3 }
  0x3a   :  { %2626 = vmatmul.mubr.msk.f32.gmra.mxu0 %vm63_vm0, %v3126_v33  ;;  %2655 = vmatmul.mubr.msk.f32.gmra.mxu1 %vm63_vm0, %v3093_v30 }
  0x3b   :  { %308 = vmatprep.mubr.f32.mxu0 %v5439_v3  ;;  %531 = vmatprep.mubr.f32.mxu1 %v5439_v3 }
  0x3e   :  { %2627 = vmatmul.mubr.msk.f32.gmra.mxu0 %vm63_vm0, %v3137_v34  ;;  %2656 = vmatmul.mubr.msk.f32.gmra.mxu1 %vm63_vm0, %v3104_v31 }
  0x3f   :  { %314 = vmatprep.mubr.f32.mxu0 %v5439_v3  ;;  %537 = vmatprep.mubr.f32.mxu1 %v5439_v3 }
  0x42   :  { %2628 = vmatmul.mubr.msk.f32.gmra.mxu0 %vm63_vm0, %v3148_v35  ;;  %2657 = vmatmul.mubr.msk.f32.gmra.mxu1 %vm63_vm0, %v3115_v32 }
  0x43   :  { %320 = vmatprep.mubr.f32.mxu0 %v5439_v3  ;;  %543 = vmatprep.mubr.f32.mxu1 %v5439_v3 }
  0x46   :  { %2629 = vmatmul.mubr.msk.f32.gmra.mxu0 %vm63_vm0, %v3159_v36  ;;  %2658 = vmatmul.mubr.msk.f32.gmra.mxu1 %vm63_vm0, %v3126_v33 }
  0x47   :  { %326 = vmatprep.mubr.f32.mxu0 %v5439_v3  ;;  %549 = vmatprep.mubr.f32.mxu1 %v5439_v3 }
  0x4a   :  { %2630 = vmatmul.mubr.msk.f32.gmra.mxu0 %vm63_vm0, %v3170_v37  ;;  %2659 = vmatmul.mubr.msk.f32.gmra.mxu1 %vm63_vm0, %v3137_v34 }
  0x4b   :  { %332 = vmatprep.mubr.f32.mxu0 %v5439_v3  ;;  %555 = vmatprep.mubr.f32.mxu1 %v5439_v3 }
  0x4e   :  { %2631 = vmatmul.mubr.msk.f32.gmra.mxu0 %vm63_vm0, %v3181_v38  ;;  %2660 = vmatmul.mubr.msk.f32.gmra.mxu1 %vm63_vm0, %v3148_v35 }
  0x4f   :  { %338 = vmatprep.mubr.f32.mxu0 %v5439_v3  ;;  %561 = vmatprep.mubr.f32.mxu1 %v5439_v3 }
  0x52   :  { %2632 = vmatmul.mubr.msk.f32.gmra.mxu0 %vm63_vm0, %v3192_v39  ;;  %2661 = vmatmul.mubr.msk.f32.gmra.mxu1 %vm63_vm0, %v3159_v36 }
  0x53   :  { %344 = vmatprep.mubr.f32.mxu0 %v5439_v3  ;;  %567 = vmatprep.mubr.f32.mxu1 %v5439_v3 }
  0x56   :  { %2633 = vmatmul.mubr.msk.f32.gmra.mxu0 %vm63_vm0, %v3203_v40  ;;  %2662 = vmatmul.mubr.msk.f32.gmra.mxu1 %vm63_vm0, %v3170_v37 }
  0x57   :  { %350 = vmatprep.mubr.f32.mxu0 %v5439_v3  ;;  %573 = vmatprep.mubr.f32.mxu1 %v5439_v3 }
  0x5a   :  { %2634 = vmatmul.mubr.msk.f32.gmra.mxu0 %vm63_vm0, %v3214_v41  ;;  %2663 = vmatmul.mubr.msk.f32.gmra.mxu1 %vm63_vm0, %v3181_v38 }
  0x5b   :  { %356 = vmatprep.mubr.f32.mxu0 %v5439_v3  ;;  %579 = vmatprep.mubr.f32.mxu1 %v5439_v3 }
  0x5e   :  { %2635 = vmatmul.mubr.msk.f32.gmra.mxu0 %vm63_vm0, %v3225_v42  ;;  %2664 = vmatmul.mubr.msk.f32.gmra.mxu1 %vm63_vm0, %v3192_v39 }
  0x5f   :  { %362 = vmatprep.mubr.f32.mxu0 %v5439_v3  ;;  %585 = vmatprep.mubr.f32.mxu1 %v5439_v3 }
  0x62   :  { %2636 = vmatmul.mubr.msk.f32.gmra.mxu0 %vm63_vm0, %v3236_v43  ;;  %2665 = vmatmul.mubr.msk.f32.gmra.mxu1 %vm63_vm0, %v3203_v40 }
  0x63   :  { %368 = vmatprep.mubr.f32.mxu0 %v5439_v3  ;;  %591 = vmatprep.mubr.f32.mxu1 %v5439_v3 }
  0x66   :  { %2637 = vmatmul.mubr.msk.f32.gmra.mxu0 %vm63_vm0, %v3247_v44  ;;  %2666 = vmatmul.mubr.msk.f32.gmra.mxu1 %vm63_vm0, %v3214_v41 }
  0x67   :  { %372 = vmatprep.mubr.f32.mxu0 %v5439_v3  ;;  %597 = vmatprep.mubr.f32.mxu1 %v5439_v3 }
  0x6a   :  { %2638 = vmatmul.mubr.msk.f32.gmra.mxu0 %vm63_vm0, %v3258_v45  ;;  %2667 = vmatmul.mubr.msk.f32.gmra.mxu1 %vm63_vm0, %v3225_v42 }
  0x6b   :  { %376 = vmatprep.mubr.f32.mxu0 %v5439_v3  ;;  %603 = vmatprep.mubr.f32.mxu1 %v5439_v3 }
  0x6e   :  { %2639 = vmatmul.mubr.msk.f32.gmra.mxu0 %vm63_vm0, %v3269_v46  ;;  %2668 = vmatmul.mubr.msk.f32.gmra.mxu1 %vm63_vm0, %v3236_v43 }
  0x6f   :  { %380 = vmatprep.mubr.f32.mxu0 %v5439_v3  ;;  %609 = vmatprep.mubr.f32.mxu1 %v5439_v3 }
  0x72   :  { %2640 = vmatmul.mubr.msk.f32.gmra.mxu0 %vm63_vm0, %v3280_v47  ;;  %2669 = vmatmul.mubr.msk.f32.gmra.mxu1 %vm63_vm0, %v3247_v44 }
  0x73   :  { %384 = vmatprep.mubr.f32.mxu0 %v5439_v3  ;;  %613 = vmatprep.mubr.f32.mxu1 %v5439_v3 }
  0x76   :  { %2641 = vmatmul.mubr.msk.f32.gmra.mxu0 %vm63_vm0, %v3291_v48  ;;  %2670 = vmatmul.mubr.msk.f32.gmra.mxu1 %vm63_vm0, %v3258_v45 }
  0x77   :  { %617 = vmatprep.mubr.f32.mxu1 %v5439_v3  ;;  %706 = vmatprep.mubr.f32.mxu0 %v5439_v3 }
  0x7a   :  { %2671 = vmatmul.mubr.msk.f32.gmra.mxu1 %vm63_vm0, %v3269_v46  ;;  %2677 = vmatmul.mubr.msk.f32.vlgmr.msra.gmra.mxu0 %vm63_vm0, %v2932_v5 }
  0x7b   :  { %1623 = vmatpush1.msra.mxu0 %v1423_v49  ;;  %621 = vmatprep.mubr.f32.mxu1 %v5439_v3  ;;  %v1129_v49 = vld [vmem:[%s5436_s2 + $0xc8] sm:$0xff] }
  0x7c   :  { %712 = vmatprep.mubr.f32.mxu0 %v5439_v3  ;;  %1624 = vmatprep.subr.mxu0 %v1403_v50  ;;  %v1109_v50 = vld [vmem:[%s5436_s2 + $0x28] sm:$0xff] }
  0x7d   :  { %1625 = vmatpush1.msra.mxu0 %v1402_v51  ;;  %v1231_v51 = vld [vmem:[%s5436_s2 + $0x3f8] sm:$0xff] }
  0x7e   :  { %2672 = vmatmul.mubr.msk.f32.gmra.mxu1 %vm63_vm0, %v3280_v47  ;;  %2678 = vmatmul.mubr.msk.f32.gmra.mxu0 %vm63_vm0, %v2956_v10 }
  0x7f   :  { %625 = vmatprep.mubr.f32.mxu1 %v5439_v3  ;;  %718 = vmatprep.mubr.f32.mxu0 %v5439_v3 }
  0x80   :  { %1626 = vmatprep.subr.mxu0 %v1382_v52  ;;  %v1108_v52 = vld [vmem:[%s5436_s2 + $0x20] sm:$0xff] }
  0x81   :  { %1627 = vmatpush1.msra.mxu0 %v1381_v53  ;;  %v1445_v53 = vld [vmem:[%s5436_s2 + $0xaa8] sm:$0xff] }
  0x82   :  { %2673 = vmatmul.mubr.msk.f32.gmra.mxu1 %vm63_vm0, %v3291_v48  ;;  %2679 = vmatmul.mubr.msk.f32.gmra.mxu0 %vm63_vm0, %v2984_v16 }
  0x83   :  { %629 = vmatprep.mubr.f32.mxu1 %v5439_v3  ;;  %724 = vmatprep.mubr.f32.mxu0 %v5439_v3 }
  0x84   :  { %1628 = vmatprep.subr.mxu0 %v1361_v54  ;;  %v1210_v54 = vld [vmem:[%s5436_s2 + $0x350] sm:$0xff] }
  0x85   :  { %1629 = vmatpush1.msra.mxu0 %v1360_v55  ;;  %v1444_v55 = vld [vmem:[%s5436_s2 + $0xaa0] sm:$0xff] }
  0x86   :  { %2674 = vmatmul.mubr.msk.f32.gmra.mxu1 %vm63_vm0, %v2937_v6  ;;  %2680 = vmatmul.mubr.msk.f32.gmra.mxu0 %vm63_vm0, %v3007_v20 }
  0x87   :  { %633 = vmatprep.mubr.f32.mxu1 %v5439_v3  ;;  %730 = vmatprep.mubr.f32.mxu0 %v5439_v3 }
  0x88   :  { %1630 = vmatprep.subr.mxu0 %v1340_v56  ;;  %v1428_v56 = vld [vmem:[%s5436_s2 + $0xa20] sm:$0xff] }
  0x89   :  { %1631 = vmatpush1.msra.mxu0 %v1339_v57  ;;  %v1189_v57 = vld [vmem:[%s5436_s2 + $0x2a8] sm:$0xff] }
  0x8a   :  { %2675 = vmatmul.mubr.msk.f32.gmra.mxu1 %vm63_vm0, %v2961_v11  ;;  %2681 = vmatmul.mubr.msk.f32.gmra.mxu0 %vm63_vm0, %v3024_v23 }
  0x8b   :  { %637 = vmatprep.mubr.f32.mxu1 %v5439_v3  ;;  %736 = vmatprep.mubr.f32.mxu0 %v5439_v3 }
  0x8c   :  { %1632 = vmatprep.subr.mxu0 %v1319_v58  ;;  %v1188_v58 = vld [vmem:[%s5436_s2 + $0x2a0] sm:$0xff] }
  0x8d   :  { %1633 = vmatpush1.msra.mxu0 %v1318_v59  ;;  %v1167_v59 = vld [vmem:[%s5436_s2 + $0x1f8] sm:$0xff] }
  0x8e   :  { %2676 = vmatmul.mubr.msk.f32.gmra.mxu1 %vm63_vm0, %v2989_v17  ;;  %2682 = vmatmul.mubr.msk.f32.gmra.mxu0 %vm63_vm0, %v3038_v25 }
  0x8f   :  { %742 = vmatprep.mubr.f32.mxu0 %v5439_v3  ;;  %2829 = vmatprep.mubr.msk.f32.mxu1 %vm63_vm0, %v2932_v5  ;;  %v1378_v5 = vld [vmem:[%s5436_s2 + $0x890] sm:$0xff] }
  0x90   :  { %1634 = vmatprep.subr.mxu0 %v1298_v60  ;;  %v1146_v60 = vld [vmem:[%s5436_s2 + $0x150] sm:$0xff] }
  0x91   :  { %1635 = vmatpush1.msra.mxu0 %v1297_v61 }
  0x92   :  { %2683 = vmatmul.mubr.msk.f32.gmra.mxu0 %vm63_vm0, %v3049_v26  ;;  %2830 = vmatmul.mubr.msk.f32.vlgmr.msra.gmra.mxu1 %vm63_vm0, %v2956_v10  ;;  %v1357_v10 = vld [vmem:[%s5436_s2 + $0x7e8] sm:$0xff] }
  0x93   :  { %748 = vmatprep.mubr.f32.mxu0 %v5439_v3  ;;  %2832 = vmatprep.mubr.msk.f32.mxu1 %vm63_vm0, %v2984_v16  ;;  %v1213_v16 = vld [vmem:[%s5436_s2 + $0x368] sm:$0xff] }
  0x94   :  { %1469 = vmatpush1.msra.mxu1 %v1419_v62  ;;  %1636 = vmatprep.subr.mxu0 %v1277_v63  ;;  %v1125_v63 = vld [vmem:[%s5436_s2 + $0xa8] sm:$0xff] }
  0x95   :  { %1470 = vmatprep.subr.mxu1 %v1399_v0  ;;  %1637 = vmatpush1.msra.mxu0 %v1276_v1 }
  0x96   :  { %2684 = vmatmul.mubr.msk.f32.gmra.mxu0 %vm63_vm0, %v3060_v27  ;;  %2833 = vmatmul.mubr.msk.f32.gmra.mxu1 %vm63_vm0, %v3007_v20  ;;  %v1315_v20 = vld [vmem:[%s5436_s2 + $0x698] sm:$0xff] }
  0x97   :  { %754 = vmatprep.mubr.f32.mxu0 %v5439_v3  ;;  %2835 = vmatprep.mubr.msk.f32.mxu1 %vm63_vm0, %v3024_v23  ;;  %v1172_v23 = vld [vmem:[%s5436_s2 + $0x220] sm:$0xff] }
  0x98   :  { %1471 = vmatpush1.msra.mxu1 %v1398_v2  ;;  %1638 = vmatprep.subr.mxu0 %v1256_v4 }
  0x99   :  { %1472 = vmatprep.subr.mxu1 %v1378_v5  ;;  %1639 = vmatpush1.msra.mxu0 %v1255_v7  ;;  %v1104_v5 = vld [vmem:[%s5436_s2] sm:$0xff] }
  0x9a   :  { %2685 = vmatmul.mubr.msk.f32.gmra.mxu0 %vm63_vm0, %v3071_v28  ;;  %2836 = vmatmul.mubr.msk.f32.gmra.mxu1 %vm63_vm0, %v3038_v25  ;;  %v1171_v25 = vld [vmem:[%s5436_s2 + $0x218] sm:$0xff] }
  0x9b   :  { %760 = vmatprep.mubr.f32.mxu0 %v5439_v3  ;;  %2838 = vmatprep.mubr.msk.f32.mxu1 %vm63_vm0, %v3049_v26  ;;  %v1293_v26 = vld [vmem:[%s5436_s2 + $0x5e8] sm:$0xff] }
  0x9c   :  { %1473 = vmatpush1.msra.mxu1 %v1377_v8  ;;  %1640 = vmatprep.subr.mxu0 %v1235_v9  ;;  %v3653_v9 = vld [vmem:[%s5437_s0 + $0x8] sm:$0xff] }
  0x9d   :  { %1474 = vmatprep.subr.mxu1 %v1357_v10  ;;  %1641 = vmatpush1.msra.mxu0 %v1234_v12  ;;  %v1422_v12 = vld [vmem:[%s5436_s2 + $0x9f0] sm:$0xff] }
  0x9e   :  { %2686 = vmatmul.mubr.msk.f32.gmra.mxu0 %vm63_vm0, %v3082_v29  ;;  %2839 = vmatmul.mubr.msk.f32.gmra.mxu1 %vm63_vm0, %v3060_v27  ;;  %v1151_v27 = vld [vmem:[%s5436_s2 + $0x178] sm:$0xff] }
  0x9f   :  { %766 = vmatprep.mubr.f32.mxu0 %v5439_v3  ;;  %2841 = vmatprep.mubr.msk.f32.mxu1 %vm63_vm0, %v3071_v28  ;;  %v1273_v28 = vld [vmem:[%s5436_s2 + $0x548] sm:$0xff] }
  0xa0   :  { %1475 = vmatpush1.msra.mxu1 %v1356_v13  ;;  %1642 = vmatprep.subr.mxu0 %v1214_v14  ;;  %v3668_v13 = vld [vmem:[%s5437_s0] sm:$0xff] }
  0xa1   :  { %1476 = vmatprep.subr.mxu1 %v1336_v15  ;;  %1643 = vmatpush1.msra.mxu0 %v1213_v16  ;;  %v3683_v16 = vld [vmem:[%s5437_s0 + $0x18] sm:$0xff] }
  0xa2   :  { %2687 = vmatmul.mubr.msk.f32.gmra.mxu0 %vm63_vm0, %v3093_v30  ;;  %2842 = vmatmul.mubr.msk.f32.gmra.mxu1 %vm63_vm0, %v3082_v29  ;;  %v1150_v29 = vld [vmem:[%s5436_s2 + $0x170] sm:$0xff] }
  0xa3   :  { %772 = vmatprep.mubr.f32.mxu0 %v5439_v3  ;;  %2844 = vmatprep.mubr.msk.f32.mxu1 %vm63_vm0, %v3093_v30  ;;  %v1272_v30 = vld [vmem:[%s5436_s2 + $0x540] sm:$0xff] }
  0xa4   :  { %1477 = vmatpush1.msra.mxu1 %v1335_v18  ;;  %1644 = vmatprep.subr.mxu0 %v1193_v19 }
  0xa5   :  { %1478 = vmatprep.subr.mxu1 %v1315_v20  ;;  %1645 = vmatpush1.msra.mxu0 %v1192_v21  ;;  %v1400_v20 = vld [vmem:[%s5436_s2 + $0x940] sm:$0xff] }
  0xa6   :  { %2688 = vmatmul.mubr.msk.f32.gmra.mxu0 %vm63_vm0, %v3104_v31  ;;  %2845 = vmatmul.mubr.msk.f32.gmra.mxu1 %vm63_vm0, %v3104_v31  ;;  %v1130_v31 = vld [vmem:[%s5436_s2 + $0xd0] sm:$0xff]  ;;  %v1380_v21 = vld [vmem:[%s5436_s2 + $0x8a0] sm:$0xff] }
  0xa7   :  { %778 = vmatprep.mubr.f32.mxu0 %v5439_v3  ;;  %2847 = vmatprep.mubr.msk.f32.mxu1 %vm63_vm0, %v3115_v32 }
  0xa8   :  { %1479 = vmatpush1.msra.mxu1 %v1314_v22  ;;  %1646 = vmatprep.subr.mxu0 %v1172_v23 }
  0xa9   :  { %1480 = vmatprep.subr.mxu1 %v1294_v24  ;;  %1647 = vmatpush1.msra.mxu0 %v1171_v25  ;;  %v1379_v24 = vld [vmem:[%s5436_s2 + $0x898] sm:$0xff] }
  0xaa   :  { %2689 = vmatmul.mubr.msk.f32.gmra.mxu0 %vm63_vm0, %v3115_v32  ;;  %2848 = vmatmul.mubr.msk.f32.gmra.mxu1 %vm63_vm0, %v3126_v33  ;;  %v1252_v32 = vld [vmem:[%s5436_s2 + $0x4a0] sm:$0xff] }
  0xab   :  { %784 = vmatprep.mubr.f32.mxu0 %v5439_v3  ;;  %2850 = vmatprep.mubr.msk.f32.mxu1 %vm63_vm0, %v3137_v34 }
  0xac   :  { %1481 = vmatpush1.msra.mxu1 %v1293_v26  ;;  %1648 = vmatprep.subr.mxu0 %v1151_v27  ;;  %v1359_v27 = vld [vmem:[%s5436_s2 + $0x7f8] sm:$0xff] }
  0xad   :  { %1482 = vmatprep.subr.mxu1 %v1273_v28  ;;  %1649 = vmatpush1.msra.mxu0 %v1150_v29  ;;  %v1358_v28 = vld [vmem:[%s5436_s2 + $0x7f0] sm:$0xff] }
  0xae   :  { %2690 = vmatmul.mubr.msk.f32.gmra.mxu0 %vm63_vm0, %v3126_v33  ;;  %2851 = vmatmul.mubr.msk.f32.gmra.mxu1 %vm63_vm0, %v3148_v35  ;;  %v1251_v33 = vld [vmem:[%s5436_s2 + $0x498] sm:$0xff] }
  0xaf   :  { %790 = vmatprep.mubr.f32.mxu0 %v5439_v3  ;;  %2853 = vmatprep.mubr.msk.f32.mxu1 %vm63_vm0, %v3159_v36 }
  0xb0   :  { %1483 = vmatpush1.msra.mxu1 %v1272_v30  ;;  %1650 = vmatprep.subr.mxu0 %v1130_v31  ;;  %v1337_v31 = vld [vmem:[%s5436_s2 + $0x748] sm:$0xff] }
  0xb1   :  { %1484 = vmatprep.subr.mxu1 %v1252_v32  ;;  %1651 = vmatpush1.msra.mxu0 %v1129_v49 }
  0xb2   :  { %2691 = vmatmul.mubr.msk.f32.gmra.mxu0 %vm63_vm0, %v3137_v34  ;;  %2854 = vmatmul.mubr.msk.f32.gmra.mxu1 %vm63_vm0, %v3170_v37  ;;  %v1230_v34 = vld [vmem:[%s5436_s2 + $0x3f0] sm:$0xff] }
  0xb3   :  { %796 = vmatprep.mubr.f32.mxu0 %v5439_v3  ;;  %2856 = vmatprep.mubr.msk.f32.mxu1 %vm63_vm0, %v3181_v38 }
  0xb4   :  { %1485 = vmatpush1.msra.mxu1 %v1251_v33  ;;  %1652 = vmatprep.subr.mxu0 %v1109_v50  ;;  %v1317_v33 = vld [vmem:[%s5436_s2 + $0x6a8] sm:$0xff]  ;;  %v1316_v50 = vld [vmem:[%s5436_s2 + $0x6a0] sm:$0xff] }
  0xb5   :  { %1486 = vmatprep.subr.mxu1 %v1231_v51  ;;  %1653 = vmatpush1.msra.mxu0 %v1108_v52 }
  0xb6   :  { %2692 = vmatmul.mubr.msk.f32.gmra.mxu0 %vm63_vm0, %v3148_v35  ;;  %2857 = vmatmul.mubr.msk.f32.gmra.mxu1 %vm63_vm0, %v3192_v39  ;;  %v1209_v35 = vld [vmem:[%s5436_s2 + $0x348] sm:$0xff] }
  0xb7   :  { %802 = vmatprep.mubr.f32.mxu0 %v5439_v3  ;;  %2859 = vmatprep.mubr.msk.f32.mxu1 %vm63_vm0, %v3203_v40 }
  0xb8   :  { %1487 = vmatpush1.msra.mxu1 %v1230_v34  ;;  %1684 = vmatprep.subr.mxu0 %v1445_v53  ;;  %v1295_v34 = vld [vmem:[%s5436_s2 + $0x5f8] sm:$0xff] }
  0xb9   :  { %1488 = vmatprep.subr.mxu1 %v1210_v54  ;;  %1685 = vmatpush2.msra.mxu0 %v1444_v55  ;;  %v1275_v55 = vld [vmem:[%s5436_s2 + $0x558] sm:$0xff] }
  0xba   :  { %2693 = vmatmul.mubr.msk.f32.gmra.mxu0 %vm63_vm0, %v3159_v36  ;;  %2860 = vmatmul.mubr.msk.f32.gmra.mxu1 %vm63_vm0, %v3214_v41  ;;  %v1168_v36 = vld [vmem:[%s5436_s2 + $0x200] sm:$0xff] }
  0xbb   :  { %808 = vmatprep.mubr.f32.mxu0 %v5439_v3  ;;  %2862 = vmatprep.mubr.msk.f32.mxu1 %vm63_vm0, %v3225_v42 }
  0xbc   :  { %1489 = vmatpush1.msra.mxu1 %v1209_v35  ;;  %1776 = vmatprep.subr.mxu0 %v1428_v56  ;;  %v1274_v35 = vld [vmem:[%s5436_s2 + $0x550] sm:$0xff] }
  0xbd   :  { %1490 = vmatprep.subr.mxu1 %v1189_v57 }
  0xbe   :  { %2694 = vmatmul.mubr.msk.f32.gmra.mxu0 %vm63_vm0, %v3170_v37  ;;  %2863 = vmatmul.mubr.msk.f32.gmra.mxu1 %vm63_vm0, %v3236_v43  ;;  %v1147_v37 = vld [vmem:[%s5436_s2 + $0x158] sm:$0xff] }
  0xbf   :  { %814 = vmatprep.mubr.f32.mxu0 %v5439_v3  ;;  %2865 = vmatprep.mubr.msk.f32.mxu1 %vm63_vm0, %v3247_v44 }
  0xc0   :  { %1491 = vmatpush1.msra.mxu1 %v1188_v58  ;;  %v1253_v58 = vld [vmem:[%s5436_s2 + $0x4a8] sm:$0xff] }
  0xc1   :  { %1492 = vmatprep.subr.mxu1 %v1168_v36 }
  0xc2   :  { %2695 = vmatmul.mubr.msk.f32.gmra.mxu0 %vm63_vm0, %v3181_v38  ;;  %2866 = vmatmul.mubr.msk.f32.gmra.mxu1 %vm63_vm0, %v3258_v45  ;;  %v1126_v38 = vld [vmem:[%s5436_s2 + $0xb0] sm:$0xff] }
  0xc3   :  { %820 = vmatprep.mubr.f32.mxu0 %v5439_v3  ;;  %2868 = vmatprep.mubr.msk.f32.mxu1 %vm63_vm0, %v3269_v46 }
  0xc4   :  { %1493 = vmatpush1.msra.mxu1 %v1167_v59 }
  0xc5   :  { %1494 = vmatprep.subr.mxu1 %v1147_v37  ;;  %v1233_v37 = vld [vmem:[%s5436_s2 + $0x408] sm:$0xff] }
  0xc6   :  { %v3613_v61 = vpop.f32.mrf.mxu0  ;;  %v390_v62 = vpop.f32.mrf.mxu1  ;;  %2696 = vmatmul.mubr.msk.f32.gmra.mxu0 %vm63_vm0, %v3192_v39  ;;  %2869 = vmatmul.mubr.msk.f32.gmra.mxu1 %vm63_vm0, %v3280_v47  ;;  %v1105_v39 = vld [vmem:[%s5436_s2 + $0x8] sm:$0xff] }
  0xc7   :  { %1495 = vmatpush1.msra.mxu1 %v1146_v60  ;;  %826 = vmatprep.mubr.f32.mxu0 %v5439_v3  ;;  %v1232_v60 = vld [vmem:[%s5436_s2 + $0x400] sm:$0xff] }
  0xc8   :  { %v3623_v0 = vpop.f32.mrf.mxu0  ;;  %v391_v1 = vpop.f32.mrf.mxu1  ;;  %2871 = vmatprep.mubr.msk.f32.mxu1 %vm63_vm0, %v3291_v48  ;;  %1496 = vmatprep.subr.mxu1 %v1126_v38 }
  0xc9   :  { %1497 = vmatpush1.msra.mxu1 %v1125_v63  ;;  %v1211_v63 = vld [vmem:[%s5436_s2 + $0x358] sm:$0xff] }
  0xca   :  { %v3630_v2 = vpop.f32.mrf.mxu0  ;;  %v394_v4 = vpop.f32.mrf.mxu1  ;;  %2697 = vmatmul.mubr.msk.f32.gmra.mxu0 %vm63_vm0, %v3203_v40  ;;  %2872 = vmatmul.mubr.msk.f32.gmra.mxu1 %vm63_vm0, %v2937_v6  ;;  %v1441_v40 = vld [vmem:[%s5436_s2 + $0xa88] sm:$0xff]  ;;  %v1440_v6 = vld [vmem:[%s5436_s2 + $0xa80] sm:$0xff] }
  0xcb   :  { %832 = vmatprep.mubr.f32.mxu0 %v5439_v3  ;;  %2874 = vmatprep.mubr.msk.f32.mxu1 %vm63_vm0, %v2961_v11  ;;  %v1191_v4 = vld [vmem:[%s5436_s2 + $0x2b8] sm:$0xff] }
  0xcc   :  { %v3642_v7 = vpop.f32.mrf.mxu0  ;;  %v395_v8 = vpop.f32.mrf.mxu1  ;;  %1498 = vmatprep.subr.mxu1 %v1105_v39 }
  0xcd   :  { %1499 = vmatpush1.msra.mxu1 %v1104_v5  ;;  %v1190_v5 = vld [vmem:[%s5436_s2 + $0x2b0] sm:$0xff] }
  0xce   :  { %v3655_v11 = vpop.f32.mrf.mxu0  ;;  %v398_v10 = vpop.f32.mrf.mxu1  ;;  %2698 = vmatmul.mubr.msk.f32.gmra.mxu0 %vm63_vm0, %v3214_v41  ;;  %2875 = vmatmul.mubr.msk.f32.gmra.mxu1 %vm63_vm0, %v2989_v17  ;;  %v1421_v17 = vld [vmem:[%s5436_s2 + $0x9e8] sm:$0xff] }
  0xcf   :  { %1530 = vmatprep.subr.mxu1 %v1441_v40  ;;  %838 = vmatprep.mubr.f32.mxu0 %v5439_v3  ;;  %v1401_v41 = vld [vmem:[%s5436_s2 + $0x948] sm:$0xff] }
  0xd0   :  { %v3670_v14 = vpop.f32.mrf.mxu0  ;;  %v399_v15 = vpop.f32.mrf.mxu1  ;;  %1531 = vmatpush2.msra.mxu1 %v1440_v6  ;;  %2741 = vmatprep.mubr.msk.f32.mxu1 %vm1461_vm1, %v3653_v9  ;;  %v1169_v6 = vld [vmem:[%s5436_s2 + $0x208] sm:$0xff] }
  0xd1   :  { %1545 = vmatprep.subr.mxu1 %v1422_v12  ;;  %v1149_v15 = vld [vmem:[%s5436_s2 + $0x168] sm:$0xff] }
  0xd2   :  { %v3685_v18 = vpop.f32.mrf.mxu0  ;;  %v3687_v19 = vpop.f32.mrf.mxu1  ;;  %2699 = vmatmul.mubr.msk.f32.gmra.mxu0 %vm63_vm0, %v3225_v42  ;;  %1533 = vmatmul.mubr.f32.vlgmr.msra.gmra.mxu1 %v3668_v13  ;;  %v3708_v42 = vld [vmem:[%s5437_s0 + $0x10] sm:$0xff] }
  0xd3   :  { %1546 = vmatpush1.msra.mxu1 %v1421_v17  ;;  %844 = vmatprep.mubr.f32.mxu0 %v5439_v3  ;;  %v1148_v17 = vld [vmem:[%s5436_s2 + $0x160] sm:$0xff] }
  0xd4   :  { %1547 = vmatprep.subr.mxu1 %v1401_v41  ;;  %v3699_v22 = vpop.f32.mrf.mxu0  ;;  %v3701_v23 = vpop.f32.mrf.mxu1  ;;  %2742 = vmatprep.mubr.msk.f32.mxu1 %vm1461_vm1, %v3683_v16 }
  0xd5   :  { %1548 = vmatpush1.msra.mxu1 %v1400_v20 }
  0xd6   :  { %1549 = vmatprep.subr.mxu1 %v1380_v21  ;;  %v3713_v25 = vpop.f32.mrf.mxu0  ;;  %v3715_v26 = vpop.f32.mrf.mxu1  ;;  %2700 = vmatmul.mubr.msk.f32.gmra.mxu0 %vm63_vm0, %v3236_v43  ;;  %v1338_v43 = vld [vmem:[%s5436_s2 + $0x750] sm:$0xff]  ;;  %v1127_v21 = vld [vmem:[%s5436_s2 + $0xb8] sm:$0xff] }
  0xd7   :  { %5447 = vst [vmem:[#allocation2_spill] sm:$0xff] %v3713_v25  ;;  %1539 = vmatmul.mubr.f32.gmra.mxu1 %v3708_v42  ;;  %850 = vmatprep.mubr.f32.mxu0 %v5439_v3 }
  0xd8   :  { %1550 = vmatpush1.msra.mxu1 %v1379_v24  ;;  %v3727_v29 = vpop.f32.mrf.mxu0  ;;  %v3729_v30 = vpop.f32.mrf.mxu1  ;;  %2743 = vmatprep.mubr.msk.f32.mxu1 %vm1461_vm1, %v3653_v9 }
  0xd9   :  { %5448 = vst [vmem:[#allocation3_spill] sm:$0xff] %v3727_v29  ;;  %1551 = vmatprep.subr.mxu1 %v1359_v27  ;;  %v1410_v29 = vld [vmem:[%s5436_s2 + $0x990] sm:$0xff] }
  0xda   :  { %1552 = vmatpush1.msra.mxu1 %v1358_v28  ;;  %v3739_v32 = vpop.f32.mrf.mxu0  ;;  %v3741_v49 = vpop.f32.mrf.mxu1  ;;  %2701 = vmatmul.mubr.msk.f32.gmra.mxu0 %vm63_vm0, %v3247_v44  ;;  %v1296_v44 = vld [vmem:[%s5436_s2 + $0x600] sm:$0xff]  ;;  %v2882_v28 = vld [vmem:[%s5435_s1 + $0xe8] sm:$0xff] }
  0xdb   :  { %5449 = vst [vmem:[#allocation4_spill] sm:$0xff] %v3739_v32  ;;  %1553 = vmatprep.subr.mxu1 %v1338_v43  ;;  %854 = vmatprep.mubr.f32.mxu0 %v5439_v3  ;;  %v1107_v43 = vld [vmem:[%s5436_s2 + $0x18] sm:$0xff]  ;;  %v1408_v32 = vld [vmem:[%s5436_s2 + $0x980] sm:$0xff] }
  0xdc   :  { %1554 = vmatpush1.msra.mxu1 %v1337_v31  ;;  %v3752_v51 = vpop.f32.mrf.mxu0  ;;  %v3754_v52 = vpop.f32.mrf.mxu1  ;;  %v1106_v31 = vld [vmem:[%s5436_s2 + $0x10] sm:$0xff] }
  0xdd   :  { %5450 = vst [vmem:[#allocation5_spill] sm:$0xff] %v3752_v51  ;;  %5451 = vst [vmem:[#allocation6_spill] sm:$0xff] %v3754_v52  ;;  %1555 = vmatprep.subr.mxu1 %v1317_v33 }
  0xde   :  { %1556 = vmatpush1.msra.mxu1 %v1316_v50  ;;  %v3762_v53 = vpop.f32.mrf.mxu0  ;;  %v3764_v54 = vpop.f32.mrf.mxu1  ;;  %2702 = vmatmul.mubr.msk.f32.gmra.mxu0 %vm63_vm0, %v3258_v45  ;;  %v1254_v45 = vld [vmem:[%s5436_s2 + $0x4b0] sm:$0xff] }
  0xdf   :  { %5452 = vst [vmem:[#allocation7_spill] sm:$0xff] %v3762_v53  ;;  %1557 = vmatprep.subr.mxu1 %v1296_v44  ;;  %858 = vmatprep.mubr.f32.mxu0 %v5439_v3  ;;  %v1443_v44 = vld [vmem:[%s5436_s2 + $0xa98] sm:$0xff] }
  0xe0   :  { %1558 = vmatpush1.msra.mxu1 %v1295_v34  ;;  %v3775_v56 = vpop.f32.mrf.mxu0  ;;  %v3777_v57 = vpop.f32.mrf.mxu1  ;;  %v1442_v34 = vld [vmem:[%s5436_s2 + $0xa90] sm:$0xff] }
  0xe1   :  { %5453 = vst [vmem:[#allocation8_spill] sm:$0xff] %v3775_v56  ;;  %5454 = vst [vmem:[#allocation9_spill] sm:$0xff] %v3777_v57  ;;  %1559 = vmatprep.subr.mxu1 %v1275_v55  ;;  %v1133_v56 = vld [vmem:[%s5436_s2 + $0xe8] sm:$0xff] }
  0xe2   :  { %1560 = vmatpush1.msra.mxu1 %v1274_v35  ;;  %v3785_v36 = vpop.f32.mrf.mxu0  ;;  %v3787_v59 = vpop.f32.mrf.mxu1  ;;  %2703 = vmatmul.mubr.msk.f32.gmra.mxu0 %vm63_vm0, %v3269_v46  ;;  %v1212_v46 = vld [vmem:[%s5436_s2 + $0x360] sm:$0xff] }
  0xe3   :  { %5455 = vst [vmem:[#allocation10_spill] sm:$0xff] %v3785_v36  ;;  %5456 = vst [vmem:[#allocation11_spill] sm:$0xff] %v3787_v59  ;;  %1561 = vmatprep.subr.mxu1 %v1254_v45  ;;  %862 = vmatprep.mubr.f32.mxu0 %v5439_v3  ;;  %v2883_v45 = vld [vmem:[%s5435_s1 + $0xf0] sm:$0xff]  ;;  %v1196_v36 = vld [vmem:[%s5436_s2 + $0x2e0] sm:$0xff] }
  0xe4   :  { %1562 = vmatpush1.msra.mxu1 %v1253_v58  ;;  %v3798_v38 = vpop.f32.mrf.mxu0  ;;  %v3800_v62 = vpop.f32.mrf.mxu1  ;;  %v1426_v58 = vld [vmem:[%s5436_s2 + $0xa10] sm:$0xff] }
  0xe5   :  { %5457 = vst [vmem:[#allocation12_spill] sm:$0xff] %v3798_v38  ;;  %5458 = vst [vmem:[#allocation13_spill] sm:$0xff] %v3800_v62  ;;  %1563 = vmatprep.subr.mxu1 %v1233_v37  ;;  %v1425_v37 = vld [vmem:[%s5436_s2 + $0xa08] sm:$0xff]  ;;  %v1322_v38 = vld [vmem:[%s5436_s2 + $0x6d0] sm:$0xff] }
  0xe6   :  { %1564 = vmatpush1.msra.mxu1 %v1232_v60  ;;  %v3808_v1 = vpop.f32.mrf.mxu0  ;;  %v3810_v39 = vpop.f32.mrf.mxu1  ;;  %2704 = vmatmul.mubr.msk.f32.gmra.mxu0 %vm63_vm0, %v3280_v47  ;;  %v1170_v47 = vld [vmem:[%s5436_s2 + $0x210] sm:$0xff]  ;;  %v1280_v62 = vld [vmem:[%s5436_s2 + $0x580] sm:$0xff] }
  0xe7   :  { %5459 = vst [vmem:[#allocation14_spill] sm:$0xff] %v3810_v39  ;;  %1565 = vmatprep.subr.mxu1 %v1212_v46  ;;  %866 = vmatprep.mubr.f32.mxu0 %v5439_v3  ;;  %v1343_v39 = vld [vmem:[%s5436_s2 + $0x778] sm:$0xff]  ;;  %v1238_v59 = vld [vmem:[%s5436_s2 + $0x430] sm:$0xff] }
  0xe8   :  { %1566 = vmatpush1.msra.mxu1 %v1211_v63  ;;  %v3821_v8 = vpop.f32.mrf.mxu0  ;;  %v3823_v40 = vpop.f32.mrf.mxu1  ;;  %v1405_v63 = vld [vmem:[%s5436_s2 + $0x968] sm:$0xff] }
  0xe9   :  { %5460 = vst [vmem:[#allocation15_spill] sm:$0xff] %v3823_v40  ;;  %1567 = vmatprep.subr.mxu1 %v1191_v4  ;;  %v1404_v4 = vld [vmem:[%s5436_s2 + $0x960] sm:$0xff] }
  0xea   :  { %1568 = vmatpush1.msra.mxu1 %v1190_v5  ;;  %v3831_v10 = vpop.f32.mrf.mxu0  ;;  %v3833_v12 = vpop.f32.mrf.mxu1  ;;  %2705 = vmatmul.mubr.msk.f32.gmra.mxu0 %vm63_vm0, %v3291_v48  ;;  %v1128_v48 = vld [vmem:[%s5436_s2 + $0xc0] sm:$0xff] }
  0xeb   :  { %5461 = vst [vmem:[#allocation16_spill] sm:$0xff] %v3833_v12  ;;  %1569 = vmatprep.subr.mxu1 %v1170_v47  ;;  %870 = vmatprep.mubr.f32.mxu0 %v5439_v3 }
  0xec   :  { %1570 = vmatpush1.msra.mxu1 %v1169_v6  ;;  %v3844_v41 = vpop.f32.mrf.mxu0  ;;  %v3846_v20 = vpop.f32.mrf.mxu1  ;;  %v2884_v6 = vld [vmem:[%s5435_s1 + $0xf8] sm:$0xff] }
  0xed   :  { %5462 = vst [vmem:[#allocation17_spill] sm:$0xff] %v3846_v20  ;;  %1571 = vmatprep.subr.mxu1 %v1149_v15  ;;  %v1384_v15 = vld [vmem:[%s5436_s2 + $0x8c0] sm:$0xff] }
  0xee   :  { %1572 = vmatpush1.msra.mxu1 %v1148_v17  ;;  %v3854_v24 = vpop.f32.mrf.mxu0  ;;  %v3856_v27 = vpop.f32.mrf.mxu1  ;;  %2706 = vmatmul.mubr.msk.f32.gmra.mxu0 %vm63_vm0, %v2882_v28  ;;  %v1383_v17 = vld [vmem:[%s5436_s2 + $0x8b8] sm:$0xff] }
  0xef   :  { %5463 = vst [vmem:[#allocation18_spill] sm:$0xff] %v3856_v27  ;;  %1573 = vmatprep.subr.mxu1 %v1128_v48  ;;  %874 = vmatprep.mubr.f32.mxu0 %v5439_v3  ;;  %v1363_v28 = vld [vmem:[%s5436_s2 + $0x818] sm:$0xff]  ;;  %v1344_v27 = vld [vmem:[%s5436_s2 + $0x780] sm:$0xff] }
  0xf0   :  { %1574 = vmatpush1.msra.mxu1 %v1127_v21  ;;  %v3869_v33 = vpop.f32.mrf.mxu0  ;;  %v3871_v50 = vpop.f32.mrf.mxu1 }
  0xf1   :  { %5464 = vst [vmem:[#allocation19_spill] sm:$0xff] %v3871_v50  ;;  %1575 = vmatprep.subr.mxu1 %v1107_v43  ;;  %v1427_v43 = vld [vmem:[%s5436_s2 + $0xa18] sm:$0xff] }
  0xf2   :  { %1576 = vmatpush1.msra.mxu1 %v1106_v31  ;;  %v3879_v55 = vpop.f32.mrf.mxu0  ;;  %v3881_v35 = vpop.f32.mrf.mxu1  ;;  %2707 = vmatmul.mubr.msk.f32.gmra.mxu0 %vm63_vm0, %v2883_v45  ;;  %v1362_v31 = vld [vmem:[%s5436_s2 + $0x810] sm:$0xff] }
  0xf3   :  { %1607 = vmatprep.subr.mxu1 %v1443_v44  ;;  %878 = vmatprep.mubr.f32.mxu0 %v5439_v3  ;;  %v1407_v44 = vld [vmem:[%s5436_s2 + $0x978] sm:$0xff] }
  0xf4   :  { %1608 = vmatpush2.msra.mxu1 %v1442_v34  ;;  %v3894_v60 = vpop.f32.mrf.mxu0  ;;  %v3896_v46 = vpop.f32.mrf.mxu1 }
  0xf5   :  { %1610 = vmatmul.mubr.f32.vlgmr.msra.gmra.mxu1 %v3668_v13  ;;  %1699 = vmatprep.subr.mxu1 %v1426_v58  ;;  %v1342_v58 = vld [vmem:[%s5436_s2 + $0x770] sm:$0xff] }
  0xf6   :  { %1700 = vmatpush1.msra.mxu1 %v1425_v37  ;;  %v3905_v5 = vpop.f32.mrf.mxu0  ;;  %v3907_v47 = vpop.f32.mrf.mxu1  ;;  %2708 = vmatmul.mubr.msk.f32.gmra.mxu0 %vm63_vm0, %v2884_v6  ;;  %v1406_v37 = vld [vmem:[%s5436_s2 + $0x970] sm:$0xff] }
  0xf7   :  { %5465 = vst [vmem:[#allocation20_spill] sm:$0xff] %v3905_v5  ;;  %1701 = vmatprep.subr.mxu1 %v1405_v63  ;;  %2744 = vmatprep.mubr.msk.f32.mxu1 %vm1461_vm1, %v3683_v16  ;;  %v1341_v63 = vld [vmem:[%s5436_s2 + $0x768] sm:$0xff] }
  0xf8   :  { %1702 = vmatpush1.msra.mxu1 %v1404_v4  ;;  %v3921_v48 = vpop.f32.mrf.mxu0  ;;  %v3923_v21 = vpop.f32.mrf.mxu1  ;;  %2745 = vmatprep.mubr.msk.f32.mxu0 %vm1461_vm1, %v3653_v9 }
  0xf9   :  { %5466 = vst [vmem:[#allocation21_spill] sm:$0xff] %v3921_v48  ;;  %1616 = vmatmul.mubr.f32.gmra.mxu1 %v3708_v42  ;;  %1703 = vmatprep.subr.mxu1 %v1384_v15  ;;  %v1321_v15 = vld [vmem:[%s5436_s2 + $0x6c8] sm:$0xff] }
  0xfa   :  { %1704 = vmatpush1.msra.mxu1 %v1383_v17  ;;  %v3940_v34 = vpop.f32.mrf.mxu0  ;;  %v3942_v45 = vpop.f32.mrf.mxu1  ;;  %1687 = vmatmul.mubr.f32.vlgmr.msra.gmra.mxu0 %v3668_v13  ;;  %v1386_v17 = vld [vmem:[%s5436_s2 + $0x8d0] sm:$0xff] }
  0xfb   :  { %5467 = vst [vmem:[#allocation22_spill] sm:$0xff] %v3940_v34  ;;  %1705 = vmatprep.subr.mxu1 %v1363_v28  ;;  %1777 = vmatpush1.msra.mxu0 %v1427_v43  ;;  %v1320_v28 = vld [vmem:[%s5436_s2 + $0x6c0] sm:$0xff] }
  0xfc   :  { %1706 = vmatpush1.msra.mxu1 %v1362_v31  ;;  %1778 = vmatprep.subr.mxu0 %v1407_v44  ;;  %v3954_v4 = vpop.f32.mrf.mxu0  ;;  %v3956_v6 = vpop.f32.mrf.mxu1  ;;  %v1385_v44 = vld [vmem:[%s5436_s2 + $0x8c8] sm:$0xff] }
  0xfd   :  { %5468 = vst [vmem:[#allocation23_spill] sm:$0xff] %v3954_v4  ;;  %5469 = vst [vmem:[#allocation24_spill] sm:$0xff] %v3956_v6  ;;  %1707 = vmatprep.subr.mxu1 %v1342_v58  ;;  %1779 = vmatpush1.msra.mxu0 %v1406_v37  ;;  %v1300_v58 = vld [vmem:[%s5436_s2 + $0x620] sm:$0xff]  ;;  %v1365_v37 = vld [vmem:[%s5436_s2 + $0x828] sm:$0xff] }
  0xfe   :  { %1708 = vmatpush1.msra.mxu1 %v1341_v63  ;;  %2746 = vmatprep.mubr.msk.f32.mxu0 %vm1461_vm1, %v3683_v16  ;;  %v3969_v43 = vpop.f32.mrf.mxu0  ;;  %v3971_v31 = vpop.f32.mrf.mxu1  ;;  %v1299_v63 = vld [vmem:[%s5436_s2 + $0x618] sm:$0xff] }
  0xff   :  { %5470 = vst [vmem:[#allocation25_spill] sm:$0xff] %v3969_v43  ;;  %1709 = vmatprep.subr.mxu1 %v1321_v15  ;;  %1780 = vmatprep.subr.mxu0 %v1386_v17  ;;  %v1364_v15 = vld [vmem:[%s5436_s2 + $0x820] sm:$0xff]  ;;  %v1279_v17 = vld [vmem:[%s5436_s2 + $0x578] sm:$0xff] }
 0x100   :  { %1693 = vmatmul.mubr.f32.gmra.mxu0 %v3708_v42  ;;  %1710 = vmatpush1.msra.mxu1 %v1320_v28  ;;  %v3986_v3 = vpop.f32.mrf.mxu0  ;;  %v3988_v50 = vpop.f32.mrf.mxu1  ;;  %v1278_v28 = vld [vmem:[%s5436_s2 + $0x570] sm:$0xff]  ;;  %v1175_v4 = vld [vmem:[%s5436_s2 + $0x238] sm:$0xff] }
 0x101   :  { %5471 = vst [vmem:[#allocation26_spill] sm:$0xff] %v3986_v3  ;;  %5472 = vst [vmem:[#allocation27_spill] sm:$0xff] %v3988_v50  ;;  %1781 = vmatpush1.msra.mxu0 %v1385_v44  ;;  %1711 = vmatprep.subr.mxu1 %v1300_v58  ;;  %v1258_v44 = vld [vmem:[%s5436_s2 + $0x4d0] sm:$0xff]  ;;  %v1323_v58 = vld [vmem:[%s5436_s2 + $0x6d8] sm:$0xff] }
 0x102   :  { %1782 = vmatprep.subr.mxu0 %v1365_v37  ;;  %1712 = vmatpush1.msra.mxu1 %v1299_v63  ;;  %v4002_v40 = vpop.f32.mrf.mxu0  ;;  %v4004_v20 = vpop.f32.mrf.mxu1  ;;  %v1257_v37 = vld [vmem:[%s5436_s2 + $0x4c8] sm:$0xff]  ;;  %v1154_v3 = vld [vmem:[%s5436_s2 + $0x190] sm:$0xff] }
 0x103   :  { %5473 = vst [vmem:[#allocation28_spill] sm:$0xff] %v4002_v40  ;;  %5474 = vst [vmem:[#allocation29_spill] sm:$0xff] %v4004_v20  ;;  %1783 = vmatpush1.msra.mxu0 %v1364_v15  ;;  %1713 = vmatprep.subr.mxu1 %v1279_v17  ;;  %v1237_v15 = vld [vmem:[%s5436_s2 + $0x428] sm:$0xff]  ;;  %v1302_v17 = vld [vmem:[%s5436_s2 + $0x630] sm:$0xff] }
 0x104   :  { %1784 = vmatprep.subr.mxu0 %v1344_v27  ;;  %1714 = vmatpush1.msra.mxu1 %v1278_v28  ;;  %v4018_v63 = vpop.f32.mrf.mxu0  ;;  %v4020_v12 = vpop.f32.mrf.mxu1  ;;  %v1236_v27 = vld [vmem:[%s5436_s2 + $0x420] sm:$0xff]  ;;  %v1259_v20 = vld [vmem:[%s5436_s2 + $0x4d8] sm:$0xff]  ;;  %v1217_v40 = vld [vmem:[%s5436_s2 + $0x388] sm:$0xff] }
 0x105   :  { %5475 = vst [vmem:[#allocation30_spill] sm:$0xff] %v4018_v63  ;;  %5476 = vst [vmem:[#allocation31_spill] sm:$0xff] %v4020_v12  ;;  %1785 = vmatpush1.msra.mxu0 %v1343_v39  ;;  %1715 = vmatprep.subr.mxu1 %v1258_v44  ;;  %v1301_v63 = vld [vmem:[%s5436_s2 + $0x628] sm:$0xff]  ;;  %v1216_v39 = vld [vmem:[%s5436_s2 + $0x380] sm:$0xff] }
 0x106   :  { %1786 = vmatprep.subr.mxu0 %v1323_v58  ;;  %1716 = vmatpush1.msra.mxu1 %v1257_v37  ;;  %v4034_v28 = vpop.f32.mrf.mxu0  ;;  %v4036_v12 = vpop.f32.mrf.mxu1  ;;  %v1281_v44 = vld [vmem:[%s5436_s2 + $0x588] sm:$0xff]  ;;  %v1215_v58 = vld [vmem:[%s5436_s2 + $0x378] sm:$0xff] }
 0x107   :  { %5477 = vst [vmem:[#allocation32_spill] sm:$0xff] %v4036_v12  ;;  %1787 = vmatpush1.msra.mxu0 %v1322_v38  ;;  %1717 = vmatprep.subr.mxu1 %v1237_v15  ;;  %v1195_v38 = vld [vmem:[%s5436_s2 + $0x2d8] sm:$0xff]  ;;  %v1260_v15 = vld [vmem:[%s5436_s2 + $0x4e0] sm:$0xff] }
 0x108   :  { %1788 = vmatprep.subr.mxu0 %v1302_v17  ;;  %1718 = vmatpush1.msra.mxu1 %v1236_v27  ;;  %v4050_v37 = vpop.f32.mrf.mxu0  ;;  %v4052_v12 = vpop.f32.mrf.mxu1  ;;  %v1194_v17 = vld [vmem:[%s5436_s2 + $0x2d0] sm:$0xff] }
 0x109   :  { %5478 = vst [vmem:[#allocation33_spill] sm:$0xff] %v4052_v12  ;;  %1789 = vmatpush1.msra.mxu0 %v1301_v63  ;;  %1719 = vmatprep.subr.mxu1 %v1216_v39  ;;  %v1174_v63 = vld [vmem:[%s5436_s2 + $0x230] sm:$0xff]  ;;  %v1239_v39 = vld [vmem:[%s5436_s2 + $0x438] sm:$0xff] }
 0x10a   :  { %1790 = vmatprep.subr.mxu0 %v1281_v44  ;;  %1720 = vmatpush1.msra.mxu1 %v1215_v58  ;;  %v4066_v27 = vpop.f32.mrf.mxu0  ;;  %v4068_v12 = vpop.f32.mrf.mxu1  ;;  %v1173_v44 = vld [vmem:[%s5436_s2 + $0x228] sm:$0xff] }
 0x10b   :  { %5479 = vst [vmem:[#allocation34_spill] sm:$0xff] %v4068_v12  ;;  %1791 = vmatpush1.msra.mxu0 %v1280_v62  ;;  %1721 = vmatprep.subr.mxu1 %v1195_v38  ;;  %v1153_v62 = vld [vmem:[%s5436_s2 + $0x188] sm:$0xff]  ;;  %v1218_v38 = vld [vmem:[%s5436_s2 + $0x390] sm:$0xff] }
 0x10c   :  { %1792 = vmatprep.subr.mxu0 %v1260_v15  ;;  %1722 = vmatpush1.msra.mxu1 %v1194_v17  ;;  %v4082_v58 = vpop.f32.mrf.mxu0  ;;  %v4084_v12 = vpop.f32.mrf.mxu1  ;;  %v1152_v15 = vld [vmem:[%s5436_s2 + $0x180] sm:$0xff] }
 0x10d   :  { %5480 = vst [vmem:[#allocation35_spill] sm:$0xff] %v4084_v12  ;;  %1793 = vmatpush1.msra.mxu0 %v1259_v20  ;;  %1723 = vmatprep.subr.mxu1 %v1174_v63  ;;  %v1132_v20 = vld [vmem:[%s5436_s2 + $0xe0] sm:$0xff]  ;;  %v1197_v63 = vld [vmem:[%s5436_s2 + $0x2e8] sm:$0xff] }
 0x10e   :  { %1794 = vmatprep.subr.mxu0 %v1239_v39  ;;  %1724 = vmatpush1.msra.mxu1 %v1173_v44  ;;  %v4098_v17 = vpop.f32.mrf.mxu0  ;;  %v4100_v12 = vpop.f32.mrf.mxu1  ;;  %v1131_v39 = vld [vmem:[%s5436_s2 + $0xd8] sm:$0xff] }
 0x10f   :  { %5481 = vst [vmem:[#allocation36_spill] sm:$0xff] %v4100_v12  ;;  %1795 = vmatpush1.msra.mxu0 %v1238_v59  ;;  %1725 = vmatprep.subr.mxu1 %v1153_v62  ;;  %v1111_v59 = vld [vmem:[%s5436_s2 + $0x38] sm:$0xff]  ;;  %v1176_v62 = vld [vmem:[%s5436_s2 + $0x240] sm:$0xff] }
 0x110   :  { %1796 = vmatprep.subr.mxu0 %v1218_v38  ;;  %1726 = vmatpush1.msra.mxu1 %v1152_v15  ;;  %v4114_v44 = vpop.f32.mrf.mxu0  ;;  %v4116_v12 = vpop.f32.mrf.mxu1  ;;  %v1110_v38 = vld [vmem:[%s5436_s2 + $0x30] sm:$0xff] }
 0x111   :  { %5482 = vst [vmem:[#allocation37_spill] sm:$0xff] %v4116_v12  ;;  %1797 = vmatpush1.msra.mxu0 %v1217_v40  ;;  %1727 = vmatprep.subr.mxu1 %v1132_v20  ;;  %v1447_v40 = vld [vmem:[%s5436_s2 + $0xab8] sm:$0xff] }
 0x112   :  { %1798 = vmatprep.subr.mxu0 %v1197_v63  ;;  %1728 = vmatpush1.msra.mxu1 %v1131_v39  ;;  %v4130_v15 = vpop.f32.mrf.mxu0  ;;  %v4132_v12 = vpop.f32.mrf.mxu1  ;;  %v1155_v20 = vld [vmem:[%s5436_s2 + $0x198] sm:$0xff]  ;;  %v1446_v63 = vld [vmem:[%s5436_s2 + $0xab0] sm:$0xff] }
 0x113   :  { %1799 = vmatpush1.msra.mxu0 %v1196_v36  ;;  %1729 = vmatprep.subr.mxu1 %v1111_v59  ;;  %v1134_v36 = vld [vmem:[%s5436_s2 + $0xf0] sm:$0xff] }
 0x114   :  { %1800 = vmatprep.subr.mxu0 %v1176_v62  ;;  %1730 = vmatpush1.msra.mxu1 %v1110_v38  ;;  %v4146_v39 = vpop.f32.mrf.mxu0  ;;  %v4148_v51 = vpop.f32.mrf.mxu1  ;;  %v1430_v59 = vld [vmem:[%s5436_s2 + $0xa30] sm:$0xff] }
 0x115   :  { %1801 = vmatpush1.msra.mxu0 %v1175_v4  ;;  %1761 = vmatprep.subr.mxu1 %v1447_v40  ;;  %v1429_v4 = vld [vmem:[%s5436_s2 + $0xa28] sm:$0xff] }
 0x116   :  { %1802 = vmatprep.subr.mxu0 %v1155_v20  ;;  %1762 = vmatpush2.msra.mxu1 %v1446_v63  ;;  %v4159_v62 = vpop.f32.mrf.mxu0  ;;  %v4161_v38 = vpop.f32.mrf.mxu1  ;;  %v1113_v40 = vld [vmem:[%s5436_s2 + $0x48] sm:$0xff] }
 0x117   :  { %5483 = vst [vmem:[#allocation38_spill] sm:$0xff] %v4159_v62  ;;  %2747 = vmatprep.mubr.msk.f32.mxu1 %vm1461_vm1, %v3653_v9  ;;  %1803 = vmatpush1.msra.mxu0 %v1154_v3  ;;  %v1409_v20 = vld [vmem:[%s5436_s2 + $0x988] sm:$0xff]  ;;  %v1112_v3 = vld [vmem:[%s5436_s2 + $0x40] sm:$0xff] }
 0x118   :  { %1764 = vmatmul.mubr.f32.vlgmr.msra.gmra.mxu1 %v3668_v13  ;;  %1804 = vmatprep.subr.mxu0 %v1134_v36  ;;  %v4178_v63 = vpop.f32.mrf.mxu0  ;;  %v4180_v34 = vpop.f32.mrf.mxu1  ;;  %v1449_v36 = vld [vmem:[%s5436_s2 + $0xac8] sm:$0xff] }
 0x119   :  { %5484 = vst [vmem:[#allocation39_spill] sm:$0xff] %v4178_v63  ;;  %1853 = vmatprep.subr.mxu1 %v1430_v59  ;;  %1805 = vmatpush1.msra.mxu0 %v1133_v56  ;;  %v1388_v56 = vld [vmem:[%s5436_s2 + $0x8e0] sm:$0xff] }
 0x11a   :  { %1854 = vmatpush1.msra.mxu1 %v1429_v4  ;;  %1806 = vmatprep.subr.mxu0 %v1113_v40  ;;  %v4191_v43 = vpop.f32.mrf.mxu0  ;;  %v4193_v53 = vpop.f32.mrf.mxu1  ;;  %v1448_v59 = vld [vmem:[%s5436_s2 + $0xac0] sm:$0xff]  ;;  %v1387_v4 = vld [vmem:[%s5436_s2 + $0x8d8] sm:$0xff] }
 0x11b   :  { %5485 = vst [vmem:[#allocation40_spill] sm:$0xff] %v4191_v43  ;;  %1855 = vmatprep.subr.mxu1 %v1409_v20  ;;  %2748 = vmatprep.mubr.msk.f32.mxu1 %vm1461_vm1, %v3683_v16  ;;  %v1367_v43 = vld [vmem:[%s5436_s2 + $0x838] sm:$0xff] }
 0x11c   :  { %1807 = vmatpush1.msra.mxu0 %v1112_v3  ;;  %1856 = vmatpush1.msra.mxu1 %v1408_v32  ;;  %v4206_v40 = vpop.f32.mrf.mxu0  ;;  %v4208_v20 = vpop.f32.mrf.mxu1  ;;  %v1432_v32 = vld [vmem:[%s5436_s2 + $0xa40] sm:$0xff]  ;;  %v1366_v3 = vld [vmem:[%s5436_s2 + $0x830] sm:$0xff] }
 0x11d   :  { %5486 = vst [vmem:[#allocation41_spill] sm:$0xff] %v4206_v40  ;;  %5487 = vst [vmem:[#allocation42_spill] sm:$0xff] %v4208_v20  ;;  %1770 = vmatmul.mubr.f32.gmra.mxu1 %v3708_v42  ;;  %1838 = vmatprep.subr.mxu0 %v1449_v36  ;;  %v1431_v36 = vld [vmem:[%s5436_s2 + $0xa38] sm:$0xff] }
 0x11e   :  { %1857 = vmatprep.subr.mxu1 %v1388_v56  ;;  %1839 = vmatpush2.msra.mxu0 %v1448_v59  ;;  %v4220_v40 = vpop.f32.mrf.mxu0  ;;  %v4222_v63 = vpop.f32.mrf.mxu1  ;;  %v1346_v56 = vld [vmem:[%s5436_s2 + $0x790] sm:$0xff]  ;;  %v1411_v59 = vld [vmem:[%s5436_s2 + $0x998] sm:$0xff] }
 0x11f   :  { %5488 = vst [vmem:[#allocation43_spill] sm:$0xff] %v4220_v40  ;;  %5489 = vst [vmem:[#allocation44_spill] sm:$0xff] %v4222_v63  ;;  %2749 = vmatprep.mubr.msk.f32.mxu0 %vm1461_vm1, %v3653_v9  ;;  %1858 = vmatpush1.msra.mxu1 %v1387_v4  ;;  %v1345_v4 = vld [vmem:[%s5436_s2 + $0x788] sm:$0xff] }
 0x120   :  { %1841 = vmatmul.mubr.f32.vlgmr.msra.gmra.mxu0 %v3668_v13  ;;  %1859 = vmatprep.subr.mxu1 %v1367_v43  ;;  %v4236_v40 = vpop.f32.mrf.mxu0  ;;  %v4238_v48 = vpop.f32.mrf.mxu1  ;;  %v1325_v43 = vld [vmem:[%s5436_s2 + $0x6e8] sm:$0xff] }
 0x121   :  { %5490 = vst [vmem:[#allocation45_spill] sm:$0xff] %v4236_v40  ;;  %5491 = vst [vmem:[#allocation46_spill] sm:$0xff] %v4238_v48  ;;  %1930 = vmatprep.subr.mxu0 %v1432_v32  ;;  %1860 = vmatpush1.msra.mxu1 %v1366_v3  ;;  %v1390_v32 = vld [vmem:[%s5436_s2 + $0x8f0] sm:$0xff]  ;;  %v1324_v3 = vld [vmem:[%s5436_s2 + $0x6e0] sm:$0xff] }
 0x122   :  { %1931 = vmatpush1.msra.mxu0 %v1431_v36  ;;  %1861 = vmatprep.subr.mxu1 %v1346_v56  ;;  %v4249_v50 = vpop.f32.mrf.mxu0  ;;  %v4251_v40 = vpop.f32.mrf.mxu1  ;;  %v1389_v36 = vld [vmem:[%s5436_s2 + $0x8e8] sm:$0xff]  ;;  %v1304_v56 = vld [vmem:[%s5436_s2 + $0x640] sm:$0xff] }
 0x123   :  { %5492 = vst [vmem:[#allocation47_spill] sm:$0xff] %v4249_v50  ;;  %5493 = vst [vmem:[#allocation48_spill] sm:$0xff] %v4251_v40  ;;  %1932 = vmatprep.subr.mxu0 %v1411_v59  ;;  %2750 = vmatprep.mubr.msk.f32.mxu0 %vm1461_vm1, %v3683_v16  ;;  %v1368_v50 = vld [vmem:[%s5436_s2 + $0x840] sm:$0xff] }
 0x124   :  { %1862 = vmatpush1.msra.mxu1 %v1345_v4  ;;  %1933 = vmatpush1.msra.mxu0 %v1410_v29  ;;  %v4267_v59 = vpop.f32.mrf.mxu0  ;;  %v4269_v40 = vpop.f32.mrf.mxu1  ;;  %v1369_v4 = vld [vmem:[%s5436_s2 + $0x848] sm:$0xff]  ;;  %v1303_v29 = vld [vmem:[%s5436_s2 + $0x638] sm:$0xff]  ;;  %v1348_v48 = vld [vmem:[%s5436_s2 + $0x7a0] sm:$0xff] }
 0x125   :  { %5494 = vst [vmem:[#allocation49_spill] sm:$0xff] %v4267_v59  ;;  %5495 = vst [vmem:[#allocation50_spill] sm:$0xff] %v4269_v40  ;;  %1847 = vmatmul.mubr.f32.gmra.mxu0 %v3708_v42  ;;  %1863 = vmatprep.subr.mxu1 %v1325_v43  ;;  %v1283_v40 = vld [vmem:[%s5436_s2 + $0x598] sm:$0xff] }
 0x126   :  { %1934 = vmatprep.subr.mxu0 %v1390_v32  ;;  %1864 = vmatpush1.msra.mxu1 %v1324_v3  ;;  %v370_v59 = vpop.f32.mrf.mxu0  ;;  %v4284_v43 = vpop.f32.mrf.mxu1  ;;  %v1282_v32 = vld [vmem:[%s5436_s2 + $0x590] sm:$0xff]  ;;  %v1347_v3 = vld [vmem:[%s5436_s2 + $0x798] sm:$0xff] }
 0x127   :  { %5496 = vst [vmem:[#allocation51_spill] sm:$0xff] %v4284_v43  ;;  %1935 = vmatpush1.msra.mxu0 %v1389_v36  ;;  %1865 = vmatprep.subr.mxu1 %v1304_v56  ;;  %v1262_v59 = vld [vmem:[%s5436_s2 + $0x4f0] sm:$0xff]  ;;  %v1327_v43 = vld [vmem:[%s5436_s2 + $0x6f8] sm:$0xff] }
 0x128   :  { %1936 = vmatprep.subr.mxu0 %v1369_v4  ;;  %1866 = vmatpush1.msra.mxu1 %v1303_v29  ;;  %v371_v36 = vpop.f32.mrf.mxu0  ;;  %v4298_v56 = vpop.f32.mrf.mxu1  ;;  %v1261_v4 = vld [vmem:[%s5436_s2 + $0x4e8] sm:$0xff]  ;;  %v1326_v29 = vld [vmem:[%s5436_s2 + $0x6f0] sm:$0xff] }
 0x129   :  { %5497 = vst [vmem:[#allocation52_spill] sm:$0xff] %v4298_v56  ;;  %1937 = vmatpush1.msra.mxu0 %v1368_v50  ;;  %1867 = vmatprep.subr.mxu1 %v1283_v40  ;;  %v1241_v36 = vld [vmem:[%s5436_s2 + $0x448] sm:$0xff]  ;;  %v1306_v56 = vld [vmem:[%s5436_s2 + $0x650] sm:$0xff] }
 0x12a   :  { %1938 = vmatprep.subr.mxu0 %v1348_v48  ;;  %1868 = vmatpush1.msra.mxu1 %v1282_v32  ;;  %v374_v50 = vpop.f32.mrf.mxu0  ;;  %v4312_v40 = vpop.f32.mrf.mxu1  ;;  %v1240_v48 = vld [vmem:[%s5436_s2 + $0x440] sm:$0xff]  ;;  %v1305_v32 = vld [vmem:[%s5436_s2 + $0x648] sm:$0xff] }
 0x12b   :  { %5498 = vst [vmem:[#allocation53_spill] sm:$0xff] %v4312_v40  ;;  %1939 = vmatpush1.msra.mxu0 %v1347_v3  ;;  %1869 = vmatprep.subr.mxu1 %v1262_v59  ;;  %v1220_v50 = vld [vmem:[%s5436_s2 + $0x3a0] sm:$0xff]  ;;  %v1285_v40 = vld [vmem:[%s5436_s2 + $0x5a8] sm:$0xff] }
 0x12c   :  { %1940 = vmatprep.subr.mxu0 %v1327_v43  ;;  %1870 = vmatpush1.msra.mxu1 %v1261_v4  ;;  %v375_v3 = vpop.f32.mrf.mxu0  ;;  %v4326_v59 = vpop.f32.mrf.mxu1  ;;  %v1219_v43 = vld [vmem:[%s5436_s2 + $0x398] sm:$0xff]  ;;  %v1284_v4 = vld [vmem:[%s5436_s2 + $0x5a0] sm:$0xff] }
 0x12d   :  { %5499 = vst [vmem:[#allocation54_spill] sm:$0xff] %v4326_v59  ;;  %1941 = vmatpush1.msra.mxu0 %v1326_v29  ;;  %1871 = vmatprep.subr.mxu1 %v1241_v36  ;;  %v1199_v3 = vld [vmem:[%s5436_s2 + $0x2f8] sm:$0xff]  ;;  %v1264_v59 = vld [vmem:[%s5436_s2 + $0x500] sm:$0xff] }
 0x12e   :  { %1942 = vmatprep.subr.mxu0 %v1306_v56  ;;  %1872 = vmatpush1.msra.mxu1 %v1240_v48  ;;  %v378_v29 = vpop.f32.mrf.mxu0  ;;  %v4340_v36 = vpop.f32.mrf.mxu1  ;;  %v1198_v56 = vld [vmem:[%s5436_s2 + $0x2f0] sm:$0xff]  ;;  %v1263_v48 = vld [vmem:[%s5436_s2 + $0x4f8] sm:$0xff] }
 0x12f   :  { %5500 = vst [vmem:[#allocation55_spill] sm:$0xff] %v4340_v36  ;;  %1943 = vmatpush1.msra.mxu0 %v1305_v32  ;;  %1873 = vmatprep.subr.mxu1 %v1220_v50  ;;  %v1178_v29 = vld [vmem:[%s5436_s2 + $0x250] sm:$0xff]  ;;  %v1243_v36 = vld [vmem:[%s5436_s2 + $0x458] sm:$0xff] }
 0x130   :  { %1944 = vmatprep.subr.mxu0 %v1285_v40  ;;  %1874 = vmatpush1.msra.mxu1 %v1219_v43  ;;  %v379_v32 = vpop.f32.mrf.mxu0  ;;  %v4354_v50 = vpop.f32.mrf.mxu1  ;;  %v1177_v40 = vld [vmem:[%s5436_s2 + $0x248] sm:$0xff]  ;;  %v1242_v43 = vld [vmem:[%s5436_s2 + $0x450] sm:$0xff] }
 0x131   :  { %5501 = vst [vmem:[#allocation56_spill] sm:$0xff] %v4354_v50  ;;  %1945 = vmatpush1.msra.mxu0 %v1284_v4  ;;  %1875 = vmatprep.subr.mxu1 %v1199_v3  ;;  %v1157_v32 = vld [vmem:[%s5436_s2 + $0x1a8] sm:$0xff]  ;;  %v1222_v50 = vld [vmem:[%s5436_s2 + $0x3b0] sm:$0xff] }
 0x132   :  { %1946 = vmatprep.subr.mxu0 %v1264_v59  ;;  %1876 = vmatpush1.msra.mxu1 %v1198_v56  ;;  %v382_v4 = vpop.f32.mrf.mxu0  ;;  %v611_v3 = vpop.f32.mrf.mxu1  ;;  %v1156_v59 = vld [vmem:[%s5436_s2 + $0x1a0] sm:$0xff]  ;;  %v1221_v56 = vld [vmem:[%s5436_s2 + $0x3a8] sm:$0xff] }
 0x133   :  { %1947 = vmatpush1.msra.mxu0 %v1263_v48  ;;  %1877 = vmatprep.subr.mxu1 %v1178_v29  ;;  %v1136_v4 = vld [vmem:[%s5436_s2 + $0x100] sm:$0xff]  ;;  %v1201_v3 = vld [vmem:[%s5436_s2 + $0x308] sm:$0xff] }
 0x134   :  { %1948 = vmatprep.subr.mxu0 %v1243_v36  ;;  %1878 = vmatpush1.msra.mxu1 %v1177_v40  ;;  %v383_v48 = vpop.f32.mrf.mxu0  ;;  %v612_v29 = vpop.f32.mrf.mxu1  ;;  %v1135_v36 = vld [vmem:[%s5436_s2 + $0xf8] sm:$0xff]  ;;  %v1200_v40 = vld [vmem:[%s5436_s2 + $0x300] sm:$0xff] }
 0x135   :  { %1949 = vmatpush1.msra.mxu0 %v1242_v43  ;;  %1879 = vmatprep.subr.mxu1 %v1157_v32  ;;  %v1115_v48 = vld [vmem:[%s5436_s2 + $0x58] sm:$0xff]  ;;  %v1180_v29 = vld [vmem:[%s5436_s2 + $0x260] sm:$0xff] }
 0x136   :  { %1950 = vmatprep.subr.mxu0 %v1222_v50  ;;  %1880 = vmatpush1.msra.mxu1 %v1156_v59  ;;  %v386_v43 = vpop.f32.mrf.mxu0  ;;  %v615_v32 = vpop.f32.mrf.mxu1  ;;  %v1114_v50 = vld [vmem:[%s5436_s2 + $0x50] sm:$0xff]  ;;  %v1179_v59 = vld [vmem:[%s5436_s2 + $0x258] sm:$0xff] }
 0x137   :  { %1951 = vmatpush1.msra.mxu0 %v1221_v56  ;;  %1881 = vmatprep.subr.mxu1 %v1136_v4  ;;  %v1451_v43 = vld [vmem:[%s5436_s2 + $0xad8] sm:$0xff] }
 0x138   :  { %1952 = vmatprep.subr.mxu0 %v1201_v3  ;;  %1882 = vmatpush1.msra.mxu1 %v1135_v36  ;;  %v387_v56 = vpop.f32.mrf.mxu0  ;;  %v616_v4 = vpop.f32.mrf.mxu1  ;;  %v1159_v32 = vld [vmem:[%s5436_s2 + $0x1b8] sm:$0xff]  ;;  %v1450_v3 = vld [vmem:[%s5436_s2 + $0xad0] sm:$0xff] }
 0x139   :  { %1953 = vmatpush1.msra.mxu0 %v1200_v40  ;;  %1883 = vmatprep.subr.mxu1 %v1115_v48  ;;  %v1158_v36 = vld [vmem:[%s5436_s2 + $0x1b0] sm:$0xff]  ;;  %v1413_v56 = vld [vmem:[%s5436_s2 + $0x9a8] sm:$0xff] }
 0x13a   :  { %1954 = vmatprep.subr.mxu0 %v1180_v29  ;;  %1884 = vmatpush1.msra.mxu1 %v1114_v50  ;;  %v619_v62 = vpop.f32.mrf.mxu1  ;;  %v4413_v5 = vpop.f32.mrf.mxu0  ;;  %v1138_v40 = vld [vmem:[%s5436_s2 + $0x110] sm:$0xff]  ;;  %v1137_v29 = vld [vmem:[%s5436_s2 + $0x108] sm:$0xff] }
 0x13b   :  { %5502 = vst [vmem:[#allocation57_spill] sm:$0xff] %v4413_v5  ;;  %1955 = vmatpush1.msra.mxu0 %v1179_v59  ;;  %1915 = vmatprep.subr.mxu1 %v1451_v43  ;;  %v1434_v48 = vld [vmem:[%s5436_s2 + $0xa50] sm:$0xff]  ;;  %v1433_v59 = vld [vmem:[%s5436_s2 + $0xa48] sm:$0xff] }
 0x13c   :  { %1956 = vmatprep.subr.mxu0 %v1159_v32  ;;  %1916 = vmatpush2.msra.mxu1 %v1450_v3  ;;  %v620_v50 = vpop.f32.mrf.mxu1  ;;  %v4424_v62 = vpop.f32.mrf.mxu0  ;;  %v1117_v43 = vld [vmem:[%s5436_s2 + $0x68] sm:$0xff]  ;;  %v1412_v3 = vld [vmem:[%s5436_s2 + $0x9a0] sm:$0xff] }
 0x13d   :  { %5503 = vst [vmem:[#allocation58_spill] sm:$0xff] %v4424_v62  ;;  %2751 = vmatprep.mubr.msk.f32.mxu1 %vm1461_vm1, %v3653_v9  ;;  %1957 = vmatpush1.msra.mxu0 %v1158_v36  ;;  %v1116_v9 = vld [vmem:[%s5436_s2 + $0x60] sm:$0xff]  ;;  %v1391_v50 = vld [vmem:[%s5436_s2 + $0x8f8] sm:$0xff] }
 0x13e   :  { %1918 = vmatmul.mubr.f32.vlgmr.msra.gmra.mxu1 %v3668_v13  ;;  %1958 = vmatprep.subr.mxu0 %v1138_v40  ;;  %v623_v4 = vpop.f32.mrf.mxu1  ;;  %v4438_v32 = vpop.f32.mrf.mxu0  ;;  %v1453_v13 = vld [vmem:[%s5436_s2 + $0xae8] sm:$0xff]  ;;  %v1184_v62 = vld [vmem:[%s5436_s2 + $0x280] sm:$0xff] }
 0x13f   :  { %5504 = vst [vmem:[#allocation59_spill] sm:$0xff] %v4438_v32  ;;  %2007 = vmatprep.subr.mxu1 %v1434_v48  ;;  %1959 = vmatpush1.msra.mxu0 %v1137_v29  ;;  %v1392_v48 = vld [vmem:[%s5436_s2 + $0x900] sm:$0xff]  ;;  %v1370_v4 = vld [vmem:[%s5436_s2 + $0x850] sm:$0xff] }
 0x140   :  { %2008 = vmatpush1.msra.mxu1 %v1433_v59  ;;  %1960 = vmatprep.subr.mxu0 %v1117_v43  ;;  %v624_v36 = vpop.f32.mrf.mxu1  ;;  %v4449_v40 = vpop.f32.mrf.mxu0  ;;  %v1452_v29 = vld [vmem:[%s5436_s2 + $0xae0] sm:$0xff] }
 0x141   :  { %5505 = vst [vmem:[#allocation60_spill] sm:$0xff] %v4449_v40  ;;  %2009 = vmatprep.subr.mxu1 %v1413_v56  ;;  %2752 = vmatprep.mubr.msk.f32.mxu1 %vm1461_vm1, %v3683_v16  ;;  %v1371_v16 = vld [vmem:[%s5436_s2 + $0x858] sm:$0xff]  ;;  %v1436_v56 = vld [vmem:[%s5436_s2 + $0xa60] sm:$0xff]  ;;  %v1350_v36 = vld [vmem:[%s5436_s2 + $0x7b0] sm:$0xff] }
 0x142   :  { %1961 = vmatpush1.msra.mxu0 %v1116_v9  ;;  %2010 = vmatpush1.msra.mxu1 %v1412_v3  ;;  %v627_v59 = vpop.f32.mrf.mxu1  ;;  %v4462_v43 = vpop.f32.mrf.mxu0  ;;  %v1352_v32 = vld [vmem:[%s5436_s2 + $0x7c0] sm:$0xff] }
 0x143   :  { %5506 = vst [vmem:[#allocation61_spill] sm:$0xff] %v4462_v43  ;;  %1924 = vmatmul.mubr.f32.gmra.mxu1 %v3708_v42  ;;  %1992 = vmatprep.subr.mxu0 %v1453_v13  ;;  %v4479_v42 = vld [vmem:[%s5437_s0 + $0x8] sm:$0xff]  ;;  %v1435_v13 = vld [vmem:[%s5436_s2 + $0xa58] sm:$0xff] }
 0x144   :  { %2011 = vmatprep.subr.mxu1 %v1392_v48  ;;  %1993 = vmatpush2.msra.mxu0 %v1452_v29  ;;  %v628_v9 = vpop.f32.mrf.mxu1  ;;  %v4474_v3 = vpop.f32.mrf.mxu0  ;;  %v4492_v48 = vld [vmem:[%s5437_s0] sm:$0xff]  ;;  %v1415_v29 = vld [vmem:[%s5436_s2 + $0x9b8] sm:$0xff] }
 0x145   :  { %5507 = vst [vmem:[#allocation62_spill] sm:$0xff] %v4474_v3  ;;  %2753 = vmatprep.mubr.msk.f32.mxu0 %vm1461_vm1, %v4479_v42  ;;  %2012 = vmatpush1.msra.mxu1 %v1391_v50  ;;  %v1349_v9 = vld [vmem:[%s5436_s2 + $0x7a8] sm:$0xff]  ;;  %v1414_v3 = vld [vmem:[%s5436_s2 + $0x9b0] sm:$0xff] }
 0x146   :  { %1995 = vmatmul.mubr.f32.vlgmr.msra.gmra.mxu0 %v4492_v48  ;;  %2013 = vmatprep.subr.mxu1 %v1371_v16  ;;  %v631_v50 = vpop.f32.mrf.mxu1  ;;  %v4498_v59 = vpop.f32.mrf.mxu0  ;;  %v1329_v16 = vld [vmem:[%s5436_s2 + $0x708] sm:$0xff] }
 0x147   :  { %5508 = vst [vmem:[#allocation63_spill] sm:$0xff] %v4498_v59  ;;  %2084 = vmatprep.subr.mxu0 %v1436_v56  ;;  %2014 = vmatpush1.msra.mxu1 %v1370_v4  ;;  %v4514_v56 = vld [vmem:[%s5437_s0 + $0x18] sm:$0xff]  ;;  %v1394_v4 = vld [vmem:[%s5436_s2 + $0x910] sm:$0xff] }
 0x148   :  { %2085 = vmatpush1.msra.mxu0 %v1435_v13  ;;  %2015 = vmatprep.subr.mxu1 %v1350_v36  ;;  %v632_v43 = vpop.f32.mrf.mxu1  ;;  %v4509_v50 = vpop.f32.mrf.mxu0  ;;  %v1328_v13 = vld [vmem:[%s5436_s2 + $0x700] sm:$0xff]  ;;  %v4535_v59 = vld [vmem:[%s5437_s0 + $0x10] sm:$0xff] }
 0x149   :  { %5509 = vst [vmem:[#allocation64_spill] sm:$0xff] %v4509_v50  ;;  %2086 = vmatprep.subr.mxu0 %v1415_v29  ;;  %2754 = vmatprep.mubr.msk.f32.mxu0 %vm1461_vm1, %v4514_v56  ;;  %v1393_v43 = vld [vmem:[%s5436_s2 + $0x908] sm:$0xff]  ;;  %v1308_v36 = vld [vmem:[%s5436_s2 + $0x660] sm:$0xff] }
 0x14a   :  { %2016 = vmatpush1.msra.mxu1 %v1349_v9  ;;  %2087 = vmatpush1.msra.mxu0 %v1414_v3  ;;  %v635_v29 = vpop.f32.mrf.mxu1  ;;  %v4530_v50 = vpop.f32.mrf.mxu0  ;;  %v1373_v3 = vld [vmem:[%s5436_s2 + $0x868] sm:$0xff]  ;;  %v1307_v9 = vld [vmem:[%s5436_s2 + $0x658] sm:$0xff] }
 0x14b   :  { %5510 = vst [vmem:[#allocation65_spill] sm:$0xff] %v4530_v50  ;;  %2001 = vmatmul.mubr.f32.gmra.mxu0 %v4535_v59  ;;  %2017 = vmatprep.subr.mxu1 %v1329_v16  ;;  %v1372_v29 = vld [vmem:[%s5436_s2 + $0x860] sm:$0xff]  ;;  %v1287_v50 = vld [vmem:[%s5436_s2 + $0x5b8] sm:$0xff] }
 0x14c   :  { %2088 = vmatprep.subr.mxu0 %v1394_v4  ;;  %2018 = vmatpush1.msra.mxu1 %v1328_v13  ;;  %v636_v40 = vpop.f32.mrf.mxu1  ;;  %v4550_v16 = vpop.f32.mrf.mxu0  ;;  %v1286_v4 = vld [vmem:[%s5436_s2 + $0x5b0] sm:$0xff]  ;;  %v1351_v13 = vld [vmem:[%s5436_s2 + $0x7b8] sm:$0xff] }
 0x14d   :  { %5511 = vst [vmem:[#allocation66_spill] sm:$0xff] %v4550_v16  ;;  %2089 = vmatpush1.msra.mxu0 %v1393_v43  ;;  %2019 = vmatprep.subr.mxu1 %v1308_v36  ;;  %v1266_v40 = vld [vmem:[%s5436_s2 + $0x510] sm:$0xff]  ;;  %v1331_v16 = vld [vmem:[%s5436_s2 + $0x718] sm:$0xff] }
 0x14e   :  { %2090 = vmatprep.subr.mxu0 %v1373_v3  ;;  %2020 = vmatpush1.msra.mxu1 %v1307_v9  ;;  %v639_v43 = vpop.f32.mrf.mxu1  ;;  %v4564_v36 = vpop.f32.mrf.mxu0  ;;  %v1265_v3 = vld [vmem:[%s5436_s2 + $0x508] sm:$0xff]  ;;  %v1330_v9 = vld [vmem:[%s5436_s2 + $0x710] sm:$0xff] }
 0x14f   :  { %5512 = vst [vmem:[#allocation67_spill] sm:$0xff] %v4564_v36  ;;  %2091 = vmatpush1.msra.mxu0 %v1372_v29  ;;  %2021 = vmatprep.subr.mxu1 %v1287_v50  ;;  %v1245_v43 = vld [vmem:[%s5436_s2 + $0x468] sm:$0xff]  ;;  %v1310_v36 = vld [vmem:[%s5436_s2 + $0x670] sm:$0xff] }
 0x150   :  { %2092 = vmatprep.subr.mxu0 %v1352_v32  ;;  %2022 = vmatpush1.msra.mxu1 %v1286_v4  ;;  %v640_v29 = vpop.f32.mrf.mxu1  ;;  %v4578_v50 = vpop.f32.mrf.mxu0  ;;  %v1244_v32 = vld [vmem:[%s5436_s2 + $0x460] sm:$0xff]  ;;  %v1309_v4 = vld [vmem:[%s5436_s2 + $0x668] sm:$0xff] }
 0x151   :  { %5513 = vst [vmem:[#allocation68_spill] sm:$0xff] %v4578_v50  ;;  %2093 = vmatpush1.msra.mxu0 %v1351_v13  ;;  %2023 = vmatprep.subr.mxu1 %v1266_v40  ;;  %v1224_v29 = vld [vmem:[%s5436_s2 + $0x3c0] sm:$0xff]  ;;  %v1289_v50 = vld [vmem:[%s5436_s2 + $0x5c8] sm:$0xff] }
 0x152   :  { %2094 = vmatprep.subr.mxu0 %v1331_v16  ;;  %2024 = vmatpush1.msra.mxu1 %v1265_v3  ;;  %v4592_v13 = vpop.f32.mrf.mxu0  ;;  %v4594_v40 = vpop.f32.mrf.mxu1  ;;  %v1223_v16 = vld [vmem:[%s5436_s2 + $0x3b8] sm:$0xff]  ;;  %v1288_v3 = vld [vmem:[%s5436_s2 + $0x5c0] sm:$0xff] }
 0x153   :  { %5514 = vst [vmem:[#allocation69_spill] sm:$0xff] %v4592_v13  ;;  %5515 = vst [vmem:[#allocation70_spill] sm:$0xff] %v4594_v40  ;;  %2095 = vmatpush1.msra.mxu0 %v1330_v9  ;;  %2025 = vmatprep.subr.mxu1 %v1245_v43  ;;  %v1203_v13 = vld [vmem:[%s5436_s2 + $0x318] sm:$0xff]  ;;  %v1268_v40 = vld [vmem:[%s5436_s2 + $0x520] sm:$0xff] }
 0x154   :  { %2096 = vmatprep.subr.mxu0 %v1310_v36  ;;  %2026 = vmatpush1.msra.mxu1 %v1244_v32  ;;  %v4608_v9 = vpop.f32.mrf.mxu0  ;;  %v4610_v43 = vpop.f32.mrf.mxu1  ;;  %v1202_v36 = vld [vmem:[%s5436_s2 + $0x310] sm:$0xff]  ;;  %v1267_v32 = vld [vmem:[%s5436_s2 + $0x518] sm:$0xff] }
 0x155   :  { %5516 = vst [vmem:[#allocation71_spill] sm:$0xff] %v4608_v9  ;;  %5517 = vst [vmem:[#allocation72_spill] sm:$0xff] %v4610_v43  ;;  %2097 = vmatpush1.msra.mxu0 %v1309_v4  ;;  %2027 = vmatprep.subr.mxu1 %v1224_v29  ;;  %v1182_v9 = vld [vmem:[%s5436_s2 + $0x270] sm:$0xff]  ;;  %v1247_v43 = vld [vmem:[%s5436_s2 + $0x478] sm:$0xff] }
 0x156   :  { %2098 = vmatprep.subr.mxu0 %v1289_v50  ;;  %2028 = vmatpush1.msra.mxu1 %v1223_v16  ;;  %v4624_v4 = vpop.f32.mrf.mxu0  ;;  %v4626_v29 = vpop.f32.mrf.mxu1  ;;  %v1181_v50 = vld [vmem:[%s5436_s2 + $0x268] sm:$0xff]  ;;  %v1246_v16 = vld [vmem:[%s5436_s2 + $0x470] sm:$0xff] }
 0x157   :  { %5518 = vst [vmem:[#allocation73_spill] sm:$0xff] %v4624_v4  ;;  %5519 = vst [vmem:[#allocation74_spill] sm:$0xff] %v4626_v29  ;;  %2099 = vmatpush1.msra.mxu0 %v1288_v3  ;;  %2029 = vmatprep.subr.mxu1 %v1203_v13  ;;  %v1161_v4 = vld [vmem:[%s5436_s2 + $0x1c8] sm:$0xff]  ;;  %v1226_v29 = vld [vmem:[%s5436_s2 + $0x3d0] sm:$0xff] }
 0x158   :  { %2100 = vmatprep.subr.mxu0 %v1268_v40  ;;  %2030 = vmatpush1.msra.mxu1 %v1202_v36  ;;  %v4640_v3 = vpop.f32.mrf.mxu0  ;;  %v4642_v13 = vpop.f32.mrf.mxu1  ;;  %v1160_v40 = vld [vmem:[%s5436_s2 + $0x1c0] sm:$0xff]  ;;  %v1225_v36 = vld [vmem:[%s5436_s2 + $0x3c8] sm:$0xff] }
 0x159   :  { %5520 = vst [vmem:[#allocation75_spill] sm:$0xff] %v4640_v3  ;;  %5521 = vst [vmem:[#allocation76_spill] sm:$0xff] %v4642_v13  ;;  %2101 = vmatpush1.msra.mxu0 %v1267_v32  ;;  %2031 = vmatprep.subr.mxu1 %v1182_v9  ;;  %v1140_v3 = vld [vmem:[%s5436_s2 + $0x120] sm:$0xff]  ;;  %v1205_v13 = vld [vmem:[%s5436_s2 + $0x328] sm:$0xff] }
 0x15a   :  { %2102 = vmatprep.subr.mxu0 %v1247_v43  ;;  %2032 = vmatpush1.msra.mxu1 %v1181_v50  ;;  %v4656_v32 = vpop.f32.mrf.mxu0  ;;  %v4658_v9 = vpop.f32.mrf.mxu1  ;;  %v1139_v43 = vld [vmem:[%s5436_s2 + $0x118] sm:$0xff]  ;;  %v1204_v50 = vld [vmem:[%s5436_s2 + $0x320] sm:$0xff] }
 0x15b   :  { %5522 = vst [vmem:[#allocation77_spill] sm:$0xff] %v4656_v32  ;;  %5523 = vst [vmem:[#allocation78_spill] sm:$0xff] %v4658_v9  ;;  %2103 = vmatpush1.msra.mxu0 %v1246_v16  ;;  %2033 = vmatprep.subr.mxu1 %v1161_v4  ;;  %v1119_v9 = vld [vmem:[%s5436_s2 + $0x78] sm:$0xff] }
 0x15c   :  { %2104 = vmatprep.subr.mxu0 %v1226_v29  ;;  %2034 = vmatpush1.msra.mxu1 %v1160_v40  ;;  %v4672_v16 = vpop.f32.mrf.mxu0  ;;  %v4674_v4 = vpop.f32.mrf.mxu1  ;;  %v1118_v29 = vld [vmem:[%s5436_s2 + $0x70] sm:$0xff]  ;;  %v1183_v40 = vld [vmem:[%s5436_s2 + $0x278] sm:$0xff] }
 0x15d   :  { %5524 = vst [vmem:[#allocation79_spill] sm:$0xff] %v4672_v16  ;;  %5525 = vst [vmem:[#allocation80_spill] sm:$0xff] %v4674_v4  ;;  %2105 = vmatpush1.msra.mxu0 %v1225_v36  ;;  %2035 = vmatprep.subr.mxu1 %v1140_v3  ;;  %v1455_v4 = vld [vmem:[%s5436_s2 + $0xaf8] sm:$0xff] }
 0x15e   :  { %2106 = vmatprep.subr.mxu0 %v1205_v13  ;;  %2036 = vmatpush1.msra.mxu1 %v1139_v43  ;;  %v4688_v36 = vpop.f32.mrf.mxu0  ;;  %v4690_v3 = vpop.f32.mrf.mxu1  ;;  %v1163_v16 = vld [vmem:[%s5436_s2 + $0x1d8] sm:$0xff]  ;;  %v1454_v13 = vld [vmem:[%s5436_s2 + $0xaf0] sm:$0xff] }
 0x15f   :  { %5526 = vst [vmem:[#allocation81_spill] sm:$0xff] %v4688_v36  ;;  %5527 = vst [vmem:[#allocation82_spill] sm:$0xff] %v4690_v3  ;;  %2107 = vmatpush1.msra.mxu0 %v1204_v50  ;;  %2037 = vmatprep.subr.mxu1 %v1119_v9  ;;  %v1162_v43 = vld [vmem:[%s5436_s2 + $0x1d0] sm:$0xff]  ;;  %v1141_v50 = vld [vmem:[%s5436_s2 + $0x128] sm:$0xff] }
 0x160   :  { %2108 = vmatprep.subr.mxu0 %v1184_v62  ;;  %2038 = vmatpush1.msra.mxu1 %v1118_v29  ;;  %v4701_v32 = vpop.f32.mrf.mxu0  ;;  %v4703_v36 = vpop.f32.mrf.mxu1  ;;  %v1142_v9 = vld [vmem:[%s5436_s2 + $0x130] sm:$0xff] }
 0x161   :  { %5528 = vst [vmem:[#allocation83_spill] sm:$0xff] %v4701_v32  ;;  %5529 = vst [vmem:[#allocation84_spill] sm:$0xff] %v4703_v36  ;;  %2109 = vmatpush1.msra.mxu0 %v1183_v40  ;;  %2069 = vmatprep.subr.mxu1 %v1455_v4  ;;  %v1438_v62 = vld [vmem:[%s5436_s2 + $0xa70] sm:$0xff]  ;;  %v1121_v4 = vld [vmem:[%s5436_s2 + $0x88] sm:$0xff] }
 0x162   :  { %2110 = vmatprep.subr.mxu0 %v1163_v16  ;;  %2070 = vmatpush2.msra.mxu1 %v1454_v13  ;;  %v4714_v29 = vpop.f32.mrf.mxu0  ;;  %v4716_v3 = vpop.f32.mrf.mxu1  ;;  %v1437_v16 = vld [vmem:[%s5436_s2 + $0xa68] sm:$0xff] }
 0x163   :  { %5530 = vst [vmem:[#allocation85_spill] sm:$0xff] %v4714_v29  ;;  %5531 = vst [vmem:[#allocation86_spill] sm:$0xff] %v4716_v3  ;;  %2755 = vmatprep.mubr.msk.f32.mxu1 %vm1461_vm1, %v4479_v42  ;;  %2111 = vmatpush1.msra.mxu0 %v1162_v43  ;;  %v1417_v40 = vld [vmem:[%s5436_s2 + $0x9c8] sm:$0xff]  ;;  %v1120_v43 = vld [vmem:[%s5436_s2 + $0x80] sm:$0xff] }
 0x164   :  { %2072 = vmatmul.mubr.f32.vlgmr.msra.gmra.mxu1 %v4492_v48  ;;  %2112 = vmatprep.subr.mxu0 %v1142_v9  ;;  %v4730_v13 = vpop.f32.mrf.mxu0  ;;  %v4732_v36 = vpop.f32.mrf.mxu1  ;;  %v1416_v3 = vld [vmem:[%s5436_s2 + $0x9c0] sm:$0xff]  ;;  %v1457_v9 = vld [vmem:[%s5436_s2 + $0xb08] sm:$0xff] }
 0x165   :  { %5532 = vst [vmem:[#allocation87_spill] sm:$0xff] %v4730_v13  ;;  %5533 = vst [vmem:[#allocation88_spill] sm:$0xff] %v4732_v36  ;;  %2161 = vmatprep.subr.mxu1 %v1438_v62  ;;  %2113 = vmatpush1.msra.mxu0 %v1141_v50  ;;  %v1396_v62 = vld [vmem:[%s5436_s2 + $0x920] sm:$0xff]  ;;  %v1270_v36 = vld [vmem:[%s5436_s2 + $0x530] sm:$0xff] }
 0x166   :  { %2162 = vmatpush1.msra.mxu1 %v1437_v16  ;;  %2114 = vmatprep.subr.mxu0 %v1121_v4  ;;  %v4743_v29 = vpop.f32.mrf.mxu0  ;;  %v4745_v13 = vpop.f32.mrf.mxu1  ;;  %v1456_v50 = vld [vmem:[%s5436_s2 + $0xb00] sm:$0xff]  ;;  %v1395_v16 = vld [vmem:[%s5436_s2 + $0x918] sm:$0xff] }
 0x167   :  { %5534 = vst [vmem:[#allocation89_spill] sm:$0xff] %v4743_v29  ;;  %5535 = vst [vmem:[#allocation90_spill] sm:$0xff] %v4745_v13  ;;  %2163 = vmatprep.subr.mxu1 %v1417_v40  ;;  %2756 = vmatprep.mubr.msk.f32.mxu1 %vm1461_vm1, %v4514_v56  ;;  %v1375_v13 = vld [vmem:[%s5436_s2 + $0x878] sm:$0xff] }
 0x168   :  { %2115 = vmatpush1.msra.mxu0 %v1120_v43  ;;  %2164 = vmatpush1.msra.mxu1 %v1416_v3  ;;  %v4758_v4 = vpop.f32.mrf.mxu0  ;;  %v4760_v40 = vpop.f32.mrf.mxu1  ;;  %v1374_v3 = vld [vmem:[%s5436_s2 + $0x870] sm:$0xff] }
 0x169   :  { %5536 = vst [vmem:[#allocation91_spill] sm:$0xff] %v4758_v4  ;;  %5537 = vst [vmem:[#allocation92_spill] sm:$0xff] %v4760_v40  ;;  %2078 = vmatmul.mubr.f32.gmra.mxu1 %v4535_v59  ;;  %2146 = vmatprep.subr.mxu0 %v1457_v9  ;;  %v1439_v9 = vld [vmem:[%s5436_s2 + $0xa78] sm:$0xff]  ;;  %v1418_v4 = vld [vmem:[%s5436_s2 + $0x9d0] sm:$0xff] }
 0x16a   :  { %2165 = vmatprep.subr.mxu1 %v1396_v62  ;;  %2147 = vmatpush2.msra.mxu0 %v1456_v50  ;;  %v4769_v43 = vpop.f32.mrf.mxu0  ;;  %v4771_v29 = vpop.f32.mrf.mxu1  ;;  %v1354_v62 = vld [vmem:[%s5436_s2 + $0x7d0] sm:$0xff] }
 0x16b   :  { %5538 = vst [vmem:[#allocation93_spill] sm:$0xff] %v4769_v43  ;;  %5539 = vst [vmem:[#allocation94_spill] sm:$0xff] %v4771_v29  ;;  %2757 = vmatprep.mubr.msk.f32.mxu0 %vm1461_vm1, %v4479_v42  ;;  %2166 = vmatpush1.msra.mxu1 %v1395_v16  ;;  %v5542_v29 = vmov 0.0   ;;  %v1353_v16 = vld [vmem:[%s5436_s2 + $0x7c8] sm:$0xff] }
 0x16c   :  { %2149 = vmatmul.mubr.f32.vlgmr.msra.gmra.mxu0 %v4492_v48  ;;  %2167 = vmatprep.subr.mxu1 %v1375_v13  ;;  %v4782_v50 = vpop.f32.mrf.mxu0  ;;  %v4784_v43 = vpop.f32.mrf.mxu1  ;;  %v1333_v13 = vld [vmem:[%s5436_s2 + $0x728] sm:$0xff] }
 0x16d   :  { %5540 = vst [vmem:[#allocation95_spill] sm:$0xff] %v4782_v50  ;;  %5541 = vst [vmem:[#allocation96_spill] sm:$0xff] %v4784_v43  ;;  %2238 = vmatprep.subr.mxu0 %v5542_v29  ;;  %2168 = vmatpush1.msra.mxu1 %v1374_v3  ;;  %v1332_v3 = vld [vmem:[%s5436_s2 + $0x720] sm:$0xff] }
 0x16e   :  { %2239 = vmatpush1.msra.mxu0 %v1439_v9  ;;  %2169 = vmatprep.subr.mxu1 %v1354_v62  ;;  %v4796_v50 = vpop.f32.mrf.mxu0  ;;  %v4798_v43 = vpop.f32.mrf.mxu1  ;;  %v1397_v9 = vld [vmem:[%s5436_s2 + $0x928] sm:$0xff]  ;;  %v1312_v62 = vld [vmem:[%s5436_s2 + $0x680] sm:$0xff] }
 0x16f   :  { %5543 = vst [vmem:[#allocation97_spill] sm:$0xff] %v4796_v50  ;;  %5544 = vst [vmem:[#allocation98_spill] sm:$0xff] %v4798_v43  ;;  %2240 = vmatprep.subr.mxu0 %v5542_v29  ;;  %2758 = vmatprep.mubr.msk.f32.mxu0 %vm1461_vm1, %v4514_v56 }
 0x170   :  { %2170 = vmatpush1.msra.mxu1 %v1353_v16  ;;  %2241 = vmatpush1.msra.mxu0 %v1418_v4  ;;  %v4812_v43 = vpop.f32.mrf.mxu0  ;;  %v4814_v50 = vpop.f32.mrf.mxu1  ;;  %v1311_v16 = vld [vmem:[%s5436_s2 + $0x678] sm:$0xff]  ;;  %v1376_v4 = vld [vmem:[%s5436_s2 + $0x880] sm:$0xff] }
 0x171   :  { %5545 = vst [vmem:[#allocation99_spill] sm:$0xff] %v4812_v43  ;;  %5546 = vst [vmem:[#allocation100_spill] sm:$0xff] %v4814_v50  ;;  %2155 = vmatmul.mubr.f32.gmra.mxu0 %v4535_v59  ;;  %2171 = vmatprep.subr.mxu1 %v1333_v13  ;;  %v1291_v43 = vld [vmem:[%s5436_s2 + $0x5d8] sm:$0xff]  ;;  %v1290_v13 = vld [vmem:[%s5436_s2 + $0x5d0] sm:$0xff] }
 0x172   :  { %2242 = vmatprep.subr.mxu0 %v5542_v29  ;;  %2172 = vmatpush1.msra.mxu1 %v1332_v3  ;;  %v4827_v40 = vpop.f32.mrf.mxu0  ;;  %v4829_v50 = vpop.f32.mrf.mxu1  ;;  %v1355_v3 = vld [vmem:[%s5436_s2 + $0x7d8] sm:$0xff] }
 0x173   :  { %5547 = vst [vmem:[#allocation101_spill] sm:$0xff] %v4827_v40  ;;  %5548 = vst [vmem:[#allocation102_spill] sm:$0xff] %v4829_v50  ;;  %2243 = vmatpush1.msra.mxu0 %v1397_v9  ;;  %2173 = vmatprep.subr.mxu1 %v1312_v62  ;;  %v1269_v9 = vld [vmem:[%s5436_s2 + $0x528] sm:$0xff]  ;;  %v1334_v62 = vld [vmem:[%s5436_s2 + $0x730] sm:$0xff] }
 0x174   :  { %2244 = vmatprep.subr.mxu0 %v5542_v29  ;;  %2174 = vmatpush1.msra.mxu1 %v1311_v16  ;;  %v4841_v40 = vpop.f32.mrf.mxu0  ;;  %v4843_v50 = vpop.f32.mrf.mxu1  ;;  %v1249_v16 = vld [vmem:[%s5436_s2 + $0x488] sm:$0xff] }
 0x175   :  { %5549 = vst [vmem:[#allocation103_spill] sm:$0xff] %v4841_v40  ;;  %5550 = vst [vmem:[#allocation104_spill] sm:$0xff] %v4843_v50  ;;  %2245 = vmatpush1.msra.mxu0 %v1376_v4  ;;  %2175 = vmatprep.subr.mxu1 %v1291_v43  ;;  %v1248_v43 = vld [vmem:[%s5436_s2 + $0x480] sm:$0xff]  ;;  %v1313_v4 = vld [vmem:[%s5436_s2 + $0x688] sm:$0xff] }
 0x176   :  { %2246 = vmatprep.subr.mxu0 %v5542_v29  ;;  %2176 = vmatpush1.msra.mxu1 %v1290_v13  ;;  %v4855_v40 = vpop.f32.mrf.mxu0  ;;  %v4857_v50 = vpop.f32.mrf.mxu1  ;;  %v1228_v13 = vld [vmem:[%s5436_s2 + $0x3e0] sm:$0xff] }
 0x177   :  { %5551 = vst [vmem:[#allocation105_spill] sm:$0xff] %v4855_v40  ;;  %5552 = vst [vmem:[#allocation106_spill] sm:$0xff] %v4857_v50  ;;  %2247 = vmatpush1.msra.mxu0 %v1355_v3  ;;  %2177 = vmatprep.subr.mxu1 %v1270_v36  ;;  %v1227_v36 = vld [vmem:[%s5436_s2 + $0x3d8] sm:$0xff]  ;;  %v1292_v3 = vld [vmem:[%s5436_s2 + $0x5e0] sm:$0xff] }
 0x178   :  { %2248 = vmatprep.subr.mxu0 %v5542_v29  ;;  %2178 = vmatpush1.msra.mxu1 %v1269_v9  ;;  %v4869_v40 = vpop.f32.mrf.mxu0  ;;  %v4871_v50 = vpop.f32.mrf.mxu1  ;;  %v1207_v9 = vld [vmem:[%s5436_s2 + $0x338] sm:$0xff] }
 0x179   :  { %5553 = vst [vmem:[#allocation107_spill] sm:$0xff] %v4869_v40  ;;  %5554 = vst [vmem:[#allocation108_spill] sm:$0xff] %v4871_v50  ;;  %2249 = vmatpush1.msra.mxu0 %v1334_v62  ;;  %2179 = vmatprep.subr.mxu1 %v1249_v16  ;;  %v1206_v62 = vld [vmem:[%s5436_s2 + $0x330] sm:$0xff]  ;;  %v1271_v16 = vld [vmem:[%s5436_s2 + $0x538] sm:$0xff] }
 0x17a   :  { %2250 = vmatprep.subr.mxu0 %v5542_v29  ;;  %2180 = vmatpush1.msra.mxu1 %v1248_v43  ;;  %v4883_v40 = vpop.f32.mrf.mxu0  ;;  %v4885_v50 = vpop.f32.mrf.mxu1  ;;  %v1186_v43 = vld [vmem:[%s5436_s2 + $0x290] sm:$0xff] }
 0x17b   :  { %5555 = vst [vmem:[#allocation109_spill] sm:$0xff] %v4883_v40  ;;  %5556 = vst [vmem:[#allocation110_spill] sm:$0xff] %v4885_v50  ;;  %2251 = vmatpush1.msra.mxu0 %v1313_v4  ;;  %2181 = vmatprep.subr.mxu1 %v1228_v13  ;;  %v1185_v4 = vld [vmem:[%s5436_s2 + $0x288] sm:$0xff]  ;;  %v1250_v13 = vld [vmem:[%s5436_s2 + $0x490] sm:$0xff] }
 0x17c   :  { %2252 = vmatprep.subr.mxu0 %v5542_v29  ;;  %2182 = vmatpush1.msra.mxu1 %v1227_v36  ;;  %v4897_v32 = vpop.f32.mrf.mxu0  ;;  %v4899_v50 = vpop.f32.mrf.mxu1  ;;  %v1165_v36 = vld [vmem:[%s5436_s2 + $0x1e8] sm:$0xff] }
 0x17d   :  { %5557 = vst [vmem:[#allocation111_spill] sm:$0xff] %v4897_v32  ;;  %5558 = vst [vmem:[#allocation112_spill] sm:$0xff] %v4899_v50  ;;  %2253 = vmatpush1.msra.mxu0 %v1292_v3  ;;  %2183 = vmatprep.subr.mxu1 %v1207_v9  ;;  %v1164_v3 = vld [vmem:[%s5436_s2 + $0x1e0] sm:$0xff]  ;;  %v1229_v9 = vld [vmem:[%s5436_s2 + $0x3e8] sm:$0xff] }
 0x17e   :  { %2254 = vmatprep.subr.mxu0 %v5542_v29  ;;  %2184 = vmatpush1.msra.mxu1 %v1206_v62  ;;  %v4911_v32 = vpop.f32.mrf.mxu0  ;;  %v4913_v50 = vpop.f32.mrf.mxu1  ;;  %v1144_v62 = vld [vmem:[%s5436_s2 + $0x140] sm:$0xff] }
 0x17f   :  { %5559 = vst [vmem:[#allocation113_spill] sm:$0xff] %v4911_v32  ;;  %5560 = vst [vmem:[#allocation114_spill] sm:$0xff] %v4913_v50  ;;  %2255 = vmatpush1.msra.mxu0 %v1271_v16  ;;  %2185 = vmatprep.subr.mxu1 %v1186_v43  ;;  %v1143_v16 = vld [vmem:[%s5436_s2 + $0x138] sm:$0xff]  ;;  %v1208_v43 = vld [vmem:[%s5436_s2 + $0x340] sm:$0xff] }
 0x180   :  { %2256 = vmatprep.subr.mxu0 %v5542_v29  ;;  %2186 = vmatpush1.msra.mxu1 %v1185_v4  ;;  %v4925_v32 = vpop.f32.mrf.mxu0  ;;  %v4927_v50 = vpop.f32.mrf.mxu1  ;;  %v1123_v4 = vld [vmem:[%s5436_s2 + $0x98] sm:$0xff] }
 0x181   :  { %5561 = vst [vmem:[#allocation115_spill] sm:$0xff] %v4925_v32  ;;  %5562 = vst [vmem:[#allocation116_spill] sm:$0xff] %v4927_v50  ;;  %2257 = vmatpush1.msra.mxu0 %v1250_v13  ;;  %2187 = vmatprep.subr.mxu1 %v1165_v36  ;;  %v1122_v13 = vld [vmem:[%s5436_s2 + $0x90] sm:$0xff]  ;;  %v1187_v36 = vld [vmem:[%s5436_s2 + $0x298] sm:$0xff] }
 0x182   :  { %2258 = vmatprep.subr.mxu0 %v5542_v29  ;;  %2188 = vmatpush1.msra.mxu1 %v1164_v3  ;;  %v4939_v32 = vpop.f32.mrf.mxu0  ;;  %v2867_v50 = vpop.f32.mrf.mxu1  ;;  %v1459_v3 = vld [vmem:[%s5436_s2 + $0xb18] sm:$0xff] }
 0x183   :  { %5563 = vst [vmem:[#allocation117_spill] sm:$0xff] %v4939_v32  ;;  %2259 = vmatpush1.msra.mxu0 %v1229_v9  ;;  %2189 = vmatprep.subr.mxu1 %v1144_v62  ;;  %v1458_v9 = vld [vmem:[%s5436_s2 + $0xb10] sm:$0xff] }
 0x184   :  { %2260 = vmatprep.subr.mxu0 %v5542_v29  ;;  %2190 = vmatpush1.msra.mxu1 %v1143_v16  ;;  %v4951_v40 = vpop.f32.mrf.mxu0  ;;  %v1069_v50 = vpop.f32.mrf.mxu1  ;;  %v1166_v62 = vld [vmem:[%s5436_s2 + $0x1f0] sm:$0xff] }
 0x185   :  { %5564 = vst [vmem:[#allocation118_spill] sm:$0xff] %v4951_v40  ;;  %2261 = vmatpush1.msra.mxu0 %v1208_v43  ;;  %2191 = vmatprep.subr.mxu1 %v1123_v4  ;;  %v1145_v43 = vld [vmem:[%s5436_s2 + $0x148] sm:$0xff] }
 0x186   :  { %2262 = vmatprep.subr.mxu0 %v5542_v29  ;;  %2192 = vmatpush1.msra.mxu1 %v1122_v13  ;;  %v4960_v16 = vpop.f32.mrf.mxu0  ;;  %v2870_v32 = vpop.f32.mrf.mxu1 }
 0x187   :  { %5565 = vst [vmem:[#allocation119_spill] sm:$0xff] %v4960_v16  ;;  %2263 = vmatpush1.msra.mxu0 %v1187_v36  ;;  %2223 = vmatprep.subr.mxu1 %v1459_v3  ;;  %v1124_v32 = vld [vmem:[%s5436_s2 + $0xa0] sm:$0xff] }
 0x188   :  { %2264 = vmatprep.subr.mxu0 %v5542_v29  ;;  %2224 = vmatpush2.msra.mxu1 %v1458_v9  ;;  %v4966_v4 = vpop.f32.mrf.mxu0  ;;  %v1077_v50 = vpop.f32.mrf.mxu1  ;;  %v1460_v3 = vld [vmem:[%s5436_s2 + $0xb20] sm:$0xff] }
 0x189   :  { %5566 = vst [vmem:[#allocation120_spill] sm:$0xff] %v4966_v4  ;;  %2759 = vmatprep.mubr.msk.f32.mxu1 %vm1461_vm1, %v4479_v42  ;;  %2265 = vmatpush1.msra.mxu0 %v1166_v62 }
 0x18a   :  { %2226 = vmatmul.mubr.f32.vlgmr.msra.gmra.mxu1 %v4492_v48  ;;  %2266 = vmatprep.subr.mxu0 %v5542_v29  ;;  %v4975_v13 = vpop.f32.mrf.mxu0  ;;  %v2873_v36 = vpop.f32.mrf.mxu1 }
 0x18b   :  { %5567 = vst [vmem:[#allocation121_spill] sm:$0xff] %v4975_v13  ;;  %2267 = vmatpush1.msra.mxu0 %v1145_v43  ;;  %2760 = vmatprep.mubr.msk.f32.mxu1 %vm1461_vm1, %v4514_v56 }
 0x18c   :  { %2268 = vmatprep.subr.mxu0 %v5542_v29  ;;  %2761 = vmatprep.mubr.msk.f32.mxu0 %vm1461_vm1, %v4479_v42  ;;  %v4985_v9 = vpop.f32.mrf.mxu0  ;;  %v1085_v62 = vpop.f32.mrf.mxu1 }
 0x18d   :  { %5568 = vst [vmem:[#allocation122_spill] sm:$0xff] %v4985_v9  ;;  %2269 = vmatpush1.msra.mxu0 %v1124_v32 }
 0x18e   :  { %2232 = vmatmul.mubr.f32.gmra.mxu1 %v4535_v59  ;;  %2300 = vmatprep.subr.mxu0 %v5542_v29  ;;  %v4989_v43 = vpop.f32.mrf.mxu0  ;;  %v2876_v50 = vpop.f32.mrf.mxu1 }
 0x18f   :  { %5569 = vst [vmem:[#allocation123_spill] sm:$0xff] %v4989_v43  ;;  %2301 = vmatpush2.msra.mxu0 %v1460_v3 }
 0x190   :  { %2303 = vmatmul.mubr.f32.vlgmr.msra.gmra.mxu0 %v4492_v48  ;;  %v4992_v36 = vpop.f32.mrf.mxu0  ;;  %v1093_v13 = vpop.f32.mrf.mxu1 }
 0x191   :  { %5570 = vst [vmem:[#allocation124_spill] sm:$0xff] %v4992_v36  ;;  %2762 = vmatprep.mubr.msk.f32.mxu0 %vm1461_vm1, %v4514_v56 }
 0x192   :  { %v4996_v42 = vpop.f32.mrf.mxu0  ;;  %v1534_v57 = vpop.f32.mrf.mxu1 }
 0x193   :  { %5571 = vst [vmem:[#allocation125_spill] sm:$0xff] %v4996_v42 }
 0x194   :  { %2308 = vmatmul.mubr.f32.gmra.mxu0 %v4535_v59  ;;  %v4999_v32 = vpop.f32.mrf.mxu0 }
 0x195   :  { %5572 = vst [vmem:[#allocation126_spill] sm:$0xff] %v4999_v32 }
 0x196   :  { %v5001_v62 = vpop.f32.mrf.mxu0 }
 0x197   :  { %5573 = vst [vmem:[#allocation127_spill] sm:$0xff] %v5001_v62  ;;  %v1536_v62 = vpop.f32.mrf.mxu1 }
 0x198   :  { %v5003_v29 = vpop.f32.mrf.mxu0 }
 0x199   :  { %5574 = vst [vmem:[#allocation128_spill] sm:$0xff] %v5003_v29  ;;  %v1540_v20 = vpop.f32.mrf.mxu1 }
 0x19a   :  { %v852_v50 = vpop.f32.mrf.mxu0  ;;  %v2320_v6 = vmul.f32 %v1540_v20, %v3630_v2  ;;  %v2517_v52 = vmul.f32 %v1540_v20, %v4066_v27 }
 0x19b   :  { %v1542_v29 = vpop.f32.mrf.mxu1 }
 0x19c   :  { %v853_v3 = vpop.f32.mrf.mxu0  ;;  %v2321_v63 = vmul.f32 %v1542_v29, %v3642_v7 }
 0x19e   :  { %v856_v43 = vpop.f32.mrf.mxu0 }
 0x1a0   :  { %v857_v48 = vpop.f32.mrf.mxu0 }
 0x1a2   :  { %v860_v9 = vpop.f32.mrf.mxu0 }
 0x1a4   :  { %v861_v36 = vpop.f32.mrf.mxu0 }
 0x1a6   :  { %v864_v13 = vpop.f32.mrf.mxu0 }
 0x1a8   :  { %v865_v4 = vpop.f32.mrf.mxu0 }
 0x1aa   :  { %v868_v40 = vpop.f32.mrf.mxu0 }
 0x1ac   :  { %v869_v56 = vpop.f32.mrf.mxu0 }
 0x1ad   :  { %v2313_v56 = vmul.f32 %v1534_v57, %v3613_v61  ;;  %v2419_v61 = vmul.f32 %v1542_v29, %v3844_v41 }
 0x1ae   :  { %v872_v16 = vpop.f32.mrf.mxu0 }
 0x1b0   :  { %v873_v42 = vpop.f32.mrf.mxu0 }
 0x1b2   :  { %v876_v5 = vpop.f32.mrf.mxu0 }
 0x1b4   :  { %v877_v59 = vpop.f32.mrf.mxu0 }
 0x1b5   :  { %v1611_v50 = vpop.f32.mrf.mxu1  ;;  %v2411_v59 = vmul.f32 %v1534_v57, %v3808_v1  ;;  %v2518_v1 = vmul.f32 %v1542_v29, %v4082_v58 }
 0x1b6   :  { %v880_v25 = vpop.f32.mrf.mxu0  ;;  %v2512_v2 = vmul.f32 %v1611_v50, %v4132_v12 }
 0x1b7   :  { %v1613_v3 = vpop.f32.mrf.mxu1 }
 0x1b8   :  { %v881_v32 = vpop.f32.mrf.mxu0  ;;  %v5037_v7 = vmul.f32 %v1613_v3, %v4148_v51 }
 0x1b9   :  { %v1617_v43 = vpop.f32.mrf.mxu1 }
 0x1ba   :  { %v5005_v48 = vpop.f32.mrf.mxu0  ;;  %v2322_v41 = vmul.f32 %v1617_v43, %v3715_v26  ;;  %v2519_v12 = vmul.f32 %v1617_v43, %v4161_v38 }
 0x1bb   :  { %5575 = vst [vmem:[#allocation129_spill] sm:$0xff] %v5005_v48  ;;  %v1619_v9 = vpop.f32.mrf.mxu1  ;;  %v2510_v48 = vmul.f32 %v1534_v57, %v4034_v28  ;;  %v2315_v57 = vmul.f32 %v1611_v50, %v3687_v19 }
 0x1bc   :  { %v5007_v36 = vpop.f32.mrf.mxu0  ;;  %v5051_v51 = vmul.f32 %v1619_v9, %v4180_v34 }
 0x1bd   :  { %5576 = vst [vmem:[#allocation130_spill] sm:$0xff] %v5007_v36  ;;  %v2314_v36 = vmul.f32 %v1536_v62, %v3623_v0  ;;  %v2413_v0 = vmul.f32 %v1611_v50, %v3881_v35 }
 0x1c0   :  { %v5011_v16 = vpop.f32.mrf.mxu0 }
 0x1c1   :  { %5578 = vst [vmem:[#allocation132_spill] sm:$0xff] %v5011_v16  ;;  %v2511_v16 = vmul.f32 %v1536_v62, %v4050_v37  ;;  %v2316_v37 = vmul.f32 %v1613_v3, %v3701_v23  ;;  %v2323_v23 = vmul.f32 %v1619_v9, %v3729_v30 }
 0x1c2   :  { %v5013_v4 = vpop.f32.mrf.mxu0 }
 0x1c3   :  { %5579 = vst [vmem:[#allocation133_spill] sm:$0xff] %v5013_v4 }
 0x1d8   :  { %v5009_v40 = vpop.f32.mrf.mxu1 }
 0x1d9   :  { %5577 = vst [vmem:[#allocation131_spill] sm:$0xff] %v5009_v40  ;;  %v2412_v40 = vmul.f32 %v1536_v62, %v3821_v8 }
 0x1da   :  { %v1767_v5 = vpop.f32.mrf.mxu1 }
 0x1db   :  { %v2327_v8 = vmul.f32 %v1767_v5, %v3655_v11  ;;  %v2425_v27 = vmul.f32 %v1767_v5, %v3854_v24  ;;  %v2524_v19 = vmul.f32 %v1767_v5, %v4098_v17  ;;  %v2420_v11 = vmul.f32 %v1617_v43, %v3907_v47  ;;  %v5581_v5 = vld [vmem:[#allocation44_spill] sm:$0xff] }
 0x1dd   :  { %v5015_v25 = vpop.f32.mrf.mxu1  ;;  %v2341_v24 = vadd.f32 %v2327_v8, %v2313_v56  ;;  %v2538_v30 = vadd.f32 %v2524_v19, %v2510_v48  ;;  %v5586_v19 = vld [vmem:[#allocation2_spill] sm:$0xff] }
 0x1de   :  { %5580 = vst [vmem:[#allocation134_spill] sm:$0xff] %v5015_v25  ;;  %v2418_v25 = vmul.f32 %v1540_v20, %v3831_v10  ;;  %v2414_v10 = vmul.f32 %v1613_v3, %v3896_v46  ;;  %v5048_v46 = vmul.f32 %v1619_v9, %v3923_v21  ;;  %v2439_v20 = vadd.f32 %v2425_v27, %v2411_v59  ;;  %v5584_v59 = vld [vmem:[#allocation42_spill] sm:$0xff] }
 0x1df   :  { %v1773_v32 = vpop.f32.mrf.mxu1 }
 0x1e0   :  { %v1842_v42 = vpop.f32.mrf.mxu0  ;;  %v2334_v35 = vmul.f32 %v1773_v32, %v3685_v18  ;;  %v2432_v26 = vmul.f32 %v1773_v32, %v3879_v55  ;;  %v2531_v17 = vmul.f32 %v1773_v32, %v4130_v15 }
 0x1e1   :  { %v2328_v62 = vmul.f32 %v1842_v42, %v3670_v14  ;;  %v2426_v47 = vmul.f32 %v1842_v42, %v3869_v33  ;;  %v2525_v38 = vmul.f32 %v1842_v42, %v4114_v44 }
 0x1e2   :  { %v1844_v13 = vpop.f32.mrf.mxu0  ;;  %v5058_v29 = vadd.f32 %v2334_v35, %v2320_v6  ;;  %v5068_v43 = vadd.f32 %v2432_v26, %v2418_v25  ;;  %v5070_v44 = vadd.f32 %v2531_v17, %v2517_v52  ;;  %v5587_v35 = vld [vmem:[#allocation20_spill] sm:$0xff]  ;;  %v5588_v26 = vld [vmem:[#allocation38_spill] sm:$0xff] }
 0x1e3   :  { %v2329_v21 = vmul.f32 %v1844_v13, %v3741_v49  ;;  %v2427_v34 = vmul.f32 %v1844_v13, %v3942_v45  ;;  %v2526_v55 = vmul.f32 %v1844_v13, %v4193_v53  ;;  %v2342_v45 = vadd.f32 %v2328_v62, %v2314_v36 }
 0x1e4   :  { %v2440_v48 = vadd.f32 %v2426_v47, %v2412_v40  ;;  %v2539_v9 = vadd.f32 %v2525_v38, %v2511_v16 }
 0x1e5   :  { %v1848_v28 = vpop.f32.mrf.mxu0  ;;  %v5075_v53 = vadd.f32 %v2329_v21, %v2315_v57 }
 0x1e6   :  { %v2335_v15 = vmul.f32 %v1848_v28, %v3699_v22  ;;  %v2433_v14 = vmul.f32 %v1848_v28, %v3894_v60  ;;  %v2532_v33 = vmul.f32 %v1848_v28, %v4146_v39  ;;  %v5077_v22 = vadd.f32 %v2427_v34, %v2413_v0  ;;  %v5582_v60 = vld [vmem:[#allocation6_spill] sm:$0xff]  ;;  %v5583_v39 = vld [vmem:[#allocation24_spill] sm:$0xff]  ;;  %v5585_v0 = vld [vmem:[#allocation9_spill] sm:$0xff] }
 0x1e7   :  { %v1850_v18 = vpop.f32.mrf.mxu0  ;;  %v5591_v34 = vld [vmem:[#allocation3_spill] sm:$0xff] }
 0x1e8   :  { %v2336_v6 = vmul.f32 %v1850_v18, %v3764_v54  ;;  %v2434_v49 = vmul.f32 %v1850_v18, %v3971_v31  ;;  %v2533_v42 = vmul.f32 %v1850_v18, %v5581_v5  ;;  %v5085_v54 = vadd.f32 %v2526_v55, %v2512_v2  ;;  %v5590_v18 = vld [vmem:[#allocation46_spill] sm:$0xff] }
 0x1e9   :  { %v5087_v31 = vadd.f32 %v2335_v15, %v2321_v63  ;;  %v5089_v36 = vadd.f32 %v2433_v14, %v2419_v61  ;;  %v5091_v40 = vadd.f32 %v2532_v33, %v2518_v1  ;;  %v5593_v33 = vld [vmem:[#allocation39_spill] sm:$0xff] }
 0x1ea   :  { %v5093_v16 = vadd.f32 %v2336_v6, %v2322_v41  ;;  %v5095_v56 = vadd.f32 %v2434_v49, %v2420_v11  ;;  %v5099_v27 = vadd.f32 %v2533_v42, %v2519_v12  ;;  %v5589_v41 = vld [vmem:[#allocation27_spill] sm:$0xff] }
 0x1eb   :  { %v5594_v49 = vld [vmem:[#allocation7_spill] sm:$0xff] }
 0x1fe   :  { %v1919_v4 = vpop.f32.mrf.mxu1 }
 0x1ff   :  { %v2330_v32 = vmul.f32 %v1919_v4, %v5582_v60  ;;  %v2428_v25 = vmul.f32 %v1919_v4, %v5583_v39  ;;  %v2527_v57 = vmul.f32 %v1919_v4, %v5584_v59  ;;  %v5596_v60 = vld [vmem:[#allocation43_spill] sm:$0xff] }
 0x200   :  { %v5042_v58 = vpop.f32.mrf.mxu1 }
 0x201   :  { %v5104_v17 = vadd.f32 %v2330_v32, %v2316_v37  ;;  %v5106_v1 = vadd.f32 %v2428_v25, %v2414_v10  ;;  %v5114_v15 = vadd.f32 %v2527_v57, %v5037_v7  ;;  %v5592_v37 = vld [vmem:[#allocation21_spill] sm:$0xff]  ;;  %v5597_v7 = vld [vmem:[#allocation4_spill] sm:$0xff] }
 0x203   :  { %v1925_v50 = vpop.f32.mrf.mxu1 }
 0x204   :  { %v2337_v8 = vmul.f32 %v1925_v50, %v5585_v0  ;;  %v2435_v11 = vmul.f32 %v1925_v50, %v5589_v41  ;;  %v2534_v62 = vmul.f32 %v1925_v50, %v5590_v18  ;;  %v5595_v50 = vld [vmem:[#allocation25_spill] sm:$0xff] }
 0x205   :  { %v5081_v13 = vpop.f32.mrf.mxu1 }
 0x206   :  { %v5062_v3 = vpop.f32.mrf.mxu0  ;;  %v5116_v14 = vadd.f32 %v2337_v8, %v2323_v23  ;;  %v5598_v23 = vld [vmem:[#allocation22_spill] sm:$0xff]  ;;  %v5128_v0 = vadd.f32 %v2435_v11, %v5048_v46  ;;  %v5131_v8 = vadd.f32 %v2534_v62, %v5051_v51  ;;  %v5603_v11 = vld [vmem:[#allocation5_spill] sm:$0xff]  ;;  %v5604_v62 = vld [vmem:[#allocation23_spill] sm:$0xff] }
 0x208   :  { %v5083_v52 = vpop.f32.mrf.mxu0 }
 0x20b   :  { %v5110_v4 = vpop.f32.mrf.mxu0 }
 0x224   :  { %v2073_v28 = vpop.f32.mrf.mxu1 }
 0x225   :  { %v2355_v2 = vmul.f32 %v2073_v28, %v5586_v19  ;;  %v2453_v63 = vmul.f32 %v2073_v28, %v5587_v35  ;;  %v2552_v61 = vmul.f32 %v2073_v28, %v5588_v26  ;;  %v5601_v19 = vld [vmem:[#allocation26_spill] sm:$0xff] }
 0x226   :  { %v2075_v47 = vpop.f32.mrf.mxu1 }
 0x227   :  { %v2369_v38 = vadd.f32 %v2355_v2, %v2341_v24  ;;  %v2467_v12 = vadd.f32 %v2453_v63, %v2439_v20  ;;  %v2566_v21 = vadd.f32 %v2552_v61, %v2538_v30  ;;  %v2356_v55 = vmul.f32 %v2075_v47, %v5591_v34  ;;  %v5123_v30 = vpop.f32.mrf.mxu0  ;;  %v5602_v2 = vld [vmem:[#allocation45_spill] sm:$0xff] }
 0x228   :  { %v2454_v10 = vmul.f32 %v2075_v47, %v5592_v37  ;;  %v2553_v6 = vmul.f32 %v2075_v47, %v5593_v33  ;;  %v5609_v37 = vld [vmem:[#allocation29_spill] sm:$0xff] }
 0x229   :  { %v2383_v5 = vadd.f32 %v2369_v38, %v5594_v49  ;;  %v2481_v42 = vadd.f32 %v2467_v12, %v5595_v50  ;;  %v2580_v32 = vadd.f32 %v2566_v21, %v5596_v60  ;;  %v2370_v24 = vadd.f32 %v2356_v55, %v2342_v45  ;;  %v2079_v20 = vpop.f32.mrf.mxu1  ;;  %v5599_v45 = vld [vmem:[#allocation8_spill] sm:$0xff]  ;;  %v5605_v38 = vld [vmem:[#allocation41_spill] sm:$0xff]  ;;  %v5608_v55 = vld [vmem:[#allocation11_spill] sm:$0xff] }
 0x22a   :  { %v2468_v39 = vadd.f32 %v2454_v10, %v2440_v48  ;;  %v2567_v25 = vadd.f32 %v2553_v6, %v2539_v9  ;;  %v2362_v59 = vmul.f32 %v2079_v20, %v5597_v7  ;;  %v2460_v57 = vmul.f32 %v2079_v20, %v5598_v23  ;;  %v5600_v9 = vld [vmem:[#allocation40_spill] sm:$0xff]  ;;  %v5610_v6 = vld [vmem:[#allocation47_spill] sm:$0xff] }
 0x22b   :  { %2397 = vst [vmem:[%s5438_s4] sm:$0xff] %v2383_v5  ;;  %2763 = vst [vmem:[%s5438_s4 + $0x70] sm:$0xff] %v2481_v42  ;;  %v2384_v48 = vadd.f32 %v2370_v24, %v5599_v45  ;;  %v2559_v46 = vmul.f32 %v2079_v20, %v5600_v9  ;;  %v2081_v28 = vpop.f32.mrf.mxu1  ;;  %v5607_v21 = vld [vmem:[#allocation28_spill] sm:$0xff] }
 0x22c   :  { %2777 = vst [vmem:[%s5438_s4 + $0xe0] sm:$0xff] %v2580_v32  ;;  %v2482_v51 = vadd.f32 %v2468_v39, %v5601_v19  ;;  %v2581_v35 = vadd.f32 %v2567_v25, %v5602_v2  ;;  %v2376_v63 = vadd.f32 %v2362_v59, %v5058_v29  ;;  %v2474_v26 = vadd.f32 %v2460_v57, %v5068_v43  ;;  %v2150_v61 = vpop.f32.mrf.mxu0  ;;  %v5606_v29 = vld [vmem:[#allocation10_spill] sm:$0xff]  ;;  %v5611_v24 = vld [vmem:[#allocation48_spill] sm:$0xff]  ;;  %v5612_v39 = vld [vmem:[#allocation13_spill] sm:$0xff] }
 0x22d   :  { %2398 = vst [vmem:[%s5438_s4 + $0x8] sm:$0xff] %v2384_v48  ;;  %v2573_v41 = vadd.f32 %v2559_v46, %v5070_v44  ;;  %v2363_v18 = vmul.f32 %v2081_v28, %v5603_v11  ;;  %v2461_v47 = vmul.f32 %v2081_v28, %v5604_v62  ;;  %v2560_v12 = vmul.f32 %v2081_v28, %v5605_v38  ;;  %v5614_v25 = vld [vmem:[#allocation30_spill] sm:$0xff]  ;;  %v5615_v59 = vld [vmem:[#allocation49_spill] sm:$0xff]  ;;  %v5616_v57 = vld [vmem:[#allocation31_spill] sm:$0xff] }
 0x22e   :  { %2764 = vst [vmem:[%s5438_s4 + $0x78] sm:$0xff] %v2482_v51  ;;  %2778 = vst [vmem:[%s5438_s4 + $0xe8] sm:$0xff] %v2581_v35  ;;  %v2390_v43 = vadd.f32 %v2376_v63, %v5606_v29  ;;  %v2488_v34 = vadd.f32 %v2474_v26, %v5607_v21  ;;  %v2357_v44 = vmul.f32 %v2150_v61, %v5608_v55  ;;  %v2152_v33 = vpop.f32.mrf.mxu0  ;;  %v5619_v2 = vld [vmem:[#allocation50_spill] sm:$0xff]  ;;  %v5621_v26 = vld [vmem:[#allocation32_spill] sm:$0xff] }
 0x22f   :  { %v2455_v10 = vmul.f32 %v2150_v61, %v5609_v37  ;;  %v2587_v49 = vadd.f32 %v2573_v41, %v5610_v6  ;;  %v2377_v5 = vadd.f32 %v2363_v18, %v5087_v31  ;;  %v2475_v50 = vadd.f32 %v2461_v47, %v5089_v36  ;;  %v5613_v36 = vld [vmem:[#allocation12_spill] sm:$0xff]  ;;  %v5620_v63 = vld [vmem:[#allocation14_spill] sm:$0xff]  ;;  %v5622_v41 = vld [vmem:[#allocation53_spill] sm:$0xff] }
 0x230   :  { %v2574_v42 = vadd.f32 %v2560_v12, %v5091_v40  ;;  %2404 = vst [vmem:[%s5438_s4 + $0x38] sm:$0xff] %v2390_v43  ;;  %2770 = vst [vmem:[%s5438_s4 + $0xa8] sm:$0xff] %v2488_v34  ;;  %v2371_v60 = vadd.f32 %v2357_v44, %v5075_v53  ;;  %v2554_v20 = vmul.f32 %v2150_v61, %v5611_v24  ;;  %v5617_v53 = vld [vmem:[#allocation16_spill] sm:$0xff]  ;;  %v5623_v18 = vld [vmem:[#allocation17_spill] sm:$0xff] }
 0x231   :  { %v2469_v32 = vadd.f32 %v2455_v10, %v5077_v22  ;;  %v2358_v31 = vmul.f32 %v2152_v33, %v5612_v39  ;;  %2784 = vst [vmem:[%s5438_s4 + $0x118] sm:$0xff] %v2587_v49  ;;  %v2391_v40 = vadd.f32 %v2377_v5, %v5613_v36  ;;  %v2489_v7 = vadd.f32 %v2475_v50, %v5614_v25  ;;  %v2156_v48 = vpop.f32.mrf.mxu0  ;;  %v5618_v22 = vld [vmem:[#allocation34_spill] sm:$0xff]  ;;  %v5625_v38 = vld [vmem:[#allocation15_spill] sm:$0xff]  ;;  %v5627_v10 = vld [vmem:[#allocation33_spill] sm:$0xff] }
 0x232   :  { %v2588_v23 = vadd.f32 %v2574_v42, %v5615_v59  ;;  %v2456_v45 = vmul.f32 %v2152_v33, %v5616_v57  ;;  %v2385_v9 = vadd.f32 %v2371_v60, %v5617_v53  ;;  %v2568_v28 = vadd.f32 %v2554_v20, %v5085_v54  ;;  %v5626_v29 = vld [vmem:[#allocation35_spill] sm:$0xff]  ;;  %v5628_v6 = vld [vmem:[#allocation52_spill] sm:$0xff]  ;;  %v5630_v49 = vld [vmem:[#allocation18_spill] sm:$0xff] }
 0x233   :  { %v2483_v46 = vadd.f32 %v2469_v32, %v5618_v22  ;;  %v2372_v19 = vadd.f32 %v2358_v31, %v5104_v17  ;;  %2405 = vst [vmem:[%s5438_s4 + $0x40] sm:$0xff] %v2391_v40  ;;  %2771 = vst [vmem:[%s5438_s4 + $0xb0] sm:$0xff] %v2489_v7  ;;  %v2555_v35 = vmul.f32 %v2152_v33, %v5619_v2  ;;  %v2158_v61 = vpop.f32.mrf.mxu0  ;;  %v5631_v50 = vld [vmem:[#allocation36_spill] sm:$0xff]  ;;  %v5632_v60 = vld [vmem:[#allocation55_spill] sm:$0xff] }
 0x234   :  { %2785 = vst [vmem:[%s5438_s4 + $0x120] sm:$0xff] %v2588_v23  ;;  %v2470_v51 = vadd.f32 %v2456_v45, %v5106_v1  ;;  %v2364_v54 = vmul.f32 %v2156_v48, %v5620_v63  ;;  %v2462_v17 = vmul.f32 %v2156_v48, %v5621_v26  ;;  %2399 = vst [vmem:[%s5438_s4 + $0x10] sm:$0xff] %v2385_v9  ;;  %v5624_v1 = vld [vmem:[#allocation51_spill] sm:$0xff]  ;;  %v5635_v39 = vld [vmem:[#allocation56_spill] sm:$0xff] }
 0x235   :  { %2765 = vst [vmem:[%s5438_s4 + $0x80] sm:$0xff] %v2483_v46  ;;  %v2582_v11 = vadd.f32 %v2568_v28, %v5622_v41  ;;  %v2386_v62 = vadd.f32 %v2372_v19, %v5623_v18  ;;  %v2561_v47 = vmul.f32 %v2156_v48, %v5624_v1  ;;  %v2365_v12 = vmul.f32 %v2158_v61, %v5625_v38  ;;  %v5633_v24 = vld [vmem:[#allocation19_spill] sm:$0xff]  ;;  %v5636_v36 = vld [vmem:[#allocation57_spill] sm:$0xff]  ;;  %v5640_v45 = vld [vmem:[#allocation58_spill] sm:$0xff] }
 0x236   :  { %v2484_v43 = vadd.f32 %v2470_v51, %v5626_v29  ;;  %v2569_v21 = vadd.f32 %v2555_v35, %v5114_v15  ;;  %v2378_v34 = vadd.f32 %v2364_v54, %v5093_v16  ;;  %v2476_v55 = vadd.f32 %v2462_v17, %v5095_v56  ;;  %v5629_v16 = vld [vmem:[#allocation54_spill] sm:$0xff]  ;;  %v5637_v40 = vld [vmem:[#allocation129_spill] sm:$0xff]  ;;  %v5642_v9 = vld [vmem:[#allocation79_spill] sm:$0xff] }
 0x237   :  { %2779 = vst [vmem:[%s5438_s4 + $0xf0] sm:$0xff] %v2582_v11  ;;  %2400 = vst [vmem:[%s5438_s4 + $0x18] sm:$0xff] %v2386_v62  ;;  %v2575_v44 = vadd.f32 %v2561_v47, %v5099_v27  ;;  %v2379_v37 = vadd.f32 %v2365_v12, %v5116_v14  ;;  %v2463_v33 = vmul.f32 %v2158_v61, %v5627_v10  ;;  %v5638_v7 = vld [vmem:[#allocation77_spill] sm:$0xff]  ;;  %v5641_v48 = vld [vmem:[#allocation130_spill] sm:$0xff] }
 0x238   :  { %v2562_v15 = vmul.f32 %v2158_v61, %v5628_v6  ;;  %2766 = vst [vmem:[%s5438_s4 + $0x88] sm:$0xff] %v2484_v43  ;;  %v2583_v56 = vadd.f32 %v2569_v21, %v5629_v16  ;;  %v2392_v5 = vadd.f32 %v2378_v34, %v5630_v49  ;;  %v2490_v42 = vadd.f32 %v2476_v55, %v5631_v50  ;;  %v5639_v23 = vld [vmem:[#allocation109_spill] sm:$0xff]  ;;  %v5643_v46 = vld [vmem:[#allocation111_spill] sm:$0xff]  ;;  %v5645_v51 = vld [vmem:[#allocation132_spill] sm:$0xff] }
 0x239   :  { %v2589_v32 = vadd.f32 %v2575_v44, %v5632_v60  ;;  %v2393_v27 = vadd.f32 %v2379_v37, %v5633_v24  ;;  %v2477_v14 = vadd.f32 %v2463_v33, %v5128_v0  ;;  %v5634_v0 = vld [vmem:[#allocation37_spill] sm:$0xff]  ;;  %v2317_v25 = vmul.f32 %v5637_v40, %v5636_v36  ;;  %v5644_v19 = vld [vmem:[#allocation59_spill] sm:$0xff]  ;;  %v5648_v17 = vld [vmem:[#allocation60_spill] sm:$0xff] }
 0x23a   :  { %v2576_v20 = vadd.f32 %v2562_v15, %v5131_v8  ;;  %2780 = vst [vmem:[%s5438_s4 + $0xf8] sm:$0xff] %v2583_v56  ;;  %2406 = vst [vmem:[%s5438_s4 + $0x48] sm:$0xff] %v2392_v5  ;;  %v2415_v59 = vmul.f32 %v5637_v40, %v5638_v7  ;;  %v2514_v57 = vmul.f32 %v5637_v40, %v5639_v23  ;;  %v5646_v35 = vld [vmem:[#allocation81_spill] sm:$0xff]  ;;  %v5650_v11 = vld [vmem:[#allocation83_spill] sm:$0xff] }
 0x23b   :  { %2772 = vst [vmem:[%s5438_s4 + $0xb8] sm:$0xff] %v2490_v42  ;;  %2786 = vst [vmem:[%s5438_s4 + $0x128] sm:$0xff] %v2589_v32  ;;  %v2491_v8 = vadd.f32 %v2477_v14, %v5634_v0  ;;  %v2318_v53 = vmul.f32 %v5641_v48, %v5640_v45  ;;  %v2416_v22 = vmul.f32 %v5641_v48, %v5642_v9  ;;  %v5647_v54 = vld [vmem:[#allocation113_spill] sm:$0xff]  ;;  %v5651_v62 = vld [vmem:[#allocation115_spill] sm:$0xff] }
 0x23c   :  { %2407 = vst [vmem:[%s5438_s4 + $0x50] sm:$0xff] %v2393_v27  ;;  %v2590_v31 = vadd.f32 %v2576_v20, %v5635_v39  ;;  %v2515_v28 = vmul.f32 %v5641_v48, %v5643_v46  ;;  %v2324_v2 = vmul.f32 %v5645_v51, %v5644_v19  ;;  %v2422_v63 = vmul.f32 %v5645_v51, %v5646_v35  ;;  %v5649_v61 = vld [vmem:[#allocation133_spill] sm:$0xff]  ;;  %v5652_v47 = vld [vmem:[#allocation72_spill] sm:$0xff]  ;;  %v5653_v38 = vld [vmem:[#allocation131_spill] sm:$0xff] }
 0x23d   :  { %2773 = vst [vmem:[%s5438_s4 + $0xc0] sm:$0xff] %v2491_v8  ;;  %v2521_v26 = vmul.f32 %v5645_v51, %v5647_v54  ;;  %v2325_v41 = vmul.f32 %v5649_v61, %v5648_v17  ;;  %v2423_v18 = vmul.f32 %v5649_v61, %v5650_v11  ;;  %v2522_v1 = vmul.f32 %v5649_v61, %v5651_v62  ;;  %v5654_v29 = vld [vmem:[#allocation61_spill] sm:$0xff]  ;;  %v5655_v21 = vld [vmem:[#allocation88_spill] sm:$0xff]  ;;  %v5658_v33 = vld [vmem:[#allocation63_spill] sm:$0xff] }
 0x23e   :  { %2787 = vst [vmem:[%s5438_s4 + $0x130] sm:$0xff] %v2590_v31  ;;  %v2319_v12 = vmul.f32 %v5653_v38, %v5652_v47  ;;  %v2331_v43 = vmul.f32 %v5042_v58, %v5654_v29  ;;  %v2417_v34 = vmul.f32 %v5653_v38, %v5655_v21  ;;  %v5656_v55 = vld [vmem:[#allocation85_spill] sm:$0xff]  ;;  %v2338_v6 = vmul.f32 %v5081_v13, %v5658_v33  ;;  %v5659_v15 = vld [vmem:[#allocation104_spill] sm:$0xff]  ;;  %v5660_v56 = vld [vmem:[#allocation134_spill] sm:$0xff] }
 0x23f   :  { %v2429_v44 = vmul.f32 %v5042_v58, %v5656_v55  ;;  %v5657_v37 = vld [vmem:[#allocation117_spill] sm:$0xff]  ;;  %v2516_v16 = vmul.f32 %v5653_v38, %v5659_v15  ;;  %v5661_v49 = vld [vmem:[#allocation70_spill] sm:$0xff]  ;;  %v5664_v24 = vld [vmem:[#allocation119_spill] sm:$0xff] }
 0x240   :  { %v2528_v10 = vmul.f32 %v5042_v58, %v5657_v37  ;;  %v2326_v5 = vmul.f32 %v5661_v49, %v5660_v56  ;;  %v5662_v50 = vld [vmem:[#allocation86_spill] sm:$0xff]  ;;  %v5663_v60 = vld [vmem:[#allocation89_spill] sm:$0xff]  ;;  %v2535_v27 = vmul.f32 %v5081_v13, %v5664_v24  ;;  %v5666_v20 = vld [vmem:[#allocation87_spill] sm:$0xff]  ;;  %v2345_v40 = vadd.f32 %v2331_v43, %v2317_v25 }
 0x241   :  { %v2424_v42 = vmul.f32 %v5662_v50, %v5660_v56  ;;  %v2436_v32 = vmul.f32 %v5081_v13, %v5663_v60  ;;  %v5665_v14 = vld [vmem:[#allocation62_spill] sm:$0xff]  ;;  %v2430_v0 = vmul.f32 %v5062_v3, %v5666_v20  ;;  %v5669_v7 = vld [vmem:[#allocation76_spill] sm:$0xff]  ;;  %v2443_v48 = vadd.f32 %v2429_v44, %v2415_v59  ;;  %v5673_v17 = vld [vmem:[#allocation91_spill] sm:$0xff] }
 0x242   :  { %v2332_v58 = vmul.f32 %v5062_v3, %v5665_v14  ;;  %v5667_v8 = vld [vmem:[#allocation118_spill] sm:$0xff]  ;;  %v2333_v23 = vmul.f32 %v5083_v52, %v5669_v7  ;;  %v5670_v45 = vld [vmem:[#allocation92_spill] sm:$0xff]  ;;  %v2542_v9 = vadd.f32 %v2528_v10, %v2514_v57  ;;  %v2352_v46 = vadd.f32 %v2338_v6, %v2324_v2  ;;  %v5677_v44 = vld [vmem:[#allocation65_spill] sm:$0xff] }
 0x243   :  { %v2529_v39 = vmul.f32 %v5062_v3, %v5667_v8  ;;  %v5668_v31 = vld [vmem:[#allocation102_spill] sm:$0xff]  ;;  %v2431_v13 = vmul.f32 %v5083_v52, %v5670_v45  ;;  %v5671_v19 = vld [vmem:[#allocation108_spill] sm:$0xff]  ;;  %v2450_v35 = vadd.f32 %v2436_v32, %v2422_v63  ;;  %v2437_v61 = vmul.f32 %v5110_v4, %v5673_v17  ;;  %v5682_v24 = vld [vmem:[#allocation95_spill] sm:$0xff] }
 0x244   :  { %v5314_v36 = vmul.f32 %v5668_v31, %v5660_v56  ;;  %v2530_v51 = vmul.f32 %v5083_v52, %v5671_v19  ;;  %v5672_v54 = vld [vmem:[#allocation64_spill] sm:$0xff]  ;;  %v2549_v62 = vadd.f32 %v2535_v27, %v2521_v26  ;;  %v2346_v47 = vadd.f32 %v2332_v58, %v2318_v53  ;;  %v5675_v52 = vld [vmem:[#allocation74_spill] sm:$0xff]  ;;  %v5679_v53 = vld [vmem:[#allocation121_spill] sm:$0xff] }
 0x245   :  { %v2339_v3 = vmul.f32 %v5110_v4, %v5672_v54  ;;  %v5674_v25 = vld [vmem:[#allocation120_spill] sm:$0xff]  ;;  %v2444_v38 = vadd.f32 %v2430_v0, %v2416_v22  ;;  %v2543_v29 = vadd.f32 %v2529_v39, %v2515_v28  ;;  %v5328_v59 = vadd.f32 %v2333_v23, %v2319_v12  ;;  %v5676_v63 = vld [vmem:[#allocation90_spill] sm:$0xff]  ;;  %v5684_v0 = vld [vmem:[#allocation69_spill] sm:$0xff] }
 0x246   :  { %v2536_v11 = vmul.f32 %v5110_v4, %v5674_v25  ;;  %v5330_v57 = vadd.f32 %v2431_v13, %v2417_v34  ;;  %v2340_v2 = vmul.f32 %v5675_v52, %v5123_v30  ;;  %v2438_v43 = vmul.f32 %v5676_v63, %v5123_v30  ;;  %v5678_v4 = vld [vmem:[#allocation93_spill] sm:$0xff]  ;;  %v5680_v34 = vld [vmem:[#allocation106_spill] sm:$0xff]  ;;  %v5687_v7 = vld [vmem:[#allocation67_spill] sm:$0xff] }
 0x247   :  { %v5336_v55 = vadd.f32 %v2530_v51, %v2516_v16  ;;  %v2353_v28 = vadd.f32 %v2339_v3, %v2325_v41  ;;  %v2451_v12 = vadd.f32 %v2437_v61, %v2423_v18  ;;  %v2537_v33 = vmul.f32 %v5680_v34, %v5123_v30  ;;  %v5681_v50 = vld [vmem:[#allocation66_spill] sm:$0xff]  ;;  %v5685_v18 = vld [vmem:[#allocation101_spill] sm:$0xff]  ;;  %v5690_v19 = vld [vmem:[#allocation123_spill] sm:$0xff] }
 0x248   :  { %v2550_v10 = vadd.f32 %v2536_v11, %v2522_v1  ;;  %v2354_v16 = vadd.f32 %v2340_v2, %v2326_v5  ;;  %v2452_v32 = vadd.f32 %v2438_v43, %v2424_v42  ;;  %v5683_v14 = vld [vmem:[#allocation122_spill] sm:$0xff]  ;;  %v5686_v8 = vld [vmem:[#allocation125_spill] sm:$0xff]  ;;  %v5691_v54 = vld [vmem:[#allocation68_spill] sm:$0xff] }
 0x249   :  { %v5688_v45 = vld [vmem:[#allocation97_spill] sm:$0xff]  ;;  %v5692_v17 = vld [vmem:[#allocation99_spill] sm:$0xff]  ;;  %v5699_v34 = vld [vmem:[#allocation96_spill] sm:$0xff] }
 0x24a   :  { %v2227_v21 = vpop.f32.mrf.mxu1  ;;  %v5693_v25 = vld [vmem:[#allocation103_spill] sm:$0xff] }
 0x24b   :  { %v2359_v37 = vmul.f32 %v2227_v21, %v5677_v44  ;;  %v2457_v26 = vmul.f32 %v2227_v21, %v5678_v4  ;;  %v2556_v22 = vmul.f32 %v2227_v21, %v5679_v53  ;;  %v5695_v44 = vld [vmem:[#allocation124_spill] sm:$0xff]  ;;  %v5697_v4 = vld [vmem:[#allocation105_spill] sm:$0xff] }
 0x24c   :  { %v2229_v6 = vpop.f32.mrf.mxu1  ;;  %v5698_v53 = vld [vmem:[#allocation80_spill] sm:$0xff] }
 0x24d   :  { %v2373_v15 = vadd.f32 %v2359_v37, %v2345_v40  ;;  %v2471_v56 = vadd.f32 %v2457_v26, %v2443_v48  ;;  %v2570_v49 = vadd.f32 %v2556_v22, %v2542_v9  ;;  %v2360_v60 = vmul.f32 %v2229_v6, %v5681_v50  ;;  %v5689_v48 = vld [vmem:[#allocation71_spill] sm:$0xff] }
 0x24e   :  { %v2458_v27 = vmul.f32 %v2229_v6, %v5682_v24  ;;  %v2557_v58 = vmul.f32 %v2229_v6, %v5683_v14  ;;  %v2233_v20 = vpop.f32.mrf.mxu1  ;;  %v5703_v14 = vld [vmem:[#allocation112_spill] sm:$0xff] }
 0x24f   :  { %v2387_v41 = vadd.f32 %v2373_v15, %v5684_v0  ;;  %v2485_v1 = vadd.f32 %v2471_v56, %v5685_v18  ;;  %v2584_v39 = vadd.f32 %v2570_v49, %v5686_v8  ;;  %v2374_v30 = vadd.f32 %v2360_v60, %v2346_v47  ;;  %v5694_v47 = vld [vmem:[#allocation126_spill] sm:$0xff]  ;;  %v5701_v15 = vld [vmem:[#allocation75_spill] sm:$0xff] }
 0x250   :  { %v2472_v31 = vadd.f32 %v2458_v27, %v2444_v38  ;;  %v2571_v40 = vadd.f32 %v2557_v58, %v2543_v29  ;;  %v2366_v23 = vmul.f32 %v2233_v20, %v5687_v7  ;;  %v2464_v13 = vmul.f32 %v2233_v20, %v5688_v45  ;;  %v2235_v5 = vpop.f32.mrf.mxu1  ;;  %v2304_v42 = vpop.f32.mrf.mxu0  ;;  %v5702_v49 = vld [vmem:[#allocation107_spill] sm:$0xff]  ;;  %v5707_v8 = vld [vmem:[#allocation110_spill] sm:$0xff] }
 0x251   :  { %2401 = vst [vmem:[%s5438_s4 + $0x20] sm:$0xff] %v2387_v41  ;;  %2767 = vst [vmem:[%s5438_s4 + $0x90] sm:$0xff] %v2485_v1  ;;  %v2388_v9 = vadd.f32 %v2374_v30, %v5689_v48  ;;  %v2563_v51 = vmul.f32 %v2233_v20, %v5690_v19  ;;  %v2367_v3 = vmul.f32 %v2235_v5, %v5691_v54  ;;  %v5704_v20 = vld [vmem:[#allocation78_spill] sm:$0xff]  ;;  %v5708_v30 = vld [vmem:[#allocation84_spill] sm:$0xff] }
 0x252   :  { %2781 = vst [vmem:[%s5438_s4 + $0x100] sm:$0xff] %v2584_v39  ;;  %v2465_v61 = vmul.f32 %v2235_v5, %v5692_v17  ;;  %v2486_v11 = vadd.f32 %v2472_v31, %v5693_v25  ;;  %v2585_v38 = vadd.f32 %v2571_v40, %v5694_v47  ;;  %v2380_v29 = vadd.f32 %v2366_v23, %v2352_v46  ;;  %v2306_v2 = vpop.f32.mrf.mxu0  ;;  %v5696_v46 = vld [vmem:[#allocation73_spill] sm:$0xff] }
 0x253   :  { %v2478_v52 = vadd.f32 %v2464_v13, %v2450_v35  ;;  %2402 = vst [vmem:[%s5438_s4 + $0x28] sm:$0xff] %v2388_v9  ;;  %v2577_v63 = vadd.f32 %v2563_v51, %v2549_v62  ;;  %v2381_v43 = vadd.f32 %v2367_v3, %v2353_v28  ;;  %v2564_v37 = vmul.f32 %v2235_v5, %v5695_v44  ;;  %v5710_v13 = vld [vmem:[#allocation116_spill] sm:$0xff]  ;;  %v5713_v9 = vld [vmem:[#allocation114_spill] sm:$0xff] }
 0x254   :  { %v2479_v21 = vadd.f32 %v2465_v61, %v2451_v12  ;;  %2768 = vst [vmem:[%s5438_s4 + $0x98] sm:$0xff] %v2486_v11  ;;  %2782 = vst [vmem:[%s5438_s4 + $0x108] sm:$0xff] %v2585_v38  ;;  %v2394_v35 = vadd.f32 %v2380_v29, %v5696_v46  ;;  %v2361_v22 = vmul.f32 %v2304_v42, %v5698_v53  ;;  %v2309_v28 = vpop.f32.mrf.mxu0  ;;  %v5700_v12 = vld [vmem:[#allocation127_spill] sm:$0xff] }
 0x255   :  { %v2492_v26 = vadd.f32 %v2478_v52, %v5697_v4  ;;  %v2459_v62 = vmul.f32 %v2304_v42, %v5699_v34  ;;  %v2591_v6 = vadd.f32 %v2577_v63, %v5700_v12  ;;  %v2395_v56 = vadd.f32 %v2381_v43, %v5701_v15 }
 0x256   :  { %v2493_v50 = vadd.f32 %v2479_v21, %v5702_v49  ;;  %v2578_v60 = vadd.f32 %v2564_v37, %v2550_v10  ;;  %2408 = vst [vmem:[%s5438_s4 + $0x58] sm:$0xff] %v2394_v35  ;;  %v2375_v24 = vadd.f32 %v2361_v22, %v5328_v59  ;;  %v2558_v58 = vmul.f32 %v2304_v42, %v5703_v14  ;;  %v2311_v41 = vpop.f32.mrf.mxu0  ;;  %v5705_v59 = vld [vmem:[#allocation128_spill] sm:$0xff]  ;;  %v5706_v10 = vld [vmem:[#allocation94_spill] sm:$0xff] }
 0x257   :  { %2774 = vst [vmem:[%s5438_s4 + $0xc8] sm:$0xff] %v2492_v26  ;;  %v2473_v27 = vadd.f32 %v2459_v62, %v5330_v57  ;;  %v2368_v0 = vmul.f32 %v5704_v20, %v2309_v28  ;;  %v2551_v18 = vadd.f32 %v2537_v33, %v5314_v36  ;;  %2788 = vst [vmem:[%s5438_s4 + $0x138] sm:$0xff] %v2591_v6  ;;  %v5709_v33 = vld [vmem:[#allocation100_spill] sm:$0xff]  ;;  %v5711_v42 = vld [vmem:[#allocation82_spill] sm:$0xff] }
 0x258   :  { %2409 = vst [vmem:[%s5438_s4 + $0x60] sm:$0xff] %v2395_v56  ;;  %2775 = vst [vmem:[%s5438_s4 + $0xd0] sm:$0xff] %v2493_v50  ;;  %v2592_v57 = vadd.f32 %v2578_v60, %v5705_v59  ;;  %v2466_v1 = vmul.f32 %v5706_v10, %v2309_v28  ;;  %v2565_v39 = vmul.f32 %v5707_v8, %v2309_v28 }
 0x259   :  { %v2389_v36 = vadd.f32 %v2375_v24, %v5708_v30  ;;  %v2487_v31 = vadd.f32 %v2473_v27, %v5709_v33  ;;  %v2572_v40 = vadd.f32 %v2558_v58, %v5336_v55  ;;  %v2382_v7 = vadd.f32 %v2368_v0, %v2354_v16  ;;  %v5712_v55 = vld [vmem:[#allocation98_spill] sm:$0xff] }
 0x25a   :  { %2789 = vst [vmem:[%s5438_s4 + $0x140] sm:$0xff] %v2592_v57  ;;  %v2480_v23 = vadd.f32 %v2466_v1, %v2452_v32  ;;  %v2579_v45 = vadd.f32 %v2565_v39, %v2551_v18 }
 0x25b   :  { %2403 = vst [vmem:[%s5438_s4 + $0x30] sm:$0xff] %v2389_v36  ;;  %2769 = vst [vmem:[%s5438_s4 + $0xa0] sm:$0xff] %v2487_v31  ;;  %v2586_v5 = vadd.f32 %v2572_v40, %v5710_v13  ;;  %v2396_v48 = vadd.f32 %v5711_v42, %v2382_v7 }
 0x25c   :  { %v2494_v16 = vadd.f32 %v5712_v55, %v2480_v23  ;;  %v2593_v19 = vadd.f32 %v5713_v9, %v2579_v45 }
 0x25d   :  { %2783 = vst [vmem:[%s5438_s4 + $0x110] sm:$0xff] %v2586_v5  ;;  %2410 = vst [vmem:[%s5438_s4 + $0x68] sm:$0xff] %v2396_v48 }
 0x25e   :  { %2776 = vst [vmem:[%s5438_s4 + $0xd8] sm:$0xff] %v2494_v16  ;;  %2790 = vst [vmem:[%s5438_s4 + $0x148] sm:$0xff] %v2593_v19 }

</bundles_post_ra>
